<compile_context>
chip_gen: v5e
topology: v5e:2x2
jax: 0.10.0
libtpu: 0.0.40
codegen_flags: <defaults>
</compile_context>

<pallas_src>
import math

import jax
import jax.numpy as jnp
from jax.experimental import pallas as pl
from jax.experimental.pallas import tpu as pltpu

# Model hyper-parameters (small shapes consistent with the PyTorch module).
NUM_PHONEMES = 50
D_MODEL = 32
N_HEAD = 4
D_FF = 64
NUM_LAYERS = 2
D_HEAD = D_MODEL // N_HEAD
PADDING_IDX = 0
EPS = 1e-5  # nn.LayerNorm default


def _layernorm(x, gamma, beta):
    mu = jnp.mean(x, axis=-1, keepdims=True)
    var = jnp.mean(jnp.square(x - mu), axis=-1, keepdims=True)
    return (x - mu) * jax.lax.rsqrt(var + EPS) * gamma + beta


def encoder_kernel(ids_ref, mu_ref, pe_ref, g0_ref, b0_ref,
                   wq_ref, bq_ref, wk_ref, bk_ref, wv_ref, bv_ref,
                   wo_ref, bo_ref, g1_ref, be1_ref,
                   w1_ref, bf1_ref, w2_ref, bf2_ref, g2_ref, be2_ref,
                   gf_ref, bf_ref,
                   out_ref, emb_ref):
    """One grid step processes a chunk of BB batches, fully fused (embed + L layers + final LN)."""
    BB, S, D = out_ref.shape
    P = mu_ref.shape[0]
    L, H, _, DH = wq_ref.shape
    M = BB * S

    # ---------------- probabilistic phonetic encoder (eval: mean only) ----------------
    ids_col = ids_ref[...]                                               # (M, 1) int32
    onehot = (ids_col == jax.lax.broadcasted_iota(jnp.int32, (M, P), 1)
              ).astype(jnp.float32)                                      # (M, P)
    emb = jnp.dot(onehot, mu_ref[...],
                  preferred_element_type=jnp.float32)                    # (M, D) == mu[ids]
    emb3 = emb.reshape(BB, S, D) + pe_ref[...]            # alpha already folded into PE
    emb3 = _layernorm(emb3, g0_ref[...], b0_ref[...])
    pad = (ids_col != PADDING_IDX).astype(jnp.float32)                   # (M, 1)
    emb3 = emb3 * pad.reshape(BB, S, 1)
    emb_ref[...] = emb3                                   # phoneme_embeddings output

    # ---------------------- transformer encoder layers --------------------------------
    # Batch folded into the matmul M dimension: x is (BB*S, D).
    x = emb3.reshape(M, D)
    for l in range(L):                                    # static unroll over layers
        att = jnp.zeros((M, D), jnp.float32)
        for h in range(H):                                # static unroll over heads
            # Per-head projections via free leading-axis ref indexing.
            # Wq/bq already carry the 1/sqrt(d_h) attention scale.
            q = jnp.dot(x, wq_ref[l, h], preferred_element_type=jnp.float32) + bq_ref[l, h]
            k = jnp.dot(x, wk_ref[l, h], preferred_element_type=jnp.float32) + bk_ref[l, h]
            v = jnp.dot(x, wv_ref[l, h], preferred_element_type=jnp.float32) + bv_ref[l, h]
            q3 = q.reshape(BB, S, DH)
            k3 = k.reshape(BB, S, DH)
            v3 = v.reshape(BB, S, DH)
            # TODO(synk): optional attention-mask path not implemented (forward uses mask=None).
            s = jnp.einsum("bqd,bkd->bqk", q3, k3,
                           preferred_element_type=jnp.float32)           # (BB, S, S)
            s = s - jnp.max(s, axis=-1, keepdims=True)
            p = jnp.exp(s)
            p = p / jnp.sum(p, axis=-1, keepdims=True)    # exact softmax denominator
            ctx = jnp.einsum("bqk,bkd->bqd", p, v3,
                             preferred_element_type=jnp.float32)         # (BB, S, DH)
            # Accumulated output projection: no lane-axis head concatenate.
            att = att + jnp.dot(ctx.reshape(M, DH), wo_ref[l, h],
                                preferred_element_type=jnp.float32)
        att = att + bo_ref[l]
        y = _layernorm(x + att, g1_ref[l], be1_ref[l])                   # dropout == identity
        h1 = jnp.maximum(
            jnp.dot(y, w1_ref[l], preferred_element_type=jnp.float32) + bf1_ref[l], 0.0)
        ff = jnp.dot(h1, w2_ref[l], preferred_element_type=jnp.float32) + bf2_ref[l]
        x = _layernorm(y + ff, g2_ref[l], be2_ref[l])

    x = _layernorm(x, gf_ref[...], bf_ref[...])           # final encoder LayerNorm
    out_ref[...] = x.reshape(BB, S, D)


def _default_batch_blocks(batch):
    # v7x has 2 TensorCores per chip -> keep a 2-way "parallel" grid axis there.
    # v5e/v6e have a single TensorCore -> a single grid step minimizes per-step overhead.
    try:
        kind = jax.devices()[0].device_kind.lower()
    except Exception:
        kind = ""
    if "7" in kind and batch % 2 == 0:
        return 2
    return 1


def encoder_forward(phoneme_ids, kparams, *, batch_blocks=None):
    """phoneme_ids: (B, S) int32. kparams: list produced by pack_params()."""
    B, S = phoneme_ids.shape
    if batch_blocks is None:
        batch_blocks = _default_batch_blocks(B)
    assert B % batch_blocks == 0
    BB = B // batch_blocks
    # ids are presented as a (B*S, 1) column so every in-kernel reshape keeps the lane dim fixed.
    ids_col = phoneme_ids.reshape(B * S, 1).astype(jnp.int32)

    in_specs = [pl.BlockSpec((BB * S, 1), lambda g: (g, 0))]
    for prm in kparams:
        in_specs.append(pl.BlockSpec(prm.shape, lambda g, n=prm.ndim: (0,) * n))
    out_specs = (pl.BlockSpec((BB, S, D_MODEL), lambda g: (g, 0, 0)),
                 pl.BlockSpec((BB, S, D_MODEL), lambda g: (g, 0, 0)))
    out_shape = (jax.ShapeDtypeStruct((B, S, D_MODEL), jnp.float32),   # encoder output
                 jax.ShapeDtypeStruct((B, S, D_MODEL), jnp.float32))   # phoneme embeddings

    return pl.pallas_call(
        encoder_kernel,
        grid=(batch_blocks,),
        in_specs=in_specs,
        out_specs=out_specs,
        out_shape=out_shape,
        compiler_params=pltpu.CompilerParams(dimension_semantics=("parallel",)),
    )(ids_col, *kparams)


# ------------------------- parameter construction / packing -------------------------
def make_positional_encoding(seq_len, d_model):
    position = jnp.arange(seq_len, dtype=jnp.float32)[:, None]
    div_term = jnp.exp(jnp.arange(0, d_model, 2, dtype=jnp.float32)
                       * (-math.log(10000.0) / d_model))
    pe = jnp.zeros((seq_len, d_model), jnp.float32)
    pe = pe.at[:, 0::2].set(jnp.sin(position * div_term))
    pe = pe.at[:, 1::2].set(jnp.cos(position * div_term))
    return pe


def init_params(key, seq_len):
    keys = jax.random.split(key, 6 + NUM_LAYERS)
    nrm = lambda k, shape, s: (s * jax.random.normal(k, shape)).astype(jnp.float32)
    params = {
        "mu": nrm(keys[0], (NUM_PHONEMES, D_MODEL), 0.3),
        "alpha": jnp.float32(1.0),                  # nn.Parameter(torch.ones(1))
        "pe": make_positional_encoding(seq_len, D_MODEL),
        "g0": 1.0 + nrm(keys[1], (1, D_MODEL), 0.1),
        "b0": nrm(keys[2], (1, D_MODEL), 0.05),
        "gf": 1.0 + nrm(keys[3], (1, D_MODEL), 0.1),
        "bf": nrm(keys[4], (1, D_MODEL), 0.05),
        "layers": [],
    }
    for i in range(NUM_LAYERS):
        lk = jax.random.split(keys[5 + i], 16)
        params["layers"].append({
            "wq": nrm(lk[0], (D_MODEL, D_MODEL), 0.08), "bq": nrm(lk[1], (1, D_MODEL), 0.02),
            "wk": nrm(lk[2], (D_MODEL, D_MODEL), 0.08), "bk": nrm(lk[3], (1, D_MODEL), 0.02),
            "wv": nrm(lk[4], (D_MODEL, D_MODEL), 0.08), "bv": nrm(lk[5], (1, D_MODEL), 0.02),
            "wo": nrm(lk[6], (D_MODEL, D_MODEL), 0.08), "bo": nrm(lk[7], (1, D_MODEL), 0.02),
            "g1": 1.0 + nrm(lk[8], (1, D_MODEL), 0.1),  "be1": nrm(lk[9], (1, D_MODEL), 0.05),
            "w1": nrm(lk[10], (D_MODEL, D_FF), 0.08),   "bf1": nrm(lk[11], (1, D_FF), 0.02),
            "w2": nrm(lk[12], (D_FF, D_MODEL), 0.08),   "bf2": nrm(lk[13], (1, D_MODEL), 0.02),
            "g2": 1.0 + nrm(lk[14], (1, D_MODEL), 0.1), "be2": nrm(lk[15], (1, D_MODEL), 0.05),
        })
    return params


def pack_params(p):
    """Re-pack 'natural' [in,out] parameters into the kernel's stacked per-head layout.
    Folds alpha into the positional encoding and 1/sqrt(d_head) into Wq/bq (exact rescaling)."""
    scale = 1.0 / math.sqrt(D_HEAD)

    def heads_in(w):    # (D, D) -> (H, D, d_h): head h uses columns h*d_h:(h+1)*d_h
        return jnp.transpose(w.reshape(D_MODEL, N_HEAD, D_HEAD), (1, 0, 2))

    def heads_bias(b):  # (1, D) -> (H, 1, d_h)
        return jnp.transpose(b.reshape(1, N_HEAD, D_HEAD), (1, 0, 2))

    def heads_out(w):   # (D, D) -> (H, d_h, D): head h uses rows h*d_h:(h+1)*d_h
        return w.reshape(N_HEAD, D_HEAD, D_MODEL)

    def stk(name, f=lambda a: a):
        return jnp.stack([f(layer[name]) for layer in p["layers"]], axis=0)

    return [
        p["mu"],
        (p["alpha"] * p["pe"]).astype(jnp.float32),
        p["g0"], p["b0"],
        stk("wq", lambda w: heads_in(w) * scale),
        stk("bq", lambda b: heads_bias(b) * scale),
        stk("wk", heads_in), stk("bk", heads_bias),
        stk("wv", heads_in), stk("bv", heads_bias),
        stk("wo", heads_out), stk("bo"),
        stk("g1"), stk("be1"),
        stk("w1"), stk("bf1"),
        stk("w2"), stk("bf2"),
        stk("g2"), stk("be2"),
        p["gf"], p["bf"],
    ]


# ------------------------- pure-JAX reference (for verification) -------------------------
def encoder_ref(phoneme_ids, p):
    # HIGHEST precision everywhere: JAX's DEFAULT matmul precision on TPU uses bf16 passes for
    # f32 operands, which previously made this reference (not the kernel) drift past tolerance.
    HI = jax.lax.Precision.HIGHEST
    mm = lambda a, b: jnp.matmul(a, b, precision=HI)

    def ln(v, g, b):
        mu = jnp.mean(v, axis=-1, keepdims=True)
        var = jnp.mean((v - mu) ** 2, axis=-1, keepdims=True)
        return (v - mu) / jnp.sqrt(var + EPS) * g + b

    B, S = phoneme_ids.shape
    x = p["mu"][phoneme_ids] + p["alpha"] * p["pe"][None, :, :]
    x = ln(x, p["g0"], p["b0"])
    x = x * (phoneme_ids != PADDING_IDX)[..., None].astype(jnp.float32)
    emb = x
    for lp in p["layers"]:
        q = mm(x, lp["wq"]) + lp["bq"]
        k = mm(x, lp["wk"]) + lp["bk"]
        v = mm(x, lp["wv"]) + lp["bv"]
        qh = q.reshape(B, S, N_HEAD, D_HEAD).transpose(0, 2, 1, 3)
        kh = k.reshape(B, S, N_HEAD, D_HEAD).transpose(0, 2, 1, 3)
        vh = v.reshape(B, S, N_HEAD, D_HEAD).transpose(0, 2, 1, 3)
        scores = jnp.einsum("bhqd,bhkd->bhqk", qh, kh, precision=HI) / math.sqrt(D_HEAD)
        prob = jax.nn.softmax(scores, axis=-1)
        ctx = jnp.einsum("bhqk,bhkd->bhqd", prob, vh, precision=HI)
        ctx = ctx.transpose(0, 2, 1, 3).reshape(B, S, D_MODEL)
        att = mm(ctx, lp["wo"]) + lp["bo"]
        y = ln(x + att, lp["g1"], lp["be1"])
        ff = mm(jnp.maximum(mm(y, lp["w1"]) + lp["bf1"], 0.0), lp["w2"]) + lp["bf2"]
        x = ln(y + ff, lp["g2"], lp["be2"])
    x = ln(x, p["gf"], p["bf"])
    return x, emb


if __name__ == "__main__":
    key = jax.random.PRNGKey(0)
    k_ids, k_params = jax.random.split(key)

    B, S = 2, 8
    ids = jax.random.randint(k_ids, (B, S), 1, NUM_PHONEMES, dtype=jnp.int32)
    ids = ids.at[1, 6:].set(PADDING_IDX)          # exercise the padding mask

    params = init_params(k_params, seq_len=S)
    kparams = pack_params(params)

    out, emb = encoder_forward(ids, kparams)
    out, emb = jax.block_until_ready((out, emb))

    ref_out, ref_emb = encoder_ref(ids, params)
    assert out.shape == (B, S, D_MODEL) and emb.shape == (B, S, D_MODEL)
    # Tolerances leave headroom for MXU f32 rounding in the compiled kernel; a real packing /
    # math bug would produce O(1) errors and still fail loudly.
    emb_err = float(jnp.max(jnp.abs(emb - ref_emb)))
    out_err = float(jnp.max(jnp.abs(out - ref_out)))
    assert emb_err < 5e-3, f"phoneme embedding mismatch vs JAX reference (max abs err {emb_err})"
    assert out_err < 2e-2, f"encoder output mismatch vs JAX reference (max abs err {out_err})"
    print("KERNEL_OK")
</pallas_src>

<mosaic_0001>
module attributes {stable_mosaic.version = 11 : i64} {
  func.func @encoder_kernel(%arg0: i32, %arg1: memref<16x1xi32, #tpu.memory_space<vmem>>, %arg2: memref<50x32xf32, #tpu.memory_space<vmem>>, %arg3: memref<8x32xf32, #tpu.memory_space<vmem>>, %arg4: memref<1x32xf32, #tpu.memory_space<vmem>>, %arg5: memref<1x32xf32, #tpu.memory_space<vmem>>, %arg6: memref<2x4x32x8xf32, #tpu.memory_space<vmem>>, %arg7: memref<2x4x1x8xf32, #tpu.memory_space<vmem>>, %arg8: memref<2x4x32x8xf32, #tpu.memory_space<vmem>>, %arg9: memref<2x4x1x8xf32, #tpu.memory_space<vmem>>, %arg10: memref<2x4x32x8xf32, #tpu.memory_space<vmem>>, %arg11: memref<2x4x1x8xf32, #tpu.memory_space<vmem>>, %arg12: memref<2x4x8x32xf32, #tpu.memory_space<vmem>>, %arg13: memref<2x1x32xf32, #tpu.memory_space<vmem>>, %arg14: memref<2x1x32xf32, #tpu.memory_space<vmem>>, %arg15: memref<2x1x32xf32, #tpu.memory_space<vmem>>, %arg16: memref<2x32x64xf32, #tpu.memory_space<vmem>>, %arg17: memref<2x1x64xf32, #tpu.memory_space<vmem>>, %arg18: memref<2x64x32xf32, #tpu.memory_space<vmem>>, %arg19: memref<2x1x32xf32, #tpu.memory_space<vmem>>, %arg20: memref<2x1x32xf32, #tpu.memory_space<vmem>>, %arg21: memref<2x1x32xf32, #tpu.memory_space<vmem>>, %arg22: memref<1x32xf32, #tpu.memory_space<vmem>>, %arg23: memref<1x32xf32, #tpu.memory_space<vmem>>, %arg24: memref<2x8x32xf32, #tpu.memory_space<vmem>>, %arg25: memref<2x8x32xf32, #tpu.memory_space<vmem>>) attributes {dimension_semantics = [#tpu.dimension_semantics<parallel>], iteration_bounds = array<i64: 1>, scalar_prefetch = 0 : i64, scratch_operands = 0 : i64, tpu.core_type = #tpu.core_type<tc>, window_params = [{transform_indices = @transform_0, window_bounds = array<i64: 16, 1>}, {pipeline_mode = #tpu.pipeline_mode<synchronous>, transform_indices = @transform_1, window_bounds = array<i64: 50, 32>}, {pipeline_mode = #tpu.pipeline_mode<synchronous>, transform_indices = @transform_2, window_bounds = array<i64: 8, 32>}, {pipeline_mode = #tpu.pipeline_mode<synchronous>, transform_indices = @transform_3, window_bounds = array<i64: 1, 32>}, {pipeline_mode = #tpu.pipeline_mode<synchronous>, transform_indices = @transform_4, window_bounds = array<i64: 1, 32>}, {pipeline_mode = #tpu.pipeline_mode<synchronous>, transform_indices = @transform_5, window_bounds = array<i64: 2, 4, 32, 8>}, {pipeline_mode = #tpu.pipeline_mode<synchronous>, transform_indices = @transform_6, window_bounds = array<i64: 2, 4, 1, 8>}, {pipeline_mode = #tpu.pipeline_mode<synchronous>, transform_indices = @transform_7, window_bounds = array<i64: 2, 4, 32, 8>}, {pipeline_mode = #tpu.pipeline_mode<synchronous>, transform_indices = @transform_8, window_bounds = array<i64: 2, 4, 1, 8>}, {pipeline_mode = #tpu.pipeline_mode<synchronous>, transform_indices = @transform_9, window_bounds = array<i64: 2, 4, 32, 8>}, {pipeline_mode = #tpu.pipeline_mode<synchronous>, transform_indices = @transform_10, window_bounds = array<i64: 2, 4, 1, 8>}, {pipeline_mode = #tpu.pipeline_mode<synchronous>, transform_indices = @transform_11, window_bounds = array<i64: 2, 4, 8, 32>}, {pipeline_mode = #tpu.pipeline_mode<synchronous>, transform_indices = @transform_12, window_bounds = array<i64: 2, 1, 32>}, {pipeline_mode = #tpu.pipeline_mode<synchronous>, transform_indices = @transform_13, window_bounds = array<i64: 2, 1, 32>}, {pipeline_mode = #tpu.pipeline_mode<synchronous>, transform_indices = @transform_14, window_bounds = array<i64: 2, 1, 32>}, {pipeline_mode = #tpu.pipeline_mode<synchronous>, transform_indices = @transform_15, window_bounds = array<i64: 2, 32, 64>}, {pipeline_mode = #tpu.pipeline_mode<synchronous>, transform_indices = @transform_16, window_bounds = array<i64: 2, 1, 64>}, {pipeline_mode = #tpu.pipeline_mode<synchronous>, transform_indices = @transform_17, window_bounds = array<i64: 2, 64, 32>}, {pipeline_mode = #tpu.pipeline_mode<synchronous>, transform_indices = @transform_18, window_bounds = array<i64: 2, 1, 32>}, {pipeline_mode = #tpu.pipeline_mode<synchronous>, transform_indices = @transform_19, window_bounds = array<i64: 2, 1, 32>}, {pipeline_mode = #tpu.pipeline_mode<synchronous>, transform_indices = @transform_20, window_bounds = array<i64: 2, 1, 32>}, {pipeline_mode = #tpu.pipeline_mode<synchronous>, transform_indices = @transform_21, window_bounds = array<i64: 1, 32>}, {pipeline_mode = #tpu.pipeline_mode<synchronous>, transform_indices = @transform_22, window_bounds = array<i64: 1, 32>}, {transform_indices = @transform_23, window_bounds = array<i64: 2, 8, 32>}, {transform_indices = @transform_24, window_bounds = array<i64: 2, 8, 32>}]} {
    %c0 = arith.constant 0 : index
    %c0_0 = arith.constant 0 : index
    %0 = vector.load %arg1[%c0, %c0_0] : memref<16x1xi32, #tpu.memory_space<vmem>>, vector<16x1xi32>
    %1 = tpu.iota {dimensions = array<i32: 1>} : vector<16x50xi32>
    %2 = vector.broadcast %0 : vector<16x1xi32> to vector<16x50xi32>
    %3 = arith.cmpi eq, %2, %1 : vector<16x50xi32>
    %4 = arith.extui %3 : vector<16x50xi1> to vector<16x50xi32>
    %5 = arith.sitofp %4 : vector<16x50xi32> to vector<16x50xf32>
    %c0_1 = arith.constant 0 : index
    %c0_2 = arith.constant 0 : index
    %6 = vector.load %arg2[%c0_1, %c0_2] : memref<50x32xf32, #tpu.memory_space<vmem>>, vector<50x32xf32>
    %cst = arith.constant dense<0.000000e+00> : vector<16x32xf32>
    %7 = tpu.matmul %5, %6, %cst {dimension_numbers = #tpu.dot_dimension_numbers<[1], [0], [0], [1], [0, 0, 1, 1], [], []>} : vector<16x50xf32>, vector<50x32xf32>, vector<16x32xf32> -> vector<16x32xf32>
    %8 = vector.shape_cast %7 : vector<16x32xf32> to vector<2x8x32xf32>
    %c0_3 = arith.constant 0 : index
    %c0_4 = arith.constant 0 : index
    %9 = vector.load %arg3[%c0_3, %c0_4] : memref<8x32xf32, #tpu.memory_space<vmem>>, vector<8x32xf32>
    %10 = vector.shape_cast %9 : vector<8x32xf32> to vector<1x8x32xf32>
    %11 = vector.broadcast %10 : vector<1x8x32xf32> to vector<2x8x32xf32>
    %12 = arith.addf %8, %11 : vector<2x8x32xf32>
    %c0_5 = arith.constant 0 : index
    %c0_6 = arith.constant 0 : index
    %13 = vector.load %arg4[%c0_5, %c0_6] : memref<1x32xf32, #tpu.memory_space<vmem>>, vector<1x32xf32>
    %c0_7 = arith.constant 0 : index
    %c0_8 = arith.constant 0 : index
    %14 = vector.load %arg5[%c0_7, %c0_8] : memref<1x32xf32, #tpu.memory_space<vmem>>, vector<1x32xf32>
    %cst_9 = arith.constant dense<0.000000e+00> : vector<2x8xf32>
    %15 = vector.multi_reduction <add>, %12, %cst_9 [2] : vector<2x8x32xf32> to vector<2x8xf32>
    %16 = vector.shape_cast %15 : vector<2x8xf32> to vector<2x8x1xf32>
    %cst_10 = arith.constant 3.200000e+01 : f32
    %17 = vector.broadcast %cst_10 : f32 to vector<2x8x1xf32>
    %18 = arith.divf %16, %17 : vector<2x8x1xf32>
    %19 = vector.broadcast %18 : vector<2x8x1xf32> to vector<2x8x32xf32>
    %20 = arith.subf %12, %19 : vector<2x8x32xf32>
    %21 = arith.mulf %20, %20 : vector<2x8x32xf32>
    %cst_11 = arith.constant dense<0.000000e+00> : vector<2x8xf32>
    %22 = vector.multi_reduction <add>, %21, %cst_11 [2] : vector<2x8x32xf32> to vector<2x8xf32>
    %23 = vector.shape_cast %22 : vector<2x8xf32> to vector<2x8x1xf32>
    %cst_12 = arith.constant 3.200000e+01 : f32
    %24 = vector.broadcast %cst_12 : f32 to vector<2x8x1xf32>
    %25 = arith.divf %23, %24 : vector<2x8x1xf32>
    %26 = vector.broadcast %18 : vector<2x8x1xf32> to vector<2x8x32xf32>
    %27 = arith.subf %12, %26 : vector<2x8x32xf32>
    %cst_13 = arith.constant 9.99999974E-6 : f32
    %28 = vector.broadcast %cst_13 : f32 to vector<2x8x1xf32>
    %29 = arith.addf %25, %28 : vector<2x8x1xf32>
    %30 = math.rsqrt %29 : vector<2x8x1xf32>
    %31 = vector.broadcast %30 : vector<2x8x1xf32> to vector<2x8x32xf32>
    %32 = arith.mulf %27, %31 : vector<2x8x32xf32>
    %33 = vector.shape_cast %13 : vector<1x32xf32> to vector<1x1x32xf32>
    %34 = vector.broadcast %33 : vector<1x1x32xf32> to vector<2x8x32xf32>
    %35 = arith.mulf %32, %34 : vector<2x8x32xf32>
    %36 = vector.shape_cast %14 : vector<1x32xf32> to vector<1x1x32xf32>
    %37 = vector.broadcast %36 : vector<1x1x32xf32> to vector<2x8x32xf32>
    %38 = arith.addf %35, %37 : vector<2x8x32xf32>
    %c0_i32 = arith.constant 0 : i32
    %39 = vector.broadcast %c0_i32 : i32 to vector<16x1xi32>
    %40 = arith.cmpi ne, %0, %39 : vector<16x1xi32>
    %41 = arith.extui %40 : vector<16x1xi1> to vector<16x1xi32>
    %42 = arith.sitofp %41 : vector<16x1xi32> to vector<16x1xf32>
    %43 = vector.shape_cast %42 : vector<16x1xf32> to vector<2x8x1xf32>
    %44 = vector.broadcast %43 : vector<2x8x1xf32> to vector<2x8x32xf32>
    %45 = arith.mulf %38, %44 : vector<2x8x32xf32>
    %c0_14 = arith.constant 0 : index
    %c0_15 = arith.constant 0 : index
    %c0_16 = arith.constant 0 : index
    %46 = vector.load %arg25[%c0_14, %c0_15, %c0_16] : memref<2x8x32xf32, #tpu.memory_space<vmem>>, vector<2x8x32xf32>
    tpu.vector_store %arg25[%c0_14, %c0_15, %c0_16], %45 {strides = array<i32>} : memref<2x8x32xf32, #tpu.memory_space<vmem>>, vector<2x8x32xf32>,
    %47 = vector.shape_cast %45 : vector<2x8x32xf32> to vector<16x32xf32>
    %cst_17 = arith.constant 0.000000e+00 : f32
    %48 = vector.broadcast %cst_17 : f32 to vector<16x32xf32>
    %c0_18 = arith.constant 0 : index
    %c0_19 = arith.constant 0 : index
    %c0_20 = arith.constant 0 : index
    %c0_21 = arith.constant 0 : index
    %49 = vector.load %arg6[%c0_18, %c0_19, %c0_20, %c0_21] : memref<2x4x32x8xf32, #tpu.memory_space<vmem>>, vector<1x1x32x8xf32>
    %50 = vector.shape_cast %49 : vector<1x1x32x8xf32> to vector<32x8xf32>
    %cst_22 = arith.constant dense<0.000000e+00> : vector<16x8xf32>
    %51 = tpu.matmul %47, %50, %cst_22 {dimension_numbers = #tpu.dot_dimension_numbers<[1], [0], [0], [1], [0, 0, 1, 1], [], []>} : vector<16x32xf32>, vector<32x8xf32>, vector<16x8xf32> -> vector<16x8xf32>
    %c0_23 = arith.constant 0 : index
    %c0_24 = arith.constant 0 : index
    %c0_25 = arith.constant 0 : index
    %c0_26 = arith.constant 0 : index
    %52 = vector.load %arg7[%c0_23, %c0_24, %c0_25, %c0_26] : memref<2x4x1x8xf32, #tpu.memory_space<vmem>>, vector<1x1x1x8xf32>
    %53 = vector.shape_cast %52 : vector<1x1x1x8xf32> to vector<1x8xf32>
    %54 = vector.broadcast %53 : vector<1x8xf32> to vector<16x8xf32>
    %55 = arith.addf %51, %54 : vector<16x8xf32>
    %c0_27 = arith.constant 0 : index
    %c0_28 = arith.constant 0 : index
    %c0_29 = arith.constant 0 : index
    %c0_30 = arith.constant 0 : index
    %56 = vector.load %arg8[%c0_27, %c0_28, %c0_29, %c0_30] : memref<2x4x32x8xf32, #tpu.memory_space<vmem>>, vector<1x1x32x8xf32>
    %57 = vector.shape_cast %56 : vector<1x1x32x8xf32> to vector<32x8xf32>
    %cst_31 = arith.constant dense<0.000000e+00> : vector<16x8xf32>
    %58 = tpu.matmul %47, %57, %cst_31 {dimension_numbers = #tpu.dot_dimension_numbers<[1], [0], [0], [1], [0, 0, 1, 1], [], []>} : vector<16x32xf32>, vector<32x8xf32>, vector<16x8xf32> -> vector<16x8xf32>
    %c0_32 = arith.constant 0 : index
    %c0_33 = arith.constant 0 : index
    %c0_34 = arith.constant 0 : index
    %c0_35 = arith.constant 0 : index
    %59 = vector.load %arg9[%c0_32, %c0_33, %c0_34, %c0_35] : memref<2x4x1x8xf32, #tpu.memory_space<vmem>>, vector<1x1x1x8xf32>
    %60 = vector.shape_cast %59 : vector<1x1x1x8xf32> to vector<1x8xf32>
    %61 = vector.broadcast %60 : vector<1x8xf32> to vector<16x8xf32>
    %62 = arith.addf %58, %61 : vector<16x8xf32>
    %c0_36 = arith.constant 0 : index
    %c0_37 = arith.constant 0 : index
    %c0_38 = arith.constant 0 : index
    %c0_39 = arith.constant 0 : index
    %63 = vector.load %arg10[%c0_36, %c0_37, %c0_38, %c0_39] : memref<2x4x32x8xf32, #tpu.memory_space<vmem>>, vector<1x1x32x8xf32>
    %64 = vector.shape_cast %63 : vector<1x1x32x8xf32> to vector<32x8xf32>
    %cst_40 = arith.constant dense<0.000000e+00> : vector<16x8xf32>
    %65 = tpu.matmul %47, %64, %cst_40 {dimension_numbers = #tpu.dot_dimension_numbers<[1], [0], [0], [1], [0, 0, 1, 1], [], []>} : vector<16x32xf32>, vector<32x8xf32>, vector<16x8xf32> -> vector<16x8xf32>
    %c0_41 = arith.constant 0 : index
    %c0_42 = arith.constant 0 : index
    %c0_43 = arith.constant 0 : index
    %c0_44 = arith.constant 0 : index
    %66 = vector.load %arg11[%c0_41, %c0_42, %c0_43, %c0_44] : memref<2x4x1x8xf32, #tpu.memory_space<vmem>>, vector<1x1x1x8xf32>
    %67 = vector.shape_cast %66 : vector<1x1x1x8xf32> to vector<1x8xf32>
    %68 = vector.broadcast %67 : vector<1x8xf32> to vector<16x8xf32>
    %69 = arith.addf %65, %68 : vector<16x8xf32>
    %70 = vector.shape_cast %55 : vector<16x8xf32> to vector<2x8x8xf32>
    %71 = vector.shape_cast %62 : vector<16x8xf32> to vector<2x8x8xf32>
    %72 = vector.shape_cast %69 : vector<16x8xf32> to vector<2x8x8xf32>
    "tpu.trace_start"() <{level = 10 : i32, message = "bqd,bkd->bqk"}> : () -> ()
    %cst_45 = arith.constant dense<0.000000e+00> : vector<2x8x8xf32>
    %73 = tpu.matmul %70, %71, %cst_45 {dimension_numbers = #tpu.dot_dimension_numbers<[2], [2], [1], [1], [0, 0, 0, 1, 1, 1], [0], [0]>} : vector<2x8x8xf32>, vector<2x8x8xf32>, vector<2x8x8xf32> -> vector<2x8x8xf32>
    "tpu.trace_stop"() : () -> ()
    %cst_46 = arith.constant dense<0xFF800000> : vector<2x8xf32>
    %74 = vector.multi_reduction <maximumf>, %73, %cst_46 [2] : vector<2x8x8xf32> to vector<2x8xf32>
    %75 = vector.shape_cast %74 : vector<2x8xf32> to vector<2x8x1xf32>
    %76 = vector.broadcast %75 : vector<2x8x1xf32> to vector<2x8x8xf32>
    %77 = arith.subf %73, %76 : vector<2x8x8xf32>
    %78 = math.exp %77 : vector<2x8x8xf32>
    %cst_47 = arith.constant dense<0.000000e+00> : vector<2x8xf32>
    %79 = vector.multi_reduction <add>, %78, %cst_47 [2] : vector<2x8x8xf32> to vector<2x8xf32>
    %80 = vector.shape_cast %79 : vector<2x8xf32> to vector<2x8x1xf32>
    %81 = vector.broadcast %80 : vector<2x8x1xf32> to vector<2x8x8xf32>
    %82 = arith.divf %78, %81 : vector<2x8x8xf32>
    "tpu.trace_start"() <{level = 10 : i32, message = "bqk,bkd->bqd"}> : () -> ()
    %cst_48 = arith.constant dense<0.000000e+00> : vector<2x8x8xf32>
    %83 = tpu.matmul %82, %72, %cst_48 {dimension_numbers = #tpu.dot_dimension_numbers<[2], [1], [1], [2], [0, 0, 0, 1, 1, 2], [0], [0]>} : vector<2x8x8xf32>, vector<2x8x8xf32>, vector<2x8x8xf32> -> vector<2x8x8xf32>
    "tpu.trace_stop"() : () -> ()
    %84 = vector.shape_cast %83 : vector<2x8x8xf32> to vector<16x8xf32>
    %c0_49 = arith.constant 0 : index
    %c0_50 = arith.constant 0 : index
    %c0_51 = arith.constant 0 : index
    %c0_52 = arith.constant 0 : index
    %85 = vector.load %arg12[%c0_49, %c0_50, %c0_51, %c0_52] : memref<2x4x8x32xf32, #tpu.memory_space<vmem>>, vector<1x1x8x32xf32>
    %86 = vector.shape_cast %85 : vector<1x1x8x32xf32> to vector<8x32xf32>
    %cst_53 = arith.constant dense<0.000000e+00> : vector<16x32xf32>
    %87 = tpu.matmul %84, %86, %cst_53 {dimension_numbers = #tpu.dot_dimension_numbers<[1], [0], [0], [1], [0, 0, 1, 1], [], []>} : vector<16x8xf32>, vector<8x32xf32>, vector<16x32xf32> -> vector<16x32xf32>
    %88 = arith.addf %48, %87 : vector<16x32xf32>
    %c0_54 = arith.constant 0 : index
    %c1 = arith.constant 1 : index
    %c0_55 = arith.constant 0 : index
    %c0_56 = arith.constant 0 : index
    %89 = vector.load %arg6[%c0_54, %c1, %c0_55, %c0_56] : memref<2x4x32x8xf32, #tpu.memory_space<vmem>>, vector<1x1x32x8xf32>
    %90 = vector.shape_cast %89 : vector<1x1x32x8xf32> to vector<32x8xf32>
    %cst_57 = arith.constant dense<0.000000e+00> : vector<16x8xf32>
    %91 = tpu.matmul %47, %90, %cst_57 {dimension_numbers = #tpu.dot_dimension_numbers<[1], [0], [0], [1], [0, 0, 1, 1], [], []>} : vector<16x32xf32>, vector<32x8xf32>, vector<16x8xf32> -> vector<16x8xf32>
    %c0_58 = arith.constant 0 : index
    %c1_59 = arith.constant 1 : index
    %c0_60 = arith.constant 0 : index
    %c0_61 = arith.constant 0 : index
    %92 = vector.load %arg7[%c0_58, %c1_59, %c0_60, %c0_61] : memref<2x4x1x8xf32, #tpu.memory_space<vmem>>, vector<1x1x1x8xf32>
    %93 = vector.shape_cast %92 : vector<1x1x1x8xf32> to vector<1x8xf32>
    %94 = vector.broadcast %93 : vector<1x8xf32> to vector<16x8xf32>
    %95 = arith.addf %91, %94 : vector<16x8xf32>
    %c0_62 = arith.constant 0 : index
    %c1_63 = arith.constant 1 : index
    %c0_64 = arith.constant 0 : index
    %c0_65 = arith.constant 0 : index
    %96 = vector.load %arg8[%c0_62, %c1_63, %c0_64, %c0_65] : memref<2x4x32x8xf32, #tpu.memory_space<vmem>>, vector<1x1x32x8xf32>
    %97 = vector.shape_cast %96 : vector<1x1x32x8xf32> to vector<32x8xf32>
    %cst_66 = arith.constant dense<0.000000e+00> : vector<16x8xf32>
    %98 = tpu.matmul %47, %97, %cst_66 {dimension_numbers = #tpu.dot_dimension_numbers<[1], [0], [0], [1], [0, 0, 1, 1], [], []>} : vector<16x32xf32>, vector<32x8xf32>, vector<16x8xf32> -> vector<16x8xf32>
    %c0_67 = arith.constant 0 : index
    %c1_68 = arith.constant 1 : index
    %c0_69 = arith.constant 0 : index
    %c0_70 = arith.constant 0 : index
    %99 = vector.load %arg9[%c0_67, %c1_68, %c0_69, %c0_70] : memref<2x4x1x8xf32, #tpu.memory_space<vmem>>, vector<1x1x1x8xf32>
    %100 = vector.shape_cast %99 : vector<1x1x1x8xf32> to vector<1x8xf32>
    %101 = vector.broadcast %100 : vector<1x8xf32> to vector<16x8xf32>
    %102 = arith.addf %98, %101 : vector<16x8xf32>
    %c0_71 = arith.constant 0 : index
    %c1_72 = arith.constant 1 : index
    %c0_73 = arith.constant 0 : index
    %c0_74 = arith.constant 0 : index
    %103 = vector.load %arg10[%c0_71, %c1_72, %c0_73, %c0_74] : memref<2x4x32x8xf32, #tpu.memory_space<vmem>>, vector<1x1x32x8xf32>
    %104 = vector.shape_cast %103 : vector<1x1x32x8xf32> to vector<32x8xf32>
    %cst_75 = arith.constant dense<0.000000e+00> : vector<16x8xf32>
    %105 = tpu.matmul %47, %104, %cst_75 {dimension_numbers = #tpu.dot_dimension_numbers<[1], [0], [0], [1], [0, 0, 1, 1], [], []>} : vector<16x32xf32>, vector<32x8xf32>, vector<16x8xf32> -> vector<16x8xf32>
    %c0_76 = arith.constant 0 : index
    %c1_77 = arith.constant 1 : index
    %c0_78 = arith.constant 0 : index
    %c0_79 = arith.constant 0 : index
    %106 = vector.load %arg11[%c0_76, %c1_77, %c0_78, %c0_79] : memref<2x4x1x8xf32, #tpu.memory_space<vmem>>, vector<1x1x1x8xf32>
    %107 = vector.shape_cast %106 : vector<1x1x1x8xf32> to vector<1x8xf32>
    %108 = vector.broadcast %107 : vector<1x8xf32> to vector<16x8xf32>
    %109 = arith.addf %105, %108 : vector<16x8xf32>
    %110 = vector.shape_cast %95 : vector<16x8xf32> to vector<2x8x8xf32>
    %111 = vector.shape_cast %102 : vector<16x8xf32> to vector<2x8x8xf32>
    %112 = vector.shape_cast %109 : vector<16x8xf32> to vector<2x8x8xf32>
    "tpu.trace_start"() <{level = 10 : i32, message = "bqd,bkd->bqk"}> : () -> ()
    %cst_80 = arith.constant dense<0.000000e+00> : vector<2x8x8xf32>
    %113 = tpu.matmul %110, %111, %cst_80 {dimension_numbers = #tpu.dot_dimension_numbers<[2], [2], [1], [1], [0, 0, 0, 1, 1, 1], [0], [0]>} : vector<2x8x8xf32>, vector<2x8x8xf32>, vector<2x8x8xf32> -> vector<2x8x8xf32>
    "tpu.trace_stop"() : () -> ()
    %cst_81 = arith.constant dense<0xFF800000> : vector<2x8xf32>
    %114 = vector.multi_reduction <maximumf>, %113, %cst_81 [2] : vector<2x8x8xf32> to vector<2x8xf32>
    %115 = vector.shape_cast %114 : vector<2x8xf32> to vector<2x8x1xf32>
    %116 = vector.broadcast %115 : vector<2x8x1xf32> to vector<2x8x8xf32>
    %117 = arith.subf %113, %116 : vector<2x8x8xf32>
    %118 = math.exp %117 : vector<2x8x8xf32>
    %cst_82 = arith.constant dense<0.000000e+00> : vector<2x8xf32>
    %119 = vector.multi_reduction <add>, %118, %cst_82 [2] : vector<2x8x8xf32> to vector<2x8xf32>
    %120 = vector.shape_cast %119 : vector<2x8xf32> to vector<2x8x1xf32>
    %121 = vector.broadcast %120 : vector<2x8x1xf32> to vector<2x8x8xf32>
    %122 = arith.divf %118, %121 : vector<2x8x8xf32>
    "tpu.trace_start"() <{level = 10 : i32, message = "bqk,bkd->bqd"}> : () -> ()
    %cst_83 = arith.constant dense<0.000000e+00> : vector<2x8x8xf32>
    %123 = tpu.matmul %122, %112, %cst_83 {dimension_numbers = #tpu.dot_dimension_numbers<[2], [1], [1], [2], [0, 0, 0, 1, 1, 2], [0], [0]>} : vector<2x8x8xf32>, vector<2x8x8xf32>, vector<2x8x8xf32> -> vector<2x8x8xf32>
    "tpu.trace_stop"() : () -> ()
    %124 = vector.shape_cast %123 : vector<2x8x8xf32> to vector<16x8xf32>
    %c0_84 = arith.constant 0 : index
    %c1_85 = arith.constant 1 : index
    %c0_86 = arith.constant 0 : index
    %c0_87 = arith.constant 0 : index
    %125 = vector.load %arg12[%c0_84, %c1_85, %c0_86, %c0_87] : memref<2x4x8x32xf32, #tpu.memory_space<vmem>>, vector<1x1x8x32xf32>
    %126 = vector.shape_cast %125 : vector<1x1x8x32xf32> to vector<8x32xf32>
    %cst_88 = arith.constant dense<0.000000e+00> : vector<16x32xf32>
    %127 = tpu.matmul %124, %126, %cst_88 {dimension_numbers = #tpu.dot_dimension_numbers<[1], [0], [0], [1], [0, 0, 1, 1], [], []>} : vector<16x8xf32>, vector<8x32xf32>, vector<16x32xf32> -> vector<16x32xf32>
    %128 = arith.addf %88, %127 : vector<16x32xf32>
    %c0_89 = arith.constant 0 : index
    %c2 = arith.constant 2 : index
    %c0_90 = arith.constant 0 : index
    %c0_91 = arith.constant 0 : index
    %129 = vector.load %arg6[%c0_89, %c2, %c0_90, %c0_91] : memref<2x4x32x8xf32, #tpu.memory_space<vmem>>, vector<1x1x32x8xf32>
    %130 = vector.shape_cast %129 : vector<1x1x32x8xf32> to vector<32x8xf32>
    %cst_92 = arith.constant dense<0.000000e+00> : vector<16x8xf32>
    %131 = tpu.matmul %47, %130, %cst_92 {dimension_numbers = #tpu.dot_dimension_numbers<[1], [0], [0], [1], [0, 0, 1, 1], [], []>} : vector<16x32xf32>, vector<32x8xf32>, vector<16x8xf32> -> vector<16x8xf32>
    %c0_93 = arith.constant 0 : index
    %c2_94 = arith.constant 2 : index
    %c0_95 = arith.constant 0 : index
    %c0_96 = arith.constant 0 : index
    %132 = vector.load %arg7[%c0_93, %c2_94, %c0_95, %c0_96] : memref<2x4x1x8xf32, #tpu.memory_space<vmem>>, vector<1x1x1x8xf32>
    %133 = vector.shape_cast %132 : vector<1x1x1x8xf32> to vector<1x8xf32>
    %134 = vector.broadcast %133 : vector<1x8xf32> to vector<16x8xf32>
    %135 = arith.addf %131, %134 : vector<16x8xf32>
    %c0_97 = arith.constant 0 : index
    %c2_98 = arith.constant 2 : index
    %c0_99 = arith.constant 0 : index
    %c0_100 = arith.constant 0 : index
    %136 = vector.load %arg8[%c0_97, %c2_98, %c0_99, %c0_100] : memref<2x4x32x8xf32, #tpu.memory_space<vmem>>, vector<1x1x32x8xf32>
    %137 = vector.shape_cast %136 : vector<1x1x32x8xf32> to vector<32x8xf32>
    %cst_101 = arith.constant dense<0.000000e+00> : vector<16x8xf32>
    %138 = tpu.matmul %47, %137, %cst_101 {dimension_numbers = #tpu.dot_dimension_numbers<[1], [0], [0], [1], [0, 0, 1, 1], [], []>} : vector<16x32xf32>, vector<32x8xf32>, vector<16x8xf32> -> vector<16x8xf32>
    %c0_102 = arith.constant 0 : index
    %c2_103 = arith.constant 2 : index
    %c0_104 = arith.constant 0 : index
    %c0_105 = arith.constant 0 : index
    %139 = vector.load %arg9[%c0_102, %c2_103, %c0_104, %c0_105] : memref<2x4x1x8xf32, #tpu.memory_space<vmem>>, vector<1x1x1x8xf32>
    %140 = vector.shape_cast %139 : vector<1x1x1x8xf32> to vector<1x8xf32>
    %141 = vector.broadcast %140 : vector<1x8xf32> to vector<16x8xf32>
    %142 = arith.addf %138, %141 : vector<16x8xf32>
    %c0_106 = arith.constant 0 : index
    %c2_107 = arith.constant 2 : index
    %c0_108 = arith.constant 0 : index
    %c0_109 = arith.constant 0 : index
    %143 = vector.load %arg10[%c0_106, %c2_107, %c0_108, %c0_109] : memref<2x4x32x8xf32, #tpu.memory_space<vmem>>, vector<1x1x32x8xf32>
    %144 = vector.shape_cast %143 : vector<1x1x32x8xf32> to vector<32x8xf32>
    %cst_110 = arith.constant dense<0.000000e+00> : vector<16x8xf32>
    %145 = tpu.matmul %47, %144, %cst_110 {dimension_numbers = #tpu.dot_dimension_numbers<[1], [0], [0], [1], [0, 0, 1, 1], [], []>} : vector<16x32xf32>, vector<32x8xf32>, vector<16x8xf32> -> vector<16x8xf32>
    %c0_111 = arith.constant 0 : index
    %c2_112 = arith.constant 2 : index
    %c0_113 = arith.constant 0 : index
    %c0_114 = arith.constant 0 : index
    %146 = vector.load %arg11[%c0_111, %c2_112, %c0_113, %c0_114] : memref<2x4x1x8xf32, #tpu.memory_space<vmem>>, vector<1x1x1x8xf32>
    %147 = vector.shape_cast %146 : vector<1x1x1x8xf32> to vector<1x8xf32>
    %148 = vector.broadcast %147 : vector<1x8xf32> to vector<16x8xf32>
    %149 = arith.addf %145, %148 : vector<16x8xf32>
    %150 = vector.shape_cast %135 : vector<16x8xf32> to vector<2x8x8xf32>
    %151 = vector.shape_cast %142 : vector<16x8xf32> to vector<2x8x8xf32>
    %152 = vector.shape_cast %149 : vector<16x8xf32> to vector<2x8x8xf32>
    "tpu.trace_start"() <{level = 10 : i32, message = "bqd,bkd->bqk"}> : () -> ()
    %cst_115 = arith.constant dense<0.000000e+00> : vector<2x8x8xf32>
    %153 = tpu.matmul %150, %151, %cst_115 {dimension_numbers = #tpu.dot_dimension_numbers<[2], [2], [1], [1], [0, 0, 0, 1, 1, 1], [0], [0]>} : vector<2x8x8xf32>, vector<2x8x8xf32>, vector<2x8x8xf32> -> vector<2x8x8xf32>
    "tpu.trace_stop"() : () -> ()
    %cst_116 = arith.constant dense<0xFF800000> : vector<2x8xf32>
    %154 = vector.multi_reduction <maximumf>, %153, %cst_116 [2] : vector<2x8x8xf32> to vector<2x8xf32>
    %155 = vector.shape_cast %154 : vector<2x8xf32> to vector<2x8x1xf32>
    %156 = vector.broadcast %155 : vector<2x8x1xf32> to vector<2x8x8xf32>
    %157 = arith.subf %153, %156 : vector<2x8x8xf32>
    %158 = math.exp %157 : vector<2x8x8xf32>
    %cst_117 = arith.constant dense<0.000000e+00> : vector<2x8xf32>
    %159 = vector.multi_reduction <add>, %158, %cst_117 [2] : vector<2x8x8xf32> to vector<2x8xf32>
    %160 = vector.shape_cast %159 : vector<2x8xf32> to vector<2x8x1xf32>
    %161 = vector.broadcast %160 : vector<2x8x1xf32> to vector<2x8x8xf32>
    %162 = arith.divf %158, %161 : vector<2x8x8xf32>
    "tpu.trace_start"() <{level = 10 : i32, message = "bqk,bkd->bqd"}> : () -> ()
    %cst_118 = arith.constant dense<0.000000e+00> : vector<2x8x8xf32>
    %163 = tpu.matmul %162, %152, %cst_118 {dimension_numbers = #tpu.dot_dimension_numbers<[2], [1], [1], [2], [0, 0, 0, 1, 1, 2], [0], [0]>} : vector<2x8x8xf32>, vector<2x8x8xf32>, vector<2x8x8xf32> -> vector<2x8x8xf32>
    "tpu.trace_stop"() : () -> ()
    %164 = vector.shape_cast %163 : vector<2x8x8xf32> to vector<16x8xf32>
    %c0_119 = arith.constant 0 : index
    %c2_120 = arith.constant 2 : index
    %c0_121 = arith.constant 0 : index
    %c0_122 = arith.constant 0 : index
    %165 = vector.load %arg12[%c0_119, %c2_120, %c0_121, %c0_122] : memref<2x4x8x32xf32, #tpu.memory_space<vmem>>, vector<1x1x8x32xf32>
    %166 = vector.shape_cast %165 : vector<1x1x8x32xf32> to vector<8x32xf32>
    %cst_123 = arith.constant dense<0.000000e+00> : vector<16x32xf32>
    %167 = tpu.matmul %164, %166, %cst_123 {dimension_numbers = #tpu.dot_dimension_numbers<[1], [0], [0], [1], [0, 0, 1, 1], [], []>} : vector<16x8xf32>, vector<8x32xf32>, vector<16x32xf32> -> vector<16x32xf32>
    %168 = arith.addf %128, %167 : vector<16x32xf32>
    %c0_124 = arith.constant 0 : index
    %c3 = arith.constant 3 : index
    %c0_125 = arith.constant 0 : index
    %c0_126 = arith.constant 0 : index
    %169 = vector.load %arg6[%c0_124, %c3, %c0_125, %c0_126] : memref<2x4x32x8xf32, #tpu.memory_space<vmem>>, vector<1x1x32x8xf32>
    %170 = vector.shape_cast %169 : vector<1x1x32x8xf32> to vector<32x8xf32>
    %cst_127 = arith.constant dense<0.000000e+00> : vector<16x8xf32>
    %171 = tpu.matmul %47, %170, %cst_127 {dimension_numbers = #tpu.dot_dimension_numbers<[1], [0], [0], [1], [0, 0, 1, 1], [], []>} : vector<16x32xf32>, vector<32x8xf32>, vector<16x8xf32> -> vector<16x8xf32>
    %c0_128 = arith.constant 0 : index
    %c3_129 = arith.constant 3 : index
    %c0_130 = arith.constant 0 : index
    %c0_131 = arith.constant 0 : index
    %172 = vector.load %arg7[%c0_128, %c3_129, %c0_130, %c0_131] : memref<2x4x1x8xf32, #tpu.memory_space<vmem>>, vector<1x1x1x8xf32>
    %173 = vector.shape_cast %172 : vector<1x1x1x8xf32> to vector<1x8xf32>
    %174 = vector.broadcast %173 : vector<1x8xf32> to vector<16x8xf32>
    %175 = arith.addf %171, %174 : vector<16x8xf32>
    %c0_132 = arith.constant 0 : index
    %c3_133 = arith.constant 3 : index
    %c0_134 = arith.constant 0 : index
    %c0_135 = arith.constant 0 : index
    %176 = vector.load %arg8[%c0_132, %c3_133, %c0_134, %c0_135] : memref<2x4x32x8xf32, #tpu.memory_space<vmem>>, vector<1x1x32x8xf32>
    %177 = vector.shape_cast %176 : vector<1x1x32x8xf32> to vector<32x8xf32>
    %cst_136 = arith.constant dense<0.000000e+00> : vector<16x8xf32>
    %178 = tpu.matmul %47, %177, %cst_136 {dimension_numbers = #tpu.dot_dimension_numbers<[1], [0], [0], [1], [0, 0, 1, 1], [], []>} : vector<16x32xf32>, vector<32x8xf32>, vector<16x8xf32> -> vector<16x8xf32>
    %c0_137 = arith.constant 0 : index
    %c3_138 = arith.constant 3 : index
    %c0_139 = arith.constant 0 : index
    %c0_140 = arith.constant 0 : index
    %179 = vector.load %arg9[%c0_137, %c3_138, %c0_139, %c0_140] : memref<2x4x1x8xf32, #tpu.memory_space<vmem>>, vector<1x1x1x8xf32>
    %180 = vector.shape_cast %179 : vector<1x1x1x8xf32> to vector<1x8xf32>
    %181 = vector.broadcast %180 : vector<1x8xf32> to vector<16x8xf32>
    %182 = arith.addf %178, %181 : vector<16x8xf32>
    %c0_141 = arith.constant 0 : index
    %c3_142 = arith.constant 3 : index
    %c0_143 = arith.constant 0 : index
    %c0_144 = arith.constant 0 : index
    %183 = vector.load %arg10[%c0_141, %c3_142, %c0_143, %c0_144] : memref<2x4x32x8xf32, #tpu.memory_space<vmem>>, vector<1x1x32x8xf32>
    %184 = vector.shape_cast %183 : vector<1x1x32x8xf32> to vector<32x8xf32>
    %cst_145 = arith.constant dense<0.000000e+00> : vector<16x8xf32>
    %185 = tpu.matmul %47, %184, %cst_145 {dimension_numbers = #tpu.dot_dimension_numbers<[1], [0], [0], [1], [0, 0, 1, 1], [], []>} : vector<16x32xf32>, vector<32x8xf32>, vector<16x8xf32> -> vector<16x8xf32>
    %c0_146 = arith.constant 0 : index
    %c3_147 = arith.constant 3 : index
    %c0_148 = arith.constant 0 : index
    %c0_149 = arith.constant 0 : index
    %186 = vector.load %arg11[%c0_146, %c3_147, %c0_148, %c0_149] : memref<2x4x1x8xf32, #tpu.memory_space<vmem>>, vector<1x1x1x8xf32>
    %187 = vector.shape_cast %186 : vector<1x1x1x8xf32> to vector<1x8xf32>
    %188 = vector.broadcast %187 : vector<1x8xf32> to vector<16x8xf32>
    %189 = arith.addf %185, %188 : vector<16x8xf32>
    %190 = vector.shape_cast %175 : vector<16x8xf32> to vector<2x8x8xf32>
    %191 = vector.shape_cast %182 : vector<16x8xf32> to vector<2x8x8xf32>
    %192 = vector.shape_cast %189 : vector<16x8xf32> to vector<2x8x8xf32>
    "tpu.trace_start"() <{level = 10 : i32, message = "bqd,bkd->bqk"}> : () -> ()
    %cst_150 = arith.constant dense<0.000000e+00> : vector<2x8x8xf32>
    %193 = tpu.matmul %190, %191, %cst_150 {dimension_numbers = #tpu.dot_dimension_numbers<[2], [2], [1], [1], [0, 0, 0, 1, 1, 1], [0], [0]>} : vector<2x8x8xf32>, vector<2x8x8xf32>, vector<2x8x8xf32> -> vector<2x8x8xf32>
    "tpu.trace_stop"() : () -> ()
    %cst_151 = arith.constant dense<0xFF800000> : vector<2x8xf32>
    %194 = vector.multi_reduction <maximumf>, %193, %cst_151 [2] : vector<2x8x8xf32> to vector<2x8xf32>
    %195 = vector.shape_cast %194 : vector<2x8xf32> to vector<2x8x1xf32>
    %196 = vector.broadcast %195 : vector<2x8x1xf32> to vector<2x8x8xf32>
    %197 = arith.subf %193, %196 : vector<2x8x8xf32>
    %198 = math.exp %197 : vector<2x8x8xf32>
    %cst_152 = arith.constant dense<0.000000e+00> : vector<2x8xf32>
    %199 = vector.multi_reduction <add>, %198, %cst_152 [2] : vector<2x8x8xf32> to vector<2x8xf32>
    %200 = vector.shape_cast %199 : vector<2x8xf32> to vector<2x8x1xf32>
    %201 = vector.broadcast %200 : vector<2x8x1xf32> to vector<2x8x8xf32>
    %202 = arith.divf %198, %201 : vector<2x8x8xf32>
    "tpu.trace_start"() <{level = 10 : i32, message = "bqk,bkd->bqd"}> : () -> ()
    %cst_153 = arith.constant dense<0.000000e+00> : vector<2x8x8xf32>
    %203 = tpu.matmul %202, %192, %cst_153 {dimension_numbers = #tpu.dot_dimension_numbers<[2], [1], [1], [2], [0, 0, 0, 1, 1, 2], [0], [0]>} : vector<2x8x8xf32>, vector<2x8x8xf32>, vector<2x8x8xf32> -> vector<2x8x8xf32>
    "tpu.trace_stop"() : () -> ()
    %204 = vector.shape_cast %203 : vector<2x8x8xf32> to vector<16x8xf32>
    %c0_154 = arith.constant 0 : index
    %c3_155 = arith.constant 3 : index
    %c0_156 = arith.constant 0 : index
    %c0_157 = arith.constant 0 : index
    %205 = vector.load %arg12[%c0_154, %c3_155, %c0_156, %c0_157] : memref<2x4x8x32xf32, #tpu.memory_space<vmem>>, vector<1x1x8x32xf32>
    %206 = vector.shape_cast %205 : vector<1x1x8x32xf32> to vector<8x32xf32>
    %cst_158 = arith.constant dense<0.000000e+00> : vector<16x32xf32>
    %207 = tpu.matmul %204, %206, %cst_158 {dimension_numbers = #tpu.dot_dimension_numbers<[1], [0], [0], [1], [0, 0, 1, 1], [], []>} : vector<16x8xf32>, vector<8x32xf32>, vector<16x32xf32> -> vector<16x32xf32>
    %208 = arith.addf %168, %207 : vector<16x32xf32>
    %c0_159 = arith.constant 0 : index
    %c0_160 = arith.constant 0 : index
    %c0_161 = arith.constant 0 : index
    %209 = vector.load %arg13[%c0_159, %c0_160, %c0_161] : memref<2x1x32xf32, #tpu.memory_space<vmem>>, vector<1x1x32xf32>
    %210 = vector.shape_cast %209 : vector<1x1x32xf32> to vector<1x32xf32>
    %211 = vector.broadcast %210 : vector<1x32xf32> to vector<16x32xf32>
    %212 = arith.addf %208, %211 : vector<16x32xf32>
    %213 = arith.addf %47, %212 : vector<16x32xf32>
    %c0_162 = arith.constant 0 : index
    %c0_163 = arith.constant 0 : index
    %c0_164 = arith.constant 0 : index
    %214 = vector.load %arg14[%c0_162, %c0_163, %c0_164] : memref<2x1x32xf32, #tpu.memory_space<vmem>>, vector<1x1x32xf32>
    %215 = vector.shape_cast %214 : vector<1x1x32xf32> to vector<1x32xf32>
    %c0_165 = arith.constant 0 : index
    %c0_166 = arith.constant 0 : index
    %c0_167 = arith.constant 0 : index
    %216 = vector.load %arg15[%c0_165, %c0_166, %c0_167] : memref<2x1x32xf32, #tpu.memory_space<vmem>>, vector<1x1x32xf32>
    %217 = vector.shape_cast %216 : vector<1x1x32xf32> to vector<1x32xf32>
    %cst_168 = arith.constant dense<0.000000e+00> : vector<16xf32>
    %218 = vector.multi_reduction <add>, %213, %cst_168 [1] : vector<16x32xf32> to vector<16xf32>
    %219 = vector.shape_cast %218 : vector<16xf32> to vector<16x1xf32>
    %cst_169 = arith.constant 3.200000e+01 : f32
    %220 = vector.broadcast %cst_169 : f32 to vector<16x1xf32>
    %221 = arith.divf %219, %220 : vector<16x1xf32>
    %222 = vector.broadcast %221 : vector<16x1xf32> to vector<16x32xf32>
    %223 = arith.subf %213, %222 : vector<16x32xf32>
    %224 = arith.mulf %223, %223 : vector<16x32xf32>
    %cst_170 = arith.constant dense<0.000000e+00> : vector<16xf32>
    %225 = vector.multi_reduction <add>, %224, %cst_170 [1] : vector<16x32xf32> to vector<16xf32>
    %226 = vector.shape_cast %225 : vector<16xf32> to vector<16x1xf32>
    %cst_171 = arith.constant 3.200000e+01 : f32
    %227 = vector.broadcast %cst_171 : f32 to vector<16x1xf32>
    %228 = arith.divf %226, %227 : vector<16x1xf32>
    %229 = vector.broadcast %221 : vector<16x1xf32> to vector<16x32xf32>
    %230 = arith.subf %213, %229 : vector<16x32xf32>
    %cst_172 = arith.constant 9.99999974E-6 : f32
    %231 = vector.broadcast %cst_172 : f32 to vector<16x1xf32>
    %232 = arith.addf %228, %231 : vector<16x1xf32>
    %233 = math.rsqrt %232 : vector<16x1xf32>
    %234 = vector.broadcast %233 : vector<16x1xf32> to vector<16x32xf32>
    %235 = arith.mulf %230, %234 : vector<16x32xf32>
    %236 = vector.broadcast %215 : vector<1x32xf32> to vector<16x32xf32>
    %237 = arith.mulf %235, %236 : vector<16x32xf32>
    %238 = vector.broadcast %217 : vector<1x32xf32> to vector<16x32xf32>
    %239 = arith.addf %237, %238 : vector<16x32xf32>
    %c0_173 = arith.constant 0 : index
    %c0_174 = arith.constant 0 : index
    %c0_175 = arith.constant 0 : index
    %240 = vector.load %arg16[%c0_173, %c0_174, %c0_175] : memref<2x32x64xf32, #tpu.memory_space<vmem>>, vector<1x32x64xf32>
    %241 = vector.shape_cast %240 : vector<1x32x64xf32> to vector<32x64xf32>
    %cst_176 = arith.constant dense<0.000000e+00> : vector<16x64xf32>
    %242 = tpu.matmul %239, %241, %cst_176 {dimension_numbers = #tpu.dot_dimension_numbers<[1], [0], [0], [1], [0, 0, 1, 1], [], []>} : vector<16x32xf32>, vector<32x64xf32>, vector<16x64xf32> -> vector<16x64xf32>
    %c0_177 = arith.constant 0 : index
    %c0_178 = arith.constant 0 : index
    %c0_179 = arith.constant 0 : index
    %243 = vector.load %arg17[%c0_177, %c0_178, %c0_179] : memref<2x1x64xf32, #tpu.memory_space<vmem>>, vector<1x1x64xf32>
    %244 = vector.shape_cast %243 : vector<1x1x64xf32> to vector<1x64xf32>
    %245 = vector.broadcast %244 : vector<1x64xf32> to vector<16x64xf32>
    %246 = arith.addf %242, %245 : vector<16x64xf32>
    %cst_180 = arith.constant 0.000000e+00 : f32
    %247 = vector.broadcast %cst_180 : f32 to vector<16x64xf32>
    %248 = arith.maximumf %246, %247 : vector<16x64xf32>
    %c0_181 = arith.constant 0 : index
    %c0_182 = arith.constant 0 : index
    %c0_183 = arith.constant 0 : index
    %249 = vector.load %arg18[%c0_181, %c0_182, %c0_183] : memref<2x64x32xf32, #tpu.memory_space<vmem>>, vector<1x64x32xf32>
    %250 = vector.shape_cast %249 : vector<1x64x32xf32> to vector<64x32xf32>
    %cst_184 = arith.constant dense<0.000000e+00> : vector<16x32xf32>
    %251 = tpu.matmul %248, %250, %cst_184 {dimension_numbers = #tpu.dot_dimension_numbers<[1], [0], [0], [1], [0, 0, 1, 1], [], []>} : vector<16x64xf32>, vector<64x32xf32>, vector<16x32xf32> -> vector<16x32xf32>
    %c0_185 = arith.constant 0 : index
    %c0_186 = arith.constant 0 : index
    %c0_187 = arith.constant 0 : index
    %252 = vector.load %arg19[%c0_185, %c0_186, %c0_187] : memref<2x1x32xf32, #tpu.memory_space<vmem>>, vector<1x1x32xf32>
    %253 = vector.shape_cast %252 : vector<1x1x32xf32> to vector<1x32xf32>
    %254 = vector.broadcast %253 : vector<1x32xf32> to vector<16x32xf32>
    %255 = arith.addf %251, %254 : vector<16x32xf32>
    %256 = arith.addf %239, %255 : vector<16x32xf32>
    %c0_188 = arith.constant 0 : index
    %c0_189 = arith.constant 0 : index
    %c0_190 = arith.constant 0 : index
    %257 = vector.load %arg20[%c0_188, %c0_189, %c0_190] : memref<2x1x32xf32, #tpu.memory_space<vmem>>, vector<1x1x32xf32>
    %258 = vector.shape_cast %257 : vector<1x1x32xf32> to vector<1x32xf32>
    %c0_191 = arith.constant 0 : index
    %c0_192 = arith.constant 0 : index
    %c0_193 = arith.constant 0 : index
    %259 = vector.load %arg21[%c0_191, %c0_192, %c0_193] : memref<2x1x32xf32, #tpu.memory_space<vmem>>, vector<1x1x32xf32>
    %260 = vector.shape_cast %259 : vector<1x1x32xf32> to vector<1x32xf32>
    %cst_194 = arith.constant dense<0.000000e+00> : vector<16xf32>
    %261 = vector.multi_reduction <add>, %256, %cst_194 [1] : vector<16x32xf32> to vector<16xf32>
    %262 = vector.shape_cast %261 : vector<16xf32> to vector<16x1xf32>
    %cst_195 = arith.constant 3.200000e+01 : f32
    %263 = vector.broadcast %cst_195 : f32 to vector<16x1xf32>
    %264 = arith.divf %262, %263 : vector<16x1xf32>
    %265 = vector.broadcast %264 : vector<16x1xf32> to vector<16x32xf32>
    %266 = arith.subf %256, %265 : vector<16x32xf32>
    %267 = arith.mulf %266, %266 : vector<16x32xf32>
    %cst_196 = arith.constant dense<0.000000e+00> : vector<16xf32>
    %268 = vector.multi_reduction <add>, %267, %cst_196 [1] : vector<16x32xf32> to vector<16xf32>
    %269 = vector.shape_cast %268 : vector<16xf32> to vector<16x1xf32>
    %cst_197 = arith.constant 3.200000e+01 : f32
    %270 = vector.broadcast %cst_197 : f32 to vector<16x1xf32>
    %271 = arith.divf %269, %270 : vector<16x1xf32>
    %272 = vector.broadcast %264 : vector<16x1xf32> to vector<16x32xf32>
    %273 = arith.subf %256, %272 : vector<16x32xf32>
    %cst_198 = arith.constant 9.99999974E-6 : f32
    %274 = vector.broadcast %cst_198 : f32 to vector<16x1xf32>
    %275 = arith.addf %271, %274 : vector<16x1xf32>
    %276 = math.rsqrt %275 : vector<16x1xf32>
    %277 = vector.broadcast %276 : vector<16x1xf32> to vector<16x32xf32>
    %278 = arith.mulf %273, %277 : vector<16x32xf32>
    %279 = vector.broadcast %258 : vector<1x32xf32> to vector<16x32xf32>
    %280 = arith.mulf %278, %279 : vector<16x32xf32>
    %281 = vector.broadcast %260 : vector<1x32xf32> to vector<16x32xf32>
    %282 = arith.addf %280, %281 : vector<16x32xf32>
    %cst_199 = arith.constant 0.000000e+00 : f32
    %283 = vector.broadcast %cst_199 : f32 to vector<16x32xf32>
    %c1_200 = arith.constant 1 : index
    %c0_201 = arith.constant 0 : index
    %c0_202 = arith.constant 0 : index
    %c0_203 = arith.constant 0 : index
    %284 = vector.load %arg6[%c1_200, %c0_201, %c0_202, %c0_203] : memref<2x4x32x8xf32, #tpu.memory_space<vmem>>, vector<1x1x32x8xf32>
    %285 = vector.shape_cast %284 : vector<1x1x32x8xf32> to vector<32x8xf32>
    %cst_204 = arith.constant dense<0.000000e+00> : vector<16x8xf32>
    %286 = tpu.matmul %282, %285, %cst_204 {dimension_numbers = #tpu.dot_dimension_numbers<[1], [0], [0], [1], [0, 0, 1, 1], [], []>} : vector<16x32xf32>, vector<32x8xf32>, vector<16x8xf32> -> vector<16x8xf32>
    %c1_205 = arith.constant 1 : index
    %c0_206 = arith.constant 0 : index
    %c0_207 = arith.constant 0 : index
    %c0_208 = arith.constant 0 : index
    %287 = vector.load %arg7[%c1_205, %c0_206, %c0_207, %c0_208] : memref<2x4x1x8xf32, #tpu.memory_space<vmem>>, vector<1x1x1x8xf32>
    %288 = vector.shape_cast %287 : vector<1x1x1x8xf32> to vector<1x8xf32>
    %289 = vector.broadcast %288 : vector<1x8xf32> to vector<16x8xf32>
    %290 = arith.addf %286, %289 : vector<16x8xf32>
    %c1_209 = arith.constant 1 : index
    %c0_210 = arith.constant 0 : index
    %c0_211 = arith.constant 0 : index
    %c0_212 = arith.constant 0 : index
    %291 = vector.load %arg8[%c1_209, %c0_210, %c0_211, %c0_212] : memref<2x4x32x8xf32, #tpu.memory_space<vmem>>, vector<1x1x32x8xf32>
    %292 = vector.shape_cast %291 : vector<1x1x32x8xf32> to vector<32x8xf32>
    %cst_213 = arith.constant dense<0.000000e+00> : vector<16x8xf32>
    %293 = tpu.matmul %282, %292, %cst_213 {dimension_numbers = #tpu.dot_dimension_numbers<[1], [0], [0], [1], [0, 0, 1, 1], [], []>} : vector<16x32xf32>, vector<32x8xf32>, vector<16x8xf32> -> vector<16x8xf32>
    %c1_214 = arith.constant 1 : index
    %c0_215 = arith.constant 0 : index
    %c0_216 = arith.constant 0 : index
    %c0_217 = arith.constant 0 : index
    %294 = vector.load %arg9[%c1_214, %c0_215, %c0_216, %c0_217] : memref<2x4x1x8xf32, #tpu.memory_space<vmem>>, vector<1x1x1x8xf32>
    %295 = vector.shape_cast %294 : vector<1x1x1x8xf32> to vector<1x8xf32>
    %296 = vector.broadcast %295 : vector<1x8xf32> to vector<16x8xf32>
    %297 = arith.addf %293, %296 : vector<16x8xf32>
    %c1_218 = arith.constant 1 : index
    %c0_219 = arith.constant 0 : index
    %c0_220 = arith.constant 0 : index
    %c0_221 = arith.constant 0 : index
    %298 = vector.load %arg10[%c1_218, %c0_219, %c0_220, %c0_221] : memref<2x4x32x8xf32, #tpu.memory_space<vmem>>, vector<1x1x32x8xf32>
    %299 = vector.shape_cast %298 : vector<1x1x32x8xf32> to vector<32x8xf32>
    %cst_222 = arith.constant dense<0.000000e+00> : vector<16x8xf32>
    %300 = tpu.matmul %282, %299, %cst_222 {dimension_numbers = #tpu.dot_dimension_numbers<[1], [0], [0], [1], [0, 0, 1, 1], [], []>} : vector<16x32xf32>, vector<32x8xf32>, vector<16x8xf32> -> vector<16x8xf32>
    %c1_223 = arith.constant 1 : index
    %c0_224 = arith.constant 0 : index
    %c0_225 = arith.constant 0 : index
    %c0_226 = arith.constant 0 : index
    %301 = vector.load %arg11[%c1_223, %c0_224, %c0_225, %c0_226] : memref<2x4x1x8xf32, #tpu.memory_space<vmem>>, vector<1x1x1x8xf32>
    %302 = vector.shape_cast %301 : vector<1x1x1x8xf32> to vector<1x8xf32>
    %303 = vector.broadcast %302 : vector<1x8xf32> to vector<16x8xf32>
    %304 = arith.addf %300, %303 : vector<16x8xf32>
    %305 = vector.shape_cast %290 : vector<16x8xf32> to vector<2x8x8xf32>
    %306 = vector.shape_cast %297 : vector<16x8xf32> to vector<2x8x8xf32>
    %307 = vector.shape_cast %304 : vector<16x8xf32> to vector<2x8x8xf32>
    "tpu.trace_start"() <{level = 10 : i32, message = "bqd,bkd->bqk"}> : () -> ()
    %cst_227 = arith.constant dense<0.000000e+00> : vector<2x8x8xf32>
    %308 = tpu.matmul %305, %306, %cst_227 {dimension_numbers = #tpu.dot_dimension_numbers<[2], [2], [1], [1], [0, 0, 0, 1, 1, 1], [0], [0]>} : vector<2x8x8xf32>, vector<2x8x8xf32>, vector<2x8x8xf32> -> vector<2x8x8xf32>
    "tpu.trace_stop"() : () -> ()
    %cst_228 = arith.constant dense<0xFF800000> : vector<2x8xf32>
    %309 = vector.multi_reduction <maximumf>, %308, %cst_228 [2] : vector<2x8x8xf32> to vector<2x8xf32>
    %310 = vector.shape_cast %309 : vector<2x8xf32> to vector<2x8x1xf32>
    %311 = vector.broadcast %310 : vector<2x8x1xf32> to vector<2x8x8xf32>
    %312 = arith.subf %308, %311 : vector<2x8x8xf32>
    %313 = math.exp %312 : vector<2x8x8xf32>
    %cst_229 = arith.constant dense<0.000000e+00> : vector<2x8xf32>
    %314 = vector.multi_reduction <add>, %313, %cst_229 [2] : vector<2x8x8xf32> to vector<2x8xf32>
    %315 = vector.shape_cast %314 : vector<2x8xf32> to vector<2x8x1xf32>
    %316 = vector.broadcast %315 : vector<2x8x1xf32> to vector<2x8x8xf32>
    %317 = arith.divf %313, %316 : vector<2x8x8xf32>
    "tpu.trace_start"() <{level = 10 : i32, message = "bqk,bkd->bqd"}> : () -> ()
    %cst_230 = arith.constant dense<0.000000e+00> : vector<2x8x8xf32>
    %318 = tpu.matmul %317, %307, %cst_230 {dimension_numbers = #tpu.dot_dimension_numbers<[2], [1], [1], [2], [0, 0, 0, 1, 1, 2], [0], [0]>} : vector<2x8x8xf32>, vector<2x8x8xf32>, vector<2x8x8xf32> -> vector<2x8x8xf32>
    "tpu.trace_stop"() : () -> ()
    %319 = vector.shape_cast %318 : vector<2x8x8xf32> to vector<16x8xf32>
    %c1_231 = arith.constant 1 : index
    %c0_232 = arith.constant 0 : index
    %c0_233 = arith.constant 0 : index
    %c0_234 = arith.constant 0 : index
    %320 = vector.load %arg12[%c1_231, %c0_232, %c0_233, %c0_234] : memref<2x4x8x32xf32, #tpu.memory_space<vmem>>, vector<1x1x8x32xf32>
    %321 = vector.shape_cast %320 : vector<1x1x8x32xf32> to vector<8x32xf32>
    %cst_235 = arith.constant dense<0.000000e+00> : vector<16x32xf32>
    %322 = tpu.matmul %319, %321, %cst_235 {dimension_numbers = #tpu.dot_dimension_numbers<[1], [0], [0], [1], [0, 0, 1, 1], [], []>} : vector<16x8xf32>, vector<8x32xf32>, vector<16x32xf32> -> vector<16x32xf32>
    %323 = arith.addf %283, %322 : vector<16x32xf32>
    %c1_236 = arith.constant 1 : index
    %c1_237 = arith.constant 1 : index
    %c0_238 = arith.constant 0 : index
    %c0_239 = arith.constant 0 : index
    %324 = vector.load %arg6[%c1_236, %c1_237, %c0_238, %c0_239] : memref<2x4x32x8xf32, #tpu.memory_space<vmem>>, vector<1x1x32x8xf32>
    %325 = vector.shape_cast %324 : vector<1x1x32x8xf32> to vector<32x8xf32>
    %cst_240 = arith.constant dense<0.000000e+00> : vector<16x8xf32>
    %326 = tpu.matmul %282, %325, %cst_240 {dimension_numbers = #tpu.dot_dimension_numbers<[1], [0], [0], [1], [0, 0, 1, 1], [], []>} : vector<16x32xf32>, vector<32x8xf32>, vector<16x8xf32> -> vector<16x8xf32>
    %c1_241 = arith.constant 1 : index
    %c1_242 = arith.constant 1 : index
    %c0_243 = arith.constant 0 : index
    %c0_244 = arith.constant 0 : index
    %327 = vector.load %arg7[%c1_241, %c1_242, %c0_243, %c0_244] : memref<2x4x1x8xf32, #tpu.memory_space<vmem>>, vector<1x1x1x8xf32>
    %328 = vector.shape_cast %327 : vector<1x1x1x8xf32> to vector<1x8xf32>
    %329 = vector.broadcast %328 : vector<1x8xf32> to vector<16x8xf32>
    %330 = arith.addf %326, %329 : vector<16x8xf32>
    %c1_245 = arith.constant 1 : index
    %c1_246 = arith.constant 1 : index
    %c0_247 = arith.constant 0 : index
    %c0_248 = arith.constant 0 : index
    %331 = vector.load %arg8[%c1_245, %c1_246, %c0_247, %c0_248] : memref<2x4x32x8xf32, #tpu.memory_space<vmem>>, vector<1x1x32x8xf32>
    %332 = vector.shape_cast %331 : vector<1x1x32x8xf32> to vector<32x8xf32>
    %cst_249 = arith.constant dense<0.000000e+00> : vector<16x8xf32>
    %333 = tpu.matmul %282, %332, %cst_249 {dimension_numbers = #tpu.dot_dimension_numbers<[1], [0], [0], [1], [0, 0, 1, 1], [], []>} : vector<16x32xf32>, vector<32x8xf32>, vector<16x8xf32> -> vector<16x8xf32>
    %c1_250 = arith.constant 1 : index
    %c1_251 = arith.constant 1 : index
    %c0_252 = arith.constant 0 : index
    %c0_253 = arith.constant 0 : index
    %334 = vector.load %arg9[%c1_250, %c1_251, %c0_252, %c0_253] : memref<2x4x1x8xf32, #tpu.memory_space<vmem>>, vector<1x1x1x8xf32>
    %335 = vector.shape_cast %334 : vector<1x1x1x8xf32> to vector<1x8xf32>
    %336 = vector.broadcast %335 : vector<1x8xf32> to vector<16x8xf32>
    %337 = arith.addf %333, %336 : vector<16x8xf32>
    %c1_254 = arith.constant 1 : index
    %c1_255 = arith.constant 1 : index
    %c0_256 = arith.constant 0 : index
    %c0_257 = arith.constant 0 : index
    %338 = vector.load %arg10[%c1_254, %c1_255, %c0_256, %c0_257] : memref<2x4x32x8xf32, #tpu.memory_space<vmem>>, vector<1x1x32x8xf32>
    %339 = vector.shape_cast %338 : vector<1x1x32x8xf32> to vector<32x8xf32>
    %cst_258 = arith.constant dense<0.000000e+00> : vector<16x8xf32>
    %340 = tpu.matmul %282, %339, %cst_258 {dimension_numbers = #tpu.dot_dimension_numbers<[1], [0], [0], [1], [0, 0, 1, 1], [], []>} : vector<16x32xf32>, vector<32x8xf32>, vector<16x8xf32> -> vector<16x8xf32>
    %c1_259 = arith.constant 1 : index
    %c1_260 = arith.constant 1 : index
    %c0_261 = arith.constant 0 : index
    %c0_262 = arith.constant 0 : index
    %341 = vector.load %arg11[%c1_259, %c1_260, %c0_261, %c0_262] : memref<2x4x1x8xf32, #tpu.memory_space<vmem>>, vector<1x1x1x8xf32>
    %342 = vector.shape_cast %341 : vector<1x1x1x8xf32> to vector<1x8xf32>
    %343 = vector.broadcast %342 : vector<1x8xf32> to vector<16x8xf32>
    %344 = arith.addf %340, %343 : vector<16x8xf32>
    %345 = vector.shape_cast %330 : vector<16x8xf32> to vector<2x8x8xf32>
    %346 = vector.shape_cast %337 : vector<16x8xf32> to vector<2x8x8xf32>
    %347 = vector.shape_cast %344 : vector<16x8xf32> to vector<2x8x8xf32>
    "tpu.trace_start"() <{level = 10 : i32, message = "bqd,bkd->bqk"}> : () -> ()
    %cst_263 = arith.constant dense<0.000000e+00> : vector<2x8x8xf32>
    %348 = tpu.matmul %345, %346, %cst_263 {dimension_numbers = #tpu.dot_dimension_numbers<[2], [2], [1], [1], [0, 0, 0, 1, 1, 1], [0], [0]>} : vector<2x8x8xf32>, vector<2x8x8xf32>, vector<2x8x8xf32> -> vector<2x8x8xf32>
    "tpu.trace_stop"() : () -> ()
    %cst_264 = arith.constant dense<0xFF800000> : vector<2x8xf32>
    %349 = vector.multi_reduction <maximumf>, %348, %cst_264 [2] : vector<2x8x8xf32> to vector<2x8xf32>
    %350 = vector.shape_cast %349 : vector<2x8xf32> to vector<2x8x1xf32>
    %351 = vector.broadcast %350 : vector<2x8x1xf32> to vector<2x8x8xf32>
    %352 = arith.subf %348, %351 : vector<2x8x8xf32>
    %353 = math.exp %352 : vector<2x8x8xf32>
    %cst_265 = arith.constant dense<0.000000e+00> : vector<2x8xf32>
    %354 = vector.multi_reduction <add>, %353, %cst_265 [2] : vector<2x8x8xf32> to vector<2x8xf32>
    %355 = vector.shape_cast %354 : vector<2x8xf32> to vector<2x8x1xf32>
    %356 = vector.broadcast %355 : vector<2x8x1xf32> to vector<2x8x8xf32>
    %357 = arith.divf %353, %356 : vector<2x8x8xf32>
    "tpu.trace_start"() <{level = 10 : i32, message = "bqk,bkd->bqd"}> : () -> ()
    %cst_266 = arith.constant dense<0.000000e+00> : vector<2x8x8xf32>
    %358 = tpu.matmul %357, %347, %cst_266 {dimension_numbers = #tpu.dot_dimension_numbers<[2], [1], [1], [2], [0, 0, 0, 1, 1, 2], [0], [0]>} : vector<2x8x8xf32>, vector<2x8x8xf32>, vector<2x8x8xf32> -> vector<2x8x8xf32>
    "tpu.trace_stop"() : () -> ()
    %359 = vector.shape_cast %358 : vector<2x8x8xf32> to vector<16x8xf32>
    %c1_267 = arith.constant 1 : index
    %c1_268 = arith.constant 1 : index
    %c0_269 = arith.constant 0 : index
    %c0_270 = arith.constant 0 : index
    %360 = vector.load %arg12[%c1_267, %c1_268, %c0_269, %c0_270] : memref<2x4x8x32xf32, #tpu.memory_space<vmem>>, vector<1x1x8x32xf32>
    %361 = vector.shape_cast %360 : vector<1x1x8x32xf32> to vector<8x32xf32>
    %cst_271 = arith.constant dense<0.000000e+00> : vector<16x32xf32>
    %362 = tpu.matmul %359, %361, %cst_271 {dimension_numbers = #tpu.dot_dimension_numbers<[1], [0], [0], [1], [0, 0, 1, 1], [], []>} : vector<16x8xf32>, vector<8x32xf32>, vector<16x32xf32> -> vector<16x32xf32>
    %363 = arith.addf %323, %362 : vector<16x32xf32>
    %c1_272 = arith.constant 1 : index
    %c2_273 = arith.constant 2 : index
    %c0_274 = arith.constant 0 : index
    %c0_275 = arith.constant 0 : index
    %364 = vector.load %arg6[%c1_272, %c2_273, %c0_274, %c0_275] : memref<2x4x32x8xf32, #tpu.memory_space<vmem>>, vector<1x1x32x8xf32>
    %365 = vector.shape_cast %364 : vector<1x1x32x8xf32> to vector<32x8xf32>
    %cst_276 = arith.constant dense<0.000000e+00> : vector<16x8xf32>
    %366 = tpu.matmul %282, %365, %cst_276 {dimension_numbers = #tpu.dot_dimension_numbers<[1], [0], [0], [1], [0, 0, 1, 1], [], []>} : vector<16x32xf32>, vector<32x8xf32>, vector<16x8xf32> -> vector<16x8xf32>
    %c1_277 = arith.constant 1 : index
    %c2_278 = arith.constant 2 : index
    %c0_279 = arith.constant 0 : index
    %c0_280 = arith.constant 0 : index
    %367 = vector.load %arg7[%c1_277, %c2_278, %c0_279, %c0_280] : memref<2x4x1x8xf32, #tpu.memory_space<vmem>>, vector<1x1x1x8xf32>
    %368 = vector.shape_cast %367 : vector<1x1x1x8xf32> to vector<1x8xf32>
    %369 = vector.broadcast %368 : vector<1x8xf32> to vector<16x8xf32>
    %370 = arith.addf %366, %369 : vector<16x8xf32>
    %c1_281 = arith.constant 1 : index
    %c2_282 = arith.constant 2 : index
    %c0_283 = arith.constant 0 : index
    %c0_284 = arith.constant 0 : index
    %371 = vector.load %arg8[%c1_281, %c2_282, %c0_283, %c0_284] : memref<2x4x32x8xf32, #tpu.memory_space<vmem>>, vector<1x1x32x8xf32>
    %372 = vector.shape_cast %371 : vector<1x1x32x8xf32> to vector<32x8xf32>
    %cst_285 = arith.constant dense<0.000000e+00> : vector<16x8xf32>
    %373 = tpu.matmul %282, %372, %cst_285 {dimension_numbers = #tpu.dot_dimension_numbers<[1], [0], [0], [1], [0, 0, 1, 1], [], []>} : vector<16x32xf32>, vector<32x8xf32>, vector<16x8xf32> -> vector<16x8xf32>
    %c1_286 = arith.constant 1 : index
    %c2_287 = arith.constant 2 : index
    %c0_288 = arith.constant 0 : index
    %c0_289 = arith.constant 0 : index
    %374 = vector.load %arg9[%c1_286, %c2_287, %c0_288, %c0_289] : memref<2x4x1x8xf32, #tpu.memory_space<vmem>>, vector<1x1x1x8xf32>
    %375 = vector.shape_cast %374 : vector<1x1x1x8xf32> to vector<1x8xf32>
    %376 = vector.broadcast %375 : vector<1x8xf32> to vector<16x8xf32>
    %377 = arith.addf %373, %376 : vector<16x8xf32>
    %c1_290 = arith.constant 1 : index
    %c2_291 = arith.constant 2 : index
    %c0_292 = arith.constant 0 : index
    %c0_293 = arith.constant 0 : index
    %378 = vector.load %arg10[%c1_290, %c2_291, %c0_292, %c0_293] : memref<2x4x32x8xf32, #tpu.memory_space<vmem>>, vector<1x1x32x8xf32>
    %379 = vector.shape_cast %378 : vector<1x1x32x8xf32> to vector<32x8xf32>
    %cst_294 = arith.constant dense<0.000000e+00> : vector<16x8xf32>
    %380 = tpu.matmul %282, %379, %cst_294 {dimension_numbers = #tpu.dot_dimension_numbers<[1], [0], [0], [1], [0, 0, 1, 1], [], []>} : vector<16x32xf32>, vector<32x8xf32>, vector<16x8xf32> -> vector<16x8xf32>
    %c1_295 = arith.constant 1 : index
    %c2_296 = arith.constant 2 : index
    %c0_297 = arith.constant 0 : index
    %c0_298 = arith.constant 0 : index
    %381 = vector.load %arg11[%c1_295, %c2_296, %c0_297, %c0_298] : memref<2x4x1x8xf32, #tpu.memory_space<vmem>>, vector<1x1x1x8xf32>
    %382 = vector.shape_cast %381 : vector<1x1x1x8xf32> to vector<1x8xf32>
    %383 = vector.broadcast %382 : vector<1x8xf32> to vector<16x8xf32>
    %384 = arith.addf %380, %383 : vector<16x8xf32>
    %385 = vector.shape_cast %370 : vector<16x8xf32> to vector<2x8x8xf32>
    %386 = vector.shape_cast %377 : vector<16x8xf32> to vector<2x8x8xf32>
    %387 = vector.shape_cast %384 : vector<16x8xf32> to vector<2x8x8xf32>
    "tpu.trace_start"() <{level = 10 : i32, message = "bqd,bkd->bqk"}> : () -> ()
    %cst_299 = arith.constant dense<0.000000e+00> : vector<2x8x8xf32>
    %388 = tpu.matmul %385, %386, %cst_299 {dimension_numbers = #tpu.dot_dimension_numbers<[2], [2], [1], [1], [0, 0, 0, 1, 1, 1], [0], [0]>} : vector<2x8x8xf32>, vector<2x8x8xf32>, vector<2x8x8xf32> -> vector<2x8x8xf32>
    "tpu.trace_stop"() : () -> ()
    %cst_300 = arith.constant dense<0xFF800000> : vector<2x8xf32>
    %389 = vector.multi_reduction <maximumf>, %388, %cst_300 [2] : vector<2x8x8xf32> to vector<2x8xf32>
    %390 = vector.shape_cast %389 : vector<2x8xf32> to vector<2x8x1xf32>
    %391 = vector.broadcast %390 : vector<2x8x1xf32> to vector<2x8x8xf32>
    %392 = arith.subf %388, %391 : vector<2x8x8xf32>
    %393 = math.exp %392 : vector<2x8x8xf32>
    %cst_301 = arith.constant dense<0.000000e+00> : vector<2x8xf32>
    %394 = vector.multi_reduction <add>, %393, %cst_301 [2] : vector<2x8x8xf32> to vector<2x8xf32>
    %395 = vector.shape_cast %394 : vector<2x8xf32> to vector<2x8x1xf32>
    %396 = vector.broadcast %395 : vector<2x8x1xf32> to vector<2x8x8xf32>
    %397 = arith.divf %393, %396 : vector<2x8x8xf32>
    "tpu.trace_start"() <{level = 10 : i32, message = "bqk,bkd->bqd"}> : () -> ()
    %cst_302 = arith.constant dense<0.000000e+00> : vector<2x8x8xf32>
    %398 = tpu.matmul %397, %387, %cst_302 {dimension_numbers = #tpu.dot_dimension_numbers<[2], [1], [1], [2], [0, 0, 0, 1, 1, 2], [0], [0]>} : vector<2x8x8xf32>, vector<2x8x8xf32>, vector<2x8x8xf32> -> vector<2x8x8xf32>
    "tpu.trace_stop"() : () -> ()
    %399 = vector.shape_cast %398 : vector<2x8x8xf32> to vector<16x8xf32>
    %c1_303 = arith.constant 1 : index
    %c2_304 = arith.constant 2 : index
    %c0_305 = arith.constant 0 : index
    %c0_306 = arith.constant 0 : index
    %400 = vector.load %arg12[%c1_303, %c2_304, %c0_305, %c0_306] : memref<2x4x8x32xf32, #tpu.memory_space<vmem>>, vector<1x1x8x32xf32>
    %401 = vector.shape_cast %400 : vector<1x1x8x32xf32> to vector<8x32xf32>
    %cst_307 = arith.constant dense<0.000000e+00> : vector<16x32xf32>
    %402 = tpu.matmul %399, %401, %cst_307 {dimension_numbers = #tpu.dot_dimension_numbers<[1], [0], [0], [1], [0, 0, 1, 1], [], []>} : vector<16x8xf32>, vector<8x32xf32>, vector<16x32xf32> -> vector<16x32xf32>
    %403 = arith.addf %363, %402 : vector<16x32xf32>
    %c1_308 = arith.constant 1 : index
    %c3_309 = arith.constant 3 : index
    %c0_310 = arith.constant 0 : index
    %c0_311 = arith.constant 0 : index
    %404 = vector.load %arg6[%c1_308, %c3_309, %c0_310, %c0_311] : memref<2x4x32x8xf32, #tpu.memory_space<vmem>>, vector<1x1x32x8xf32>
    %405 = vector.shape_cast %404 : vector<1x1x32x8xf32> to vector<32x8xf32>
    %cst_312 = arith.constant dense<0.000000e+00> : vector<16x8xf32>
    %406 = tpu.matmul %282, %405, %cst_312 {dimension_numbers = #tpu.dot_dimension_numbers<[1], [0], [0], [1], [0, 0, 1, 1], [], []>} : vector<16x32xf32>, vector<32x8xf32>, vector<16x8xf32> -> vector<16x8xf32>
    %c1_313 = arith.constant 1 : index
    %c3_314 = arith.constant 3 : index
    %c0_315 = arith.constant 0 : index
    %c0_316 = arith.constant 0 : index
    %407 = vector.load %arg7[%c1_313, %c3_314, %c0_315, %c0_316] : memref<2x4x1x8xf32, #tpu.memory_space<vmem>>, vector<1x1x1x8xf32>
    %408 = vector.shape_cast %407 : vector<1x1x1x8xf32> to vector<1x8xf32>
    %409 = vector.broadcast %408 : vector<1x8xf32> to vector<16x8xf32>
    %410 = arith.addf %406, %409 : vector<16x8xf32>
    %c1_317 = arith.constant 1 : index
    %c3_318 = arith.constant 3 : index
    %c0_319 = arith.constant 0 : index
    %c0_320 = arith.constant 0 : index
    %411 = vector.load %arg8[%c1_317, %c3_318, %c0_319, %c0_320] : memref<2x4x32x8xf32, #tpu.memory_space<vmem>>, vector<1x1x32x8xf32>
    %412 = vector.shape_cast %411 : vector<1x1x32x8xf32> to vector<32x8xf32>
    %cst_321 = arith.constant dense<0.000000e+00> : vector<16x8xf32>
    %413 = tpu.matmul %282, %412, %cst_321 {dimension_numbers = #tpu.dot_dimension_numbers<[1], [0], [0], [1], [0, 0, 1, 1], [], []>} : vector<16x32xf32>, vector<32x8xf32>, vector<16x8xf32> -> vector<16x8xf32>
    %c1_322 = arith.constant 1 : index
    %c3_323 = arith.constant 3 : index
    %c0_324 = arith.constant 0 : index
    %c0_325 = arith.constant 0 : index
    %414 = vector.load %arg9[%c1_322, %c3_323, %c0_324, %c0_325] : memref<2x4x1x8xf32, #tpu.memory_space<vmem>>, vector<1x1x1x8xf32>
    %415 = vector.shape_cast %414 : vector<1x1x1x8xf32> to vector<1x8xf32>
    %416 = vector.broadcast %415 : vector<1x8xf32> to vector<16x8xf32>
    %417 = arith.addf %413, %416 : vector<16x8xf32>
    %c1_326 = arith.constant 1 : index
    %c3_327 = arith.constant 3 : index
    %c0_328 = arith.constant 0 : index
    %c0_329 = arith.constant 0 : index
    %418 = vector.load %arg10[%c1_326, %c3_327, %c0_328, %c0_329] : memref<2x4x32x8xf32, #tpu.memory_space<vmem>>, vector<1x1x32x8xf32>
    %419 = vector.shape_cast %418 : vector<1x1x32x8xf32> to vector<32x8xf32>
    %cst_330 = arith.constant dense<0.000000e+00> : vector<16x8xf32>
    %420 = tpu.matmul %282, %419, %cst_330 {dimension_numbers = #tpu.dot_dimension_numbers<[1], [0], [0], [1], [0, 0, 1, 1], [], []>} : vector<16x32xf32>, vector<32x8xf32>, vector<16x8xf32> -> vector<16x8xf32>
    %c1_331 = arith.constant 1 : index
    %c3_332 = arith.constant 3 : index
    %c0_333 = arith.constant 0 : index
    %c0_334 = arith.constant 0 : index
    %421 = vector.load %arg11[%c1_331, %c3_332, %c0_333, %c0_334] : memref<2x4x1x8xf32, #tpu.memory_space<vmem>>, vector<1x1x1x8xf32>
    %422 = vector.shape_cast %421 : vector<1x1x1x8xf32> to vector<1x8xf32>
    %423 = vector.broadcast %422 : vector<1x8xf32> to vector<16x8xf32>
    %424 = arith.addf %420, %423 : vector<16x8xf32>
    %425 = vector.shape_cast %410 : vector<16x8xf32> to vector<2x8x8xf32>
    %426 = vector.shape_cast %417 : vector<16x8xf32> to vector<2x8x8xf32>
    %427 = vector.shape_cast %424 : vector<16x8xf32> to vector<2x8x8xf32>
    "tpu.trace_start"() <{level = 10 : i32, message = "bqd,bkd->bqk"}> : () -> ()
    %cst_335 = arith.constant dense<0.000000e+00> : vector<2x8x8xf32>
    %428 = tpu.matmul %425, %426, %cst_335 {dimension_numbers = #tpu.dot_dimension_numbers<[2], [2], [1], [1], [0, 0, 0, 1, 1, 1], [0], [0]>} : vector<2x8x8xf32>, vector<2x8x8xf32>, vector<2x8x8xf32> -> vector<2x8x8xf32>
    "tpu.trace_stop"() : () -> ()
    %cst_336 = arith.constant dense<0xFF800000> : vector<2x8xf32>
    %429 = vector.multi_reduction <maximumf>, %428, %cst_336 [2] : vector<2x8x8xf32> to vector<2x8xf32>
    %430 = vector.shape_cast %429 : vector<2x8xf32> to vector<2x8x1xf32>
    %431 = vector.broadcast %430 : vector<2x8x1xf32> to vector<2x8x8xf32>
    %432 = arith.subf %428, %431 : vector<2x8x8xf32>
    %433 = math.exp %432 : vector<2x8x8xf32>
    %cst_337 = arith.constant dense<0.000000e+00> : vector<2x8xf32>
    %434 = vector.multi_reduction <add>, %433, %cst_337 [2] : vector<2x8x8xf32> to vector<2x8xf32>
    %435 = vector.shape_cast %434 : vector<2x8xf32> to vector<2x8x1xf32>
    %436 = vector.broadcast %435 : vector<2x8x1xf32> to vector<2x8x8xf32>
    %437 = arith.divf %433, %436 : vector<2x8x8xf32>
    "tpu.trace_start"() <{level = 10 : i32, message = "bqk,bkd->bqd"}> : () -> ()
    %cst_338 = arith.constant dense<0.000000e+00> : vector<2x8x8xf32>
    %438 = tpu.matmul %437, %427, %cst_338 {dimension_numbers = #tpu.dot_dimension_numbers<[2], [1], [1], [2], [0, 0, 0, 1, 1, 2], [0], [0]>} : vector<2x8x8xf32>, vector<2x8x8xf32>, vector<2x8x8xf32> -> vector<2x8x8xf32>
    "tpu.trace_stop"() : () -> ()
    %439 = vector.shape_cast %438 : vector<2x8x8xf32> to vector<16x8xf32>
    %c1_339 = arith.constant 1 : index
    %c3_340 = arith.constant 3 : index
    %c0_341 = arith.constant 0 : index
    %c0_342 = arith.constant 0 : index
    %440 = vector.load %arg12[%c1_339, %c3_340, %c0_341, %c0_342] : memref<2x4x8x32xf32, #tpu.memory_space<vmem>>, vector<1x1x8x32xf32>
    %441 = vector.shape_cast %440 : vector<1x1x8x32xf32> to vector<8x32xf32>
    %cst_343 = arith.constant dense<0.000000e+00> : vector<16x32xf32>
    %442 = tpu.matmul %439, %441, %cst_343 {dimension_numbers = #tpu.dot_dimension_numbers<[1], [0], [0], [1], [0, 0, 1, 1], [], []>} : vector<16x8xf32>, vector<8x32xf32>, vector<16x32xf32> -> vector<16x32xf32>
    %443 = arith.addf %403, %442 : vector<16x32xf32>
    %c1_344 = arith.constant 1 : index
    %c0_345 = arith.constant 0 : index
    %c0_346 = arith.constant 0 : index
    %444 = vector.load %arg13[%c1_344, %c0_345, %c0_346] : memref<2x1x32xf32, #tpu.memory_space<vmem>>, vector<1x1x32xf32>
    %445 = vector.shape_cast %444 : vector<1x1x32xf32> to vector<1x32xf32>
    %446 = vector.broadcast %445 : vector<1x32xf32> to vector<16x32xf32>
    %447 = arith.addf %443, %446 : vector<16x32xf32>
    %448 = arith.addf %282, %447 : vector<16x32xf32>
    %c1_347 = arith.constant 1 : index
    %c0_348 = arith.constant 0 : index
    %c0_349 = arith.constant 0 : index
    %449 = vector.load %arg14[%c1_347, %c0_348, %c0_349] : memref<2x1x32xf32, #tpu.memory_space<vmem>>, vector<1x1x32xf32>
    %450 = vector.shape_cast %449 : vector<1x1x32xf32> to vector<1x32xf32>
    %c1_350 = arith.constant 1 : index
    %c0_351 = arith.constant 0 : index
    %c0_352 = arith.constant 0 : index
    %451 = vector.load %arg15[%c1_350, %c0_351, %c0_352] : memref<2x1x32xf32, #tpu.memory_space<vmem>>, vector<1x1x32xf32>
    %452 = vector.shape_cast %451 : vector<1x1x32xf32> to vector<1x32xf32>
    %cst_353 = arith.constant dense<0.000000e+00> : vector<16xf32>
    %453 = vector.multi_reduction <add>, %448, %cst_353 [1] : vector<16x32xf32> to vector<16xf32>
    %454 = vector.shape_cast %453 : vector<16xf32> to vector<16x1xf32>
    %cst_354 = arith.constant 3.200000e+01 : f32
    %455 = vector.broadcast %cst_354 : f32 to vector<16x1xf32>
    %456 = arith.divf %454, %455 : vector<16x1xf32>
    %457 = vector.broadcast %456 : vector<16x1xf32> to vector<16x32xf32>
    %458 = arith.subf %448, %457 : vector<16x32xf32>
    %459 = arith.mulf %458, %458 : vector<16x32xf32>
    %cst_355 = arith.constant dense<0.000000e+00> : vector<16xf32>
    %460 = vector.multi_reduction <add>, %459, %cst_355 [1] : vector<16x32xf32> to vector<16xf32>
    %461 = vector.shape_cast %460 : vector<16xf32> to vector<16x1xf32>
    %cst_356 = arith.constant 3.200000e+01 : f32
    %462 = vector.broadcast %cst_356 : f32 to vector<16x1xf32>
    %463 = arith.divf %461, %462 : vector<16x1xf32>
    %464 = vector.broadcast %456 : vector<16x1xf32> to vector<16x32xf32>
    %465 = arith.subf %448, %464 : vector<16x32xf32>
    %cst_357 = arith.constant 9.99999974E-6 : f32
    %466 = vector.broadcast %cst_357 : f32 to vector<16x1xf32>
    %467 = arith.addf %463, %466 : vector<16x1xf32>
    %468 = math.rsqrt %467 : vector<16x1xf32>
    %469 = vector.broadcast %468 : vector<16x1xf32> to vector<16x32xf32>
    %470 = arith.mulf %465, %469 : vector<16x32xf32>
    %471 = vector.broadcast %450 : vector<1x32xf32> to vector<16x32xf32>
    %472 = arith.mulf %470, %471 : vector<16x32xf32>
    %473 = vector.broadcast %452 : vector<1x32xf32> to vector<16x32xf32>
    %474 = arith.addf %472, %473 : vector<16x32xf32>
    %c1_358 = arith.constant 1 : index
    %c0_359 = arith.constant 0 : index
    %c0_360 = arith.constant 0 : index
    %475 = vector.load %arg16[%c1_358, %c0_359, %c0_360] : memref<2x32x64xf32, #tpu.memory_space<vmem>>, vector<1x32x64xf32>
    %476 = vector.shape_cast %475 : vector<1x32x64xf32> to vector<32x64xf32>
    %cst_361 = arith.constant dense<0.000000e+00> : vector<16x64xf32>
    %477 = tpu.matmul %474, %476, %cst_361 {dimension_numbers = #tpu.dot_dimension_numbers<[1], [0], [0], [1], [0, 0, 1, 1], [], []>} : vector<16x32xf32>, vector<32x64xf32>, vector<16x64xf32> -> vector<16x64xf32>
    %c1_362 = arith.constant 1 : index
    %c0_363 = arith.constant 0 : index
    %c0_364 = arith.constant 0 : index
    %478 = vector.load %arg17[%c1_362, %c0_363, %c0_364] : memref<2x1x64xf32, #tpu.memory_space<vmem>>, vector<1x1x64xf32>
    %479 = vector.shape_cast %478 : vector<1x1x64xf32> to vector<1x64xf32>
    %480 = vector.broadcast %479 : vector<1x64xf32> to vector<16x64xf32>
    %481 = arith.addf %477, %480 : vector<16x64xf32>
    %cst_365 = arith.constant 0.000000e+00 : f32
    %482 = vector.broadcast %cst_365 : f32 to vector<16x64xf32>
    %483 = arith.maximumf %481, %482 : vector<16x64xf32>
    %c1_366 = arith.constant 1 : index
    %c0_367 = arith.constant 0 : index
    %c0_368 = arith.constant 0 : index
    %484 = vector.load %arg18[%c1_366, %c0_367, %c0_368] : memref<2x64x32xf32, #tpu.memory_space<vmem>>, vector<1x64x32xf32>
    %485 = vector.shape_cast %484 : vector<1x64x32xf32> to vector<64x32xf32>
    %cst_369 = arith.constant dense<0.000000e+00> : vector<16x32xf32>
    %486 = tpu.matmul %483, %485, %cst_369 {dimension_numbers = #tpu.dot_dimension_numbers<[1], [0], [0], [1], [0, 0, 1, 1], [], []>} : vector<16x64xf32>, vector<64x32xf32>, vector<16x32xf32> -> vector<16x32xf32>
    %c1_370 = arith.constant 1 : index
    %c0_371 = arith.constant 0 : index
    %c0_372 = arith.constant 0 : index
    %487 = vector.load %arg19[%c1_370, %c0_371, %c0_372] : memref<2x1x32xf32, #tpu.memory_space<vmem>>, vector<1x1x32xf32>
    %488 = vector.shape_cast %487 : vector<1x1x32xf32> to vector<1x32xf32>
    %489 = vector.broadcast %488 : vector<1x32xf32> to vector<16x32xf32>
    %490 = arith.addf %486, %489 : vector<16x32xf32>
    %491 = arith.addf %474, %490 : vector<16x32xf32>
    %c1_373 = arith.constant 1 : index
    %c0_374 = arith.constant 0 : index
    %c0_375 = arith.constant 0 : index
    %492 = vector.load %arg20[%c1_373, %c0_374, %c0_375] : memref<2x1x32xf32, #tpu.memory_space<vmem>>, vector<1x1x32xf32>
    %493 = vector.shape_cast %492 : vector<1x1x32xf32> to vector<1x32xf32>
    %c1_376 = arith.constant 1 : index
    %c0_377 = arith.constant 0 : index
    %c0_378 = arith.constant 0 : index
    %494 = vector.load %arg21[%c1_376, %c0_377, %c0_378] : memref<2x1x32xf32, #tpu.memory_space<vmem>>, vector<1x1x32xf32>
    %495 = vector.shape_cast %494 : vector<1x1x32xf32> to vector<1x32xf32>
    %cst_379 = arith.constant dense<0.000000e+00> : vector<16xf32>
    %496 = vector.multi_reduction <add>, %491, %cst_379 [1] : vector<16x32xf32> to vector<16xf32>
    %497 = vector.shape_cast %496 : vector<16xf32> to vector<16x1xf32>
    %cst_380 = arith.constant 3.200000e+01 : f32
    %498 = vector.broadcast %cst_380 : f32 to vector<16x1xf32>
    %499 = arith.divf %497, %498 : vector<16x1xf32>
    %500 = vector.broadcast %499 : vector<16x1xf32> to vector<16x32xf32>
    %501 = arith.subf %491, %500 : vector<16x32xf32>
    %502 = arith.mulf %501, %501 : vector<16x32xf32>
    %cst_381 = arith.constant dense<0.000000e+00> : vector<16xf32>
    %503 = vector.multi_reduction <add>, %502, %cst_381 [1] : vector<16x32xf32> to vector<16xf32>
    %504 = vector.shape_cast %503 : vector<16xf32> to vector<16x1xf32>
    %cst_382 = arith.constant 3.200000e+01 : f32
    %505 = vector.broadcast %cst_382 : f32 to vector<16x1xf32>
    %506 = arith.divf %504, %505 : vector<16x1xf32>
    %507 = vector.broadcast %499 : vector<16x1xf32> to vector<16x32xf32>
    %508 = arith.subf %491, %507 : vector<16x32xf32>
    %cst_383 = arith.constant 9.99999974E-6 : f32
    %509 = vector.broadcast %cst_383 : f32 to vector<16x1xf32>
    %510 = arith.addf %506, %509 : vector<16x1xf32>
    %511 = math.rsqrt %510 : vector<16x1xf32>
    %512 = vector.broadcast %511 : vector<16x1xf32> to vector<16x32xf32>
    %513 = arith.mulf %508, %512 : vector<16x32xf32>
    %514 = vector.broadcast %493 : vector<1x32xf32> to vector<16x32xf32>
    %515 = arith.mulf %513, %514 : vector<16x32xf32>
    %516 = vector.broadcast %495 : vector<1x32xf32> to vector<16x32xf32>
    %517 = arith.addf %515, %516 : vector<16x32xf32>
    %c0_384 = arith.constant 0 : index
    %c0_385 = arith.constant 0 : index
    %518 = vector.load %arg22[%c0_384, %c0_385] : memref<1x32xf32, #tpu.memory_space<vmem>>, vector<1x32xf32>
    %c0_386 = arith.constant 0 : index
    %c0_387 = arith.constant 0 : index
    %519 = vector.load %arg23[%c0_386, %c0_387] : memref<1x32xf32, #tpu.memory_space<vmem>>, vector<1x32xf32>
    %cst_388 = arith.constant dense<0.000000e+00> : vector<16xf32>
    %520 = vector.multi_reduction <add>, %517, %cst_388 [1] : vector<16x32xf32> to vector<16xf32>
    %521 = vector.shape_cast %520 : vector<16xf32> to vector<16x1xf32>
    %cst_389 = arith.constant 3.200000e+01 : f32
    %522 = vector.broadcast %cst_389 : f32 to vector<16x1xf32>
    %523 = arith.divf %521, %522 : vector<16x1xf32>
    %524 = vector.broadcast %523 : vector<16x1xf32> to vector<16x32xf32>
    %525 = arith.subf %517, %524 : vector<16x32xf32>
    %526 = arith.mulf %525, %525 : vector<16x32xf32>
    %cst_390 = arith.constant dense<0.000000e+00> : vector<16xf32>
    %527 = vector.multi_reduction <add>, %526, %cst_390 [1] : vector<16x32xf32> to vector<16xf32>
    %528 = vector.shape_cast %527 : vector<16xf32> to vector<16x1xf32>
    %cst_391 = arith.constant 3.200000e+01 : f32
    %529 = vector.broadcast %cst_391 : f32 to vector<16x1xf32>
    %530 = arith.divf %528, %529 : vector<16x1xf32>
    %531 = vector.broadcast %523 : vector<16x1xf32> to vector<16x32xf32>
    %532 = arith.subf %517, %531 : vector<16x32xf32>
    %cst_392 = arith.constant 9.99999974E-6 : f32
    %533 = vector.broadcast %cst_392 : f32 to vector<16x1xf32>
    %534 = arith.addf %530, %533 : vector<16x1xf32>
    %535 = math.rsqrt %534 : vector<16x1xf32>
    %536 = vector.broadcast %535 : vector<16x1xf32> to vector<16x32xf32>
    %537 = arith.mulf %532, %536 : vector<16x32xf32>
    %538 = vector.broadcast %518 : vector<1x32xf32> to vector<16x32xf32>
    %539 = arith.mulf %537, %538 : vector<16x32xf32>
    %540 = vector.broadcast %519 : vector<1x32xf32> to vector<16x32xf32>
    %541 = arith.addf %539, %540 : vector<16x32xf32>
    %542 = vector.shape_cast %541 : vector<16x32xf32> to vector<2x8x32xf32>
    %c0_393 = arith.constant 0 : index
    %c0_394 = arith.constant 0 : index
    %c0_395 = arith.constant 0 : index
    %543 = vector.load %arg24[%c0_393, %c0_394, %c0_395] : memref<2x8x32xf32, #tpu.memory_space<vmem>>, vector<2x8x32xf32>
    tpu.vector_store %arg24[%c0_393, %c0_394, %c0_395], %542 {strides = array<i32>} : memref<2x8x32xf32, #tpu.memory_space<vmem>>, vector<2x8x32xf32>,
    return
  }
  func.func @transform_0(%arg0: i32) -> (i32, i32) {
    %c0_i32 = arith.constant 0 : i32
    %c0_i32_0 = arith.constant 0 : i32
    return %arg0, %c0_i32 : i32, i32
  }
  func.func @transform_1(%arg0: i32) -> (i32, i32) {
    %c0_i32 = arith.constant 0 : i32
    %c0_i32_0 = arith.constant 0 : i32
    %c0_i32_1 = arith.constant 0 : i32
    return %c0_i32, %c0_i32_0 : i32, i32
  }
  func.func @transform_2(%arg0: i32) -> (i32, i32) {
    %c0_i32 = arith.constant 0 : i32
    %c0_i32_0 = arith.constant 0 : i32
    %c0_i32_1 = arith.constant 0 : i32
    return %c0_i32, %c0_i32_0 : i32, i32
  }
  func.func @transform_3(%arg0: i32) -> (i32, i32) {
    %c0_i32 = arith.constant 0 : i32
    %c0_i32_0 = arith.constant 0 : i32
    %c0_i32_1 = arith.constant 0 : i32
    return %c0_i32, %c0_i32_0 : i32, i32
  }
  func.func @transform_4(%arg0: i32) -> (i32, i32) {
    %c0_i32 = arith.constant 0 : i32
    %c0_i32_0 = arith.constant 0 : i32
    %c0_i32_1 = arith.constant 0 : i32
    return %c0_i32, %c0_i32_0 : i32, i32
  }
  func.func @transform_5(%arg0: i32) -> (i32, i32, i32, i32) {
    %c0_i32 = arith.constant 0 : i32
    %c0_i32_0 = arith.constant 0 : i32
    %c0_i32_1 = arith.constant 0 : i32
    %c0_i32_2 = arith.constant 0 : i32
    %c0_i32_3 = arith.constant 0 : i32
    return %c0_i32, %c0_i32_0, %c0_i32_1, %c0_i32_2 : i32, i32, i32, i32
  }
  func.func @transform_6(%arg0: i32) -> (i32, i32, i32, i32) {
    %c0_i32 = arith.constant 0 : i32
    %c0_i32_0 = arith.constant 0 : i32
    %c0_i32_1 = arith.constant 0 : i32
    %c0_i32_2 = arith.constant 0 : i32
    %c0_i32_3 = arith.constant 0 : i32
    return %c0_i32, %c0_i32_0, %c0_i32_1, %c0_i32_2 : i32, i32, i32, i32
  }
  func.func @transform_7(%arg0: i32) -> (i32, i32, i32, i32) {
    %c0_i32 = arith.constant 0 : i32
    %c0_i32_0 = arith.constant 0 : i32
    %c0_i32_1 = arith.constant 0 : i32
    %c0_i32_2 = arith.constant 0 : i32
    %c0_i32_3 = arith.constant 0 : i32
    return %c0_i32, %c0_i32_0, %c0_i32_1, %c0_i32_2 : i32, i32, i32, i32
  }
  func.func @transform_8(%arg0: i32) -> (i32, i32, i32, i32) {
    %c0_i32 = arith.constant 0 : i32
    %c0_i32_0 = arith.constant 0 : i32
    %c0_i32_1 = arith.constant 0 : i32
    %c0_i32_2 = arith.constant 0 : i32
    %c0_i32_3 = arith.constant 0 : i32
    return %c0_i32, %c0_i32_0, %c0_i32_1, %c0_i32_2 : i32, i32, i32, i32
  }
  func.func @transform_9(%arg0: i32) -> (i32, i32, i32, i32) {
    %c0_i32 = arith.constant 0 : i32
    %c0_i32_0 = arith.constant 0 : i32
    %c0_i32_1 = arith.constant 0 : i32
    %c0_i32_2 = arith.constant 0 : i32
    %c0_i32_3 = arith.constant 0 : i32
    return %c0_i32, %c0_i32_0, %c0_i32_1, %c0_i32_2 : i32, i32, i32, i32
  }
  func.func @transform_10(%arg0: i32) -> (i32, i32, i32, i32) {
    %c0_i32 = arith.constant 0 : i32
    %c0_i32_0 = arith.constant 0 : i32
    %c0_i32_1 = arith.constant 0 : i32
    %c0_i32_2 = arith.constant 0 : i32
    %c0_i32_3 = arith.constant 0 : i32
    return %c0_i32, %c0_i32_0, %c0_i32_1, %c0_i32_2 : i32, i32, i32, i32
  }
  func.func @transform_11(%arg0: i32) -> (i32, i32, i32, i32) {
    %c0_i32 = arith.constant 0 : i32
    %c0_i32_0 = arith.constant 0 : i32
    %c0_i32_1 = arith.constant 0 : i32
    %c0_i32_2 = arith.constant 0 : i32
    %c0_i32_3 = arith.constant 0 : i32
    return %c0_i32, %c0_i32_0, %c0_i32_1, %c0_i32_2 : i32, i32, i32, i32
  }
  func.func @transform_12(%arg0: i32) -> (i32, i32, i32) {
    %c0_i32 = arith.constant 0 : i32
    %c0_i32_0 = arith.constant 0 : i32
    %c0_i32_1 = arith.constant 0 : i32
    %c0_i32_2 = arith.constant 0 : i32
    return %c0_i32, %c0_i32_0, %c0_i32_1 : i32, i32, i32
  }
  func.func @transform_13(%arg0: i32) -> (i32, i32, i32) {
    %c0_i32 = arith.constant 0 : i32
    %c0_i32_0 = arith.constant 0 : i32
    %c0_i32_1 = arith.constant 0 : i32
    %c0_i32_2 = arith.constant 0 : i32
    return %c0_i32, %c0_i32_0, %c0_i32_1 : i32, i32, i32
  }
  func.func @transform_14(%arg0: i32) -> (i32, i32, i32) {
    %c0_i32 = arith.constant 0 : i32
    %c0_i32_0 = arith.constant 0 : i32
    %c0_i32_1 = arith.constant 0 : i32
    %c0_i32_2 = arith.constant 0 : i32
    return %c0_i32, %c0_i32_0, %c0_i32_1 : i32, i32, i32
  }
  func.func @transform_15(%arg0: i32) -> (i32, i32, i32) {
    %c0_i32 = arith.constant 0 : i32
    %c0_i32_0 = arith.constant 0 : i32
    %c0_i32_1 = arith.constant 0 : i32
    %c0_i32_2 = arith.constant 0 : i32
    return %c0_i32, %c0_i32_0, %c0_i32_1 : i32, i32, i32
  }
  func.func @transform_16(%arg0: i32) -> (i32, i32, i32) {
    %c0_i32 = arith.constant 0 : i32
    %c0_i32_0 = arith.constant 0 : i32
    %c0_i32_1 = arith.constant 0 : i32
    %c0_i32_2 = arith.constant 0 : i32
    return %c0_i32, %c0_i32_0, %c0_i32_1 : i32, i32, i32
  }
  func.func @transform_17(%arg0: i32) -> (i32, i32, i32) {
    %c0_i32 = arith.constant 0 : i32
    %c0_i32_0 = arith.constant 0 : i32
    %c0_i32_1 = arith.constant 0 : i32
    %c0_i32_2 = arith.constant 0 : i32
    return %c0_i32, %c0_i32_0, %c0_i32_1 : i32, i32, i32
  }
  func.func @transform_18(%arg0: i32) -> (i32, i32, i32) {
    %c0_i32 = arith.constant 0 : i32
    %c0_i32_0 = arith.constant 0 : i32
    %c0_i32_1 = arith.constant 0 : i32
    %c0_i32_2 = arith.constant 0 : i32
    return %c0_i32, %c0_i32_0, %c0_i32_1 : i32, i32, i32
  }
  func.func @transform_19(%arg0: i32) -> (i32, i32, i32) {
    %c0_i32 = arith.constant 0 : i32
    %c0_i32_0 = arith.constant 0 : i32
    %c0_i32_1 = arith.constant 0 : i32
    %c0_i32_2 = arith.constant 0 : i32
    return %c0_i32, %c0_i32_0, %c0_i32_1 : i32, i32, i32
  }
  func.func @transform_20(%arg0: i32) -> (i32, i32, i32) {
    %c0_i32 = arith.constant 0 : i32
    %c0_i32_0 = arith.constant 0 : i32
    %c0_i32_1 = arith.constant 0 : i32
    %c0_i32_2 = arith.constant 0 : i32
    return %c0_i32, %c0_i32_0, %c0_i32_1 : i32, i32, i32
  }
  func.func @transform_21(%arg0: i32) -> (i32, i32) {
    %c0_i32 = arith.constant 0 : i32
    %c0_i32_0 = arith.constant 0 : i32
    %c0_i32_1 = arith.constant 0 : i32
    return %c0_i32, %c0_i32_0 : i32, i32
  }
  func.func @transform_22(%arg0: i32) -> (i32, i32) {
    %c0_i32 = arith.constant 0 : i32
    %c0_i32_0 = arith.constant 0 : i32
    %c0_i32_1 = arith.constant 0 : i32
    return %c0_i32, %c0_i32_0 : i32, i32
  }
  func.func @transform_23(%arg0: i32) -> (i32, i32, i32) {
    %c0_i32 = arith.constant 0 : i32
    %c0_i32_0 = arith.constant 0 : i32
    %c0_i32_1 = arith.constant 0 : i32
    return %arg0, %c0_i32, %c0_i32_0 : i32, i32, i32
  }
  func.func @transform_24(%arg0: i32) -> (i32, i32, i32) {
    %c0_i32 = arith.constant 0 : i32
    %c0_i32_0 = arith.constant 0 : i32
    %c0_i32_1 = arith.constant 0 : i32
    return %arg0, %c0_i32, %c0_i32_0 : i32, i32, i32
  }
}

</mosaic_0001>

<bundles_post_ra>
// kernel: tpu_custom_call.1
= control target key start
LH: loop header
LB: loop body
LE: loop exit
PB: predicated region body
PF: predicated region fallthrough
CT: control target
= control target key end

     0   :  { %s4404_s0 = inlined_call_operand.vmem [shape: s32[16,1], index: 0, kind: input, shape index: {}]   ;;  %s4405_s1 = inlined_call_operand.vmem [shape: f32[50,32], index: 1, kind: input, shape index: {}]   ;;  %s4406_s2 = inlined_call_operand.vmem [shape: f32[8,32], index: 2, kind: input, shape index: {}]   ;;  %s4407_s3 = inlined_call_operand.vmem [shape: f32[1,32], index: 3, kind: input, shape index: {}]   ;;  %s4408_s4 = inlined_call_operand.vmem [shape: f32[1,32], index: 4, kind: input, shape index: {}]   ;;  %s4409_s5 = inlined_call_operand.vmem [shape: f32[2,4,32,8], index: 5, kind: input, shape index: {}]   ;;  %s4410_s6 = inlined_call_operand.vmem [shape: f32[2,4,1,8], index: 6, kind: input, shape index: {}]   ;;  %s4411_s7 = inlined_call_operand.vmem [shape: f32[2,4,32,8], index: 7, kind: input, shape index: {}]   ;;  %s4412_s8 = inlined_call_operand.vmem [shape: f32[2,4,1,8], index: 8, kind: input, shape index: {}]   ;;  %s4413_s9 = inlined_call_operand.vmem [shape: f32[2,4,32,8], index: 9, kind: input, shape index: {}]   ;;  %s4414_s10 = inlined_call_operand.vmem [shape: f32[2,4,1,8], index: 10, kind: input, shape index: {}]   ;;  %s4415_s11 = inlined_call_operand.vmem [shape: f32[2,4,8,32], index: 11, kind: input, shape index: {}]   ;;  %s4416_s12 = inlined_call_operand.vmem [shape: f32[2,1,32], index: 12, kind: input, shape index: {}]   ;;  %s4417_s13 = inlined_call_operand.vmem [shape: f32[2,1,32], index: 13, kind: input, shape index: {}]   ;;  %s4418_s14 = inlined_call_operand.vmem [shape: f32[2,1,32], index: 14, kind: input, shape index: {}]   ;;  %s4419_s15 = inlined_call_operand.vmem [shape: f32[2,32,64], index: 15, kind: input, shape index: {}]   ;;  %s4420_s16 = inlined_call_operand.vmem [shape: f32[2,1,64], index: 16, kind: input, shape index: {}]   ;;  %s4421_s17 = inlined_call_operand.vmem [shape: f32[2,64,32], index: 17, kind: input, shape index: {}]   ;;  %s4422_s18 = inlined_call_operand.vmem [shape: f32[2,1,32], index: 18, kind: input, shape index: {}]   ;;  %s4423_s19 = inlined_call_operand.vmem [shape: f32[2,1,32], index: 19, kind: input, shape index: {}]   ;;  %s4424_s20 = inlined_call_operand.vmem [shape: f32[2,1,32], index: 20, kind: input, shape index: {}]   ;;  %s4425_s21 = inlined_call_operand.vmem [shape: f32[1,32], index: 21, kind: input, shape index: {}]   ;;  %s4426_s22 = inlined_call_operand.vmem [shape: f32[1,32], index: 22, kind: input, shape index: {}]   ;;  %s4427_s23 = inlined_call_operand.hbm [shape: f32[2,8,32], index: 23, kind: output, shape index: {0}]   ;;  %s4428_s24 = inlined_call_operand.hbm [shape: f32[2,8,32], index: 24, kind: output, shape index: {1}]  }
   0x1   :  { %4435 = sst [smem:[#allocation8_spill]] %s4404_s0 }
   0x2   :  { %4436 = sst [smem:[#allocation9_spill]] %s4405_s1 }
   0x3   :  { %4437 = sst [smem:[#allocation10_spill]] %s4406_s2 }
   0x4   :  { %4438 = sst [smem:[#allocation11_spill]] %s4407_s3 }
   0x5   :  { %4439 = sst [smem:[#allocation12_spill]] %s4408_s4 }
   0x6   :  { %4440 = sst [smem:[#allocation13_spill]] %s4409_s5 }
   0x7   :  { %4441 = sst [smem:[#allocation14_spill]] %s4410_s6 }
   0x8   :  { %4442 = sst [smem:[#allocation15_spill]] %s4411_s7 }
   0x9   :  { %4443 = sst [smem:[#allocation16_spill]] %s4412_s8 }
   0xa   :  { %30 = vsyncpa [#allocation3], 0  ;;  %s4444_s27 = sld [smem:[#allocation8_spill]]  ;;  %v3403_v2 = vmov 0   ;;  %vm108_vm1 = vcmask 1041408   ;;  %v3404_v4 = vmov 0.0  }
   0xb   :  { %s4445_s2 = sld [smem:[#allocation9_spill]]  ;;  %3217 = vset.pattern.permute.xlu0 %v3403_v2  ;;  %3218 = vset.pattern.permute.xlu1 %v3403_v2 }
  0x10   :  { %v78_v0 = vld [vmem:[%s4444_s27] sm:$0xff]  ;;  %v79_v8 = vld [vmem:[%s4444_s27 + $0x8] sm:$0xff] }
  0x11   :  { %v100_v1 = vld [vmem:[%s4445_s2 + $0x30] sm:$0x3]  ;;  %vm202_vm0 = vcmp.ne.s32.totalorder %v78_v0, 0  ;;  %v99_v3 = vld [vmem:[%s4445_s2 + $0x28] sm:$0xff]  ;;  %83 = vperm.xlu0 %3217, %v78_v0   ;;  %v98_v6 = vld [vmem:[%s4445_s2 + $0x20] sm:$0xff] }
  0x12   :  { %v2957_v5 = vsel %vm202_vm0, 1.0, %v3404_v4  ;;  %2954 = vmatpush.msk.msra.mxu0 %vm108_vm1, %v100_v1  ;;  %v97_v7 = vld [vmem:[%s4445_s2 + $0x18] sm:$0xff]  ;;  %v96_v9 = vld [vmem:[%s4445_s2 + $0x10] sm:$0xff]  ;;  %v95_v10 = vld [vmem:[%s4445_s2 + $0x8] sm:$0xff] }
  0x14   :  { %122 = vmatpush.msra.mxu0 %v99_v3 }
  0x16   :  { %123 = vmatpush.msra.mxu0 %v98_v6 }
  0x18   :  { %124 = vmatpush.msra.mxu0 %v97_v7 }
  0x19   :  { %86 = vperm.xlu0 %3217, %v79_v8  }
  0x1a   :  { %125 = vmatpush.msra.mxu0 %v96_v9 }
  0x1c   :  { %126 = vmatpush.msra.mxu0 %v95_v10 }
  0x1d   :  { %31 = vsyncpa [#allocation5], 0  ;;  %v94_v11 = vld [vmem:[%s4445_s2] sm:$0xff]  ;;  %v80_v12 = vlaneseq  ;;  %vm101_vm2 = vcmask 408576   ;;  %s4446_s7 = sld [smem:[#allocation10_spill]]  ;;  %vm140_vm5 = vcmask 261120  }
  0x1e   :  { %127 = vmatpush.msra.mxu0 %v94_v11  ;;  %v3405_v25 = vmov 32.0   ;;  %vm203_vm6 = vcmp.ne.s32.totalorder %v79_v8, 0  ;;  %s4447_s3 = sld [smem:[#allocation13_spill]]  ;;  %v293_v45 = vld [vmem:[%s4413_s9 + $0x18] sm:$0xff]  ;;  %v292_v48 = vld [vmem:[%s4413_s9 + $0x10] sm:$0xff]  ;;  %v291_v51 = vld [vmem:[%s4413_s9 + $0x8] sm:$0xff] }
  0x1f   :  { %v81_v13 = vand.u32 127, %v80_v12  ;;  %3261 = vrcp.f32 %v3405_v25  ;;  %v2958_v28 = vsel %vm203_vm6, 1.0, %v3404_v4  ;;  %s4448_s4 = sld [smem:[#allocation15_spill]]  ;;  %310 = vmatpush.msra.mxu3 %v293_v45  ;;  %v290_v54 = vld [vmem:[%s4413_s9] sm:$0xff]  ;;  %vm321_vm14 = vcmask 64512   ;;  %s3408_s30 = smov 8  }
  0x20   :  { %s4449_s2 = sld [smem:[#allocation11_spill]] }
  0x21   :  { %210 = vperm.xlu0 %3217, %v2957_v5   ;;  %311 = vmatpush.msra.mxu3 %v292_v48  ;;  %s4450_s8 = sld [smem:[#allocation12_spill]] }
  0x22   :  { %s4451_s26 = sld [smem:[#allocation16_spill]] }
  0x23   :  { %v135_v18 = vld [vmem:[%s4446_s7] sm:$0xff]  ;;  %312 = vmatpush.msra.mxu3 %v291_v51  ;;  %s4452_s0 = sld [smem:[#allocation14_spill]] }
  0x24   :  { %v225_v43 = vld [vmem:[%s4447_s3 + $0x18] sm:$0xff]  ;;  %v224_v46 = vld [vmem:[%s4447_s3 + $0x10] sm:$0xff]  ;;  %v223_v49 = vld [vmem:[%s4447_s3 + $0x8] sm:$0xff] }
  0x25   :  { %v3262_v26 = vpop.eup %3261  ;;  %v262_v44 = vld [vmem:[%s4448_s4 + $0x18] sm:$0xff]  ;;  %248 = vmatpush.msra.mxu1 %v225_v43  ;;  %v261_v47 = vld [vmem:[%s4448_s4 + $0x10] sm:$0xff]  ;;  %v260_v50 = vld [vmem:[%s4448_s4 + $0x8] sm:$0xff]  ;;  %313 = vmatpush.msra.mxu3 %v290_v54 }
  0x26   :  { %v148_v27 = vmul.f32 32.0, %v3262_v26  ;;  %vm152_vm7 = vweird.f32 %v3262_v26  ;;  %279 = vmatpush.msra.mxu2 %v262_v44  ;;  %v222_v52 = vld [vmem:[%s4447_s3] sm:$0xff]  ;;  %v2980_v44 = vld [vmem:[%s4448_s4 + $0x30] sm:$0xff]  ;;  %v2979_v45 = vld [vmem:[%s4448_s4 + $0x28] sm:$0xff] }
  0x27   :  { %249 = vmatpush.msra.mxu1 %v224_v46  ;;  %v259_v53 = vld [vmem:[%s4448_s4] sm:$0xff] }
  0x28   :  { %v149_v29 = vsub.f32 1.0, %v148_v27  ;;  %280 = vmatpush.msra.mxu2 %v261_v47  ;;  %v3219_v5 = vld [vmem:[%s4449_s2] ss:$0 sm:$0xff]  ;;  %s2935_s2 = sshll.u32 %s4428_s24, 4  ;;  %s2936_s2 = int_to_ptr.hbm [resolvable:$true] %s2935_s2 }
  0x29   :  { %250 = vmatpush.msra.mxu1 %v223_v49  ;;  %v3220_v8 = vld [vmem:[%s4450_s8] ss:$0 sm:$0xff]  ;;  %v3225_v49 = vld [vmem:[%s4451_s26 + $0x1] ss:$0 sm:$0xff] }
  0x2a   :  { %v150_v30 = vmul.f32 %v3262_v26, %v149_v29  ;;  %281 = vmatpush.msra.mxu2 %v260_v50  ;;  %v2978_v46 = vld [vmem:[%s4448_s4 + $0x20] sm:$0xff] }
  0x2b   :  { %251 = vmatpush.msra.mxu1 %v222_v52 }
  0x2c   :  { %v151_v31 = vadd.f32 %v3262_v26, %v150_v30  ;;  %282 = vmatpush.msra.mxu2 %v259_v53  ;;  %v2974_v30 = vld [vmem:[%s4447_s3 + $0x38] sm:$0xff] }
  0x2e   :  { %v3567_v32 = vsel %vm152_vm7, %v3262_v26, %v151_v31  ;;  %v3221_v26 = vld [vmem:[%s4452_s0] ss:$0 sm:$0xff] }
  0x83   :  { %v84_v14 = vpop.permute.xlu0 %83 }
  0x84   :  { %vm88_vm3 = vcmp.eq.s32.totalorder %v84_v14, %v81_v13 }
  0x85   :  { %v2952_v15 = vsel %vm88_vm3, 1.0, %v3404_v4 }
  0x86   :  { %2955 = vmatmul.msk.f32.vlgmr.msra.gmra.mxu0 %vm101_vm2, %v2952_v15 }
  0x8b   :  { %v87_v16 = vpop.permute.xlu0 %86 }
  0x8c   :  { %vm89_vm4 = vcmp.eq.s32.totalorder %v87_v16, %v81_v13 }
  0x8d   :  { %v2953_v17 = vsel %vm89_vm4, 1.0, %v3404_v4 }
  0x8e   :  { %2956 = vmatmul.msk.f32.gmra.mxu0 %vm101_vm2, %v2953_v17 }
  0x93   :  { %v211_v14 = vpop.permute.xlu0 %210 }
 0x103   :  { %v129_v19 = vpop.f32.mrf.mxu0 }
 0x104   :  { %v136_v20 = vadd.f32 %v135_v18, %v129_v19 }
 0x106   :  { %v141_v21 = vsel %vm140_vm5, %v136_v20, 0.0 }
 0x107   :  { %142 = vadd.xlane.f32.xlu1 %v141_v21 }
 0x10b   :  { %v132_v22 = vpop.f32.mrf.mxu0 }
 0x10c   :  { %v137_v23 = vadd.f32 %v135_v18, %v132_v22 }
 0x10e   :  { %v144_v24 = vsel %vm140_vm5, %v137_v23, 0.0 }
 0x10f   :  { %145 = vadd.xlane.f32.xlu1 %v144_v24  ;;  %v3223_v24 = vld [vmem:[%s4414_s10] ss:$0 sm:$0xff] }
 0x128   :  { %215 = vperm.xlu1 %3218, %v2958_v28  }
 0x17a   :  { %v143_v33 = vpop.xlane.xlu1 %142 }
 0x17b   :  { %v154_v34 = vmul.f32 %v3567_v32, %v143_v33 }
 0x17d   :  { %v156_v35 = vsub.f32 %v136_v20, %v154_v34  ;;  %v2973_v34 = vld [vmem:[%s4447_s3 + $0x30] sm:$0xff] }
 0x17f   :  { %v158_v36 = vmul.f32 %v156_v35, %v156_v35 }
 0x181   :  { %v160_v37 = vsel %vm140_vm5, %v158_v36, 0.0 }
 0x182   :  { %161 = vadd.xlane.f32.xlu2 %v160_v37  ;;  %v146_v38 = vpop.xlane.xlu1 %145  ;;  %v2971_v37 = vld [vmem:[%s4447_s3 + $0x20] sm:$0xff] }
 0x183   :  { %v155_v39 = vmul.f32 %v3567_v32, %v146_v38 }
 0x185   :  { %v3572_v40 = vsub.f32 %v137_v23, %v155_v39  ;;  %v3222_v23 = vld [vmem:[%s4451_s26] ss:$0 sm:$0xff] }
 0x187   :  { %v159_v41 = vmul.f32 %v3572_v40, %v3572_v40 }
 0x189   :  { %v163_v42 = vsel %vm140_vm5, %v159_v41, 0.0  ;;  %v2981_v41 = vld [vmem:[%s4448_s4 + $0x38] sm:$0xff] }
 0x18a   :  { %164 = vadd.xlane.f32.xlu2 %v163_v42 }
 0x19a   :  { %v216_v20 = vpop.permute.xlu1 %215 }
 0x1f5   :  { %v162_v55 = vpop.xlane.xlu2 %161 }
 0x1f6   :  { %v166_v56 = vmul.f32 %v162_v55, %v3567_v32 }
 0x1f8   :  { %v168_v57 = vadd.f32 1e-05, %v166_v56 }
 0x1fa   :  { %3263 = vrsqrt.f32 %v168_v57  ;;  %vm176_vm9 = vweird.f32 %v168_v57 }
 0x1fd   :  { %v165_v58 = vpop.xlane.xlu2 %164 }
 0x1fe   :  { %v167_v59 = vmul.f32 %v165_v58, %v3567_v32 }
 0x200   :  { %v3264_v60 = vpop.eup %3263  ;;  %v169_v61 = vadd.f32 1e-05, %v167_v59 }
 0x201   :  { %v171_v62 = vmul.f32 %v3264_v60, %v168_v57  ;;  %vm177_vm8 = vweird.f32 %v3264_v60 }
 0x202   :  { %3265 = vrsqrt.f32 %v169_v61  ;;  %vm178_vm10 = vmor %vm176_vm9, %vm177_vm8  ;;  %vm186_vm12 = vweird.f32 %v169_v61 }
 0x203   :  { %v172_v63 = vmul.f32 %v3264_v60, %v171_v62 }
 0x205   :  { %v173_v0 = vmul.f32 0.5, %v172_v63 }
 0x207   :  { %v174_v1 = vsub.f32 1.5, %v173_v0  ;;  %v2988_v0 = vld [vmem:[%s4413_s9 + $0x38] sm:$0xff] }
 0x208   :  { %v3266_v2 = vpop.eup %3265 }
 0x209   :  { %v175_v3 = vmul.f32 %v3264_v60, %v174_v1  ;;  %v181_v4 = vmul.f32 %v3266_v2, %v169_v61  ;;  %vm187_vm11 = vweird.f32 %v3266_v2  ;;  %v2987_v1 = vld [vmem:[%s4413_s9 + $0x30] sm:$0xff] }
 0x20a   :  { %vm188_vm13 = vmor %vm186_vm12, %vm187_vm11 }
 0x20b   :  { %v179_v6 = vsel %vm178_vm10, %v3264_v60, %v175_v3  ;;  %v182_v7 = vmul.f32 %v3266_v2, %v181_v4  ;;  %v2985_v4 = vld [vmem:[%s4413_s9 + $0x20] sm:$0xff] }
 0x20c   :  { %v190_v9 = vmul.f32 %v179_v6, %v156_v35  ;;  %v2972_v35 = vld [vmem:[%s4447_s3 + $0x28] sm:$0xff] }
 0x20d   :  { %v183_v10 = vmul.f32 0.5, %v182_v7 }
 0x20e   :  { %v195_v11 = vmul.f32 %v3219_v5, %v190_v9 }
 0x20f   :  { %v184_v12 = vsub.f32 1.5, %v183_v10 }
 0x210   :  { %v200_v13 = vadd.f32 %v3220_v8, %v195_v11 }
 0x211   :  { %v185_v15 = vmul.f32 %v3266_v2, %v184_v12 }
 0x212   :  { %v3621_v16 = vmul.f32 %v211_v14, %v200_v13 }
 0x213   :  { %v189_v17 = vsel %vm188_vm13, %v3266_v2, %v185_v15  ;;  %v2986_v2 = vld [vmem:[%s4413_s9 + $0x28] sm:$0xff] }
 0x214   :  { %220 = vst.msk [vmem:[#allocation4] sm:$0xff] %vm140_vm5, %v3621_v16  ;;  %2959 = vmatmul.msk.f32.vlgmr.msra.gmra.mxu1 %vm140_vm5, %v3621_v16  ;;  %2961 = vmatmul.msk.f32.vlgmr.msra.gmra.mxu2 %vm140_vm5, %v3621_v16  ;;  %v191_v18 = vmul.f32 %v189_v17, %v3572_v40 }
 0x215   :  { %2963 = vmatmul.msk.f32.vlgmr.msra.gmra.mxu3 %vm140_vm5, %v3621_v16 }
 0x216   :  { %v196_v19 = vmul.f32 %v3219_v5, %v191_v18 }
 0x218   :  { %v201_v21 = vadd.f32 %v3220_v8, %v196_v19 }
 0x21a   :  { %v3632_v22 = vmul.f32 %v216_v20, %v201_v21 }
 0x21c   :  { %221 = vst.msk [vmem:[#allocation4 + $0x8] sm:$0xff] %vm140_vm5, %v3632_v22  ;;  %2960 = vmatmul.msk.f32.gmra.mxu1 %vm140_vm5, %v3632_v22  ;;  %2962 = vmatmul.msk.f32.gmra.mxu2 %vm140_vm5, %v3632_v22 }
 0x21d   :  { %2964 = vmatmul.msk.f32.gmra.mxu3 %vm140_vm5, %v3632_v22 }
 0x291   :  { %v253_v25 = vpop.f32.mrf.mxu1 }
 0x292   :  { %v254_v33 = vadd.f32 %v3221_v26, %v253_v25 }
 0x297   :  { %v284_v27 = vpop.f32.mrf.mxu2 }
 0x298   :  { %v285_v28 = vadd.f32 %v3222_v23, %v284_v27  ;;  %v315_v29 = vpop.f32.mrf.mxu3 }
 0x299   :  { %v316_v31 = vadd.f32 %v3223_v24, %v315_v29  ;;  %v256_v38 = vpop.f32.mrf.mxu1 }
 0x29a   :  { %2965 = vmatpush.xpose.msk.msrb.mxu1 %vm321_vm14, %v285_v28  ;;  %v257_v43 = vadd.f32 %v3221_v26, %v256_v38  ;;  %v3224_v28 = vld [vmem:[%s4452_s0 + $0x1] ss:$0 sm:$0xff] }
 0x29b   :  { %440 = vmatpush.msrb.mxu3 %v316_v31  ;;  %v468_v38 = vld [vmem:[%s4415_s11] sm:$0xff] }
 0x29d   :  { %2966 = vmatmul.msk.f32.vlgmr.msrb.gmra.mxu1 %vm321_vm14, %v254_v33  ;;  %557 = vmatpush.msra.mxu3 %v2988_v0  ;;  %v3006_v0 = vld [vmem:[%s4447_s3 + $0x58] sm:$0xff] }
 0x29e   :  { %491 = vmatpush.msra.mxu1 %v2974_v30 }
 0x29f   :  { %v287_v36 = vpop.f32.mrf.mxu2  ;;  %558 = vmatpush.msra.mxu3 %v2987_v1  ;;  %v3005_v1 = vld [vmem:[%s4447_s3 + $0x50] sm:$0xff] }
 0x2a0   :  { %492 = vmatpush.msra.mxu1 %v2973_v34  ;;  %v288_v39 = vadd.f32 %v3222_v23, %v287_v36  ;;  %v318_v40 = vpop.f32.mrf.mxu3 }
 0x2a1   :  { %v319_v42 = vadd.f32 %v3223_v24, %v318_v40  ;;  %559 = vmatpush.msra.mxu3 %v2986_v2  ;;  %v3004_v2 = vld [vmem:[%s4447_s3 + $0x48] sm:$0xff] }
 0x2a2   :  { %493 = vmatpush.msra.mxu1 %v2972_v35  ;;  %2967 = vmatpush.xpose.msk.msrb.mxu2 %vm321_vm14, %v288_v39 }
 0x2a3   :  { %463 = vmatpush.msrb.mxu0 %v319_v42  ;;  %560 = vmatpush.msra.mxu3 %v2985_v4  ;;  %v3003_v4 = vld [vmem:[%s4447_s3 + $0x40] sm:$0xff] }
 0x2a4   :  { %494 = vmatpush.msra.mxu1 %v2971_v37 }
 0x2a5   :  { %2968 = vmatmul.msk.f32.vlgmr.msrb.gmra.mxu2 %vm321_vm14, %v257_v43  ;;  %2976 = vmatmul.msk.f32.vlgmr.msra.gmra.mxu1 %vm140_vm5, %v3621_v16 }
 0x2a6   :  { %524 = vmatpush.msra.mxu2 %v2981_v41 }
 0x2a8   :  { %525 = vmatpush.msra.mxu2 %v2980_v44 }
 0x2aa   :  { %526 = vmatpush.msra.mxu2 %v2979_v45  ;;  %v3226_v45 = vld [vmem:[%s4414_s10 + $0x1] ss:$0 sm:$0xff] }
 0x2ac   :  { %527 = vmatpush.msra.mxu2 %v2978_v46 }
 0x2ad   :  { %2977 = vmatmul.msk.f32.gmra.mxu1 %vm140_vm5, %v3632_v22  ;;  %2983 = vmatmul.msk.f32.vlgmr.msra.gmra.mxu2 %vm140_vm5, %v3621_v16 }
 0x2b5   :  { %2984 = vmatmul.msk.f32.gmra.mxu2 %vm140_vm5, %v3632_v22 }
 0x31a   :  { %v345_v50 = vpop.f32.mrf.mxu1 }
 0x31b   :  { %v374_v53 = vsel %vm321_vm14, %v345_v50, -inf }
 0x322   :  { %v496_v27 = vpop.f32.mrf.mxu1 }
 0x323   :  { %v497_v34 = vadd.f32 %v3224_v28, %v496_v27 }
 0x328   :  { %v371_v47 = vpop.f32.mrf.mxu2 }
 0x329   :  { %v377_v48 = vsel %vm321_vm14, %v371_v47, -inf }
 0x32a   :  { %378 = vmax.xlane.f32.xlu2 %v377_v48  ;;  %v499_v36 = vpop.f32.mrf.mxu1 }
 0x32b   :  { %v500_v37 = vadd.f32 %v3224_v28, %v499_v36 }
 0x330   :  { %v529_v51 = vpop.f32.mrf.mxu2 }
 0x331   :  { %v530_v52 = vadd.f32 %v3225_v49, %v529_v51 }
 0x332   :  { %375 = vmax.xlane.f32.xlu2 %v374_v53 }
 0x333   :  { %2992 = vmatpush.xpose.msk.msra.mxu0 %vm321_vm14, %v530_v52 }
 0x338   :  { %v532_v15 = vpop.f32.mrf.mxu2 }
 0x339   :  { %v533_v23 = vadd.f32 %v3225_v49, %v532_v15 }
 0x39d   :  { %v379_v54 = vpop.xlane.xlu2 %378 }
 0x39e   :  { %v381_v55 = vsub.f32 %v371_v47, %v379_v54 }
 0x3a0   :  { %v384_v56 = vmul.f32 1.442695, %v381_v55 }
 0x3a2   :  { %3267 = vpow2.f32 %v384_v56 }
 0x3a5   :  { %v376_v57 = vpop.xlane.xlu2 %375 }
 0x3a6   :  { %v380_v58 = vsub.f32 %v345_v50, %v376_v57 }
 0x3a8   :  { %v3268_v59 = vpop.eup %3267  ;;  %v382_v60 = vmul.f32 1.442695, %v380_v58 }
 0x3a9   :  { %v389_v61 = vsel %vm321_vm14, %v3268_v59, 0.0 }
 0x3aa   :  { %3269 = vpow2.f32 %v382_v60  ;;  %390 = vadd.xlane.f32.xlu0 %v389_v61  ;;  %v3013_v60 = vld [vmem:[%s4448_s4 + $0x58] sm:$0xff]  ;;  %v3012_v61 = vld [vmem:[%s4448_s4 + $0x50] sm:$0xff] }
 0x3b0   :  { %v3270_v62 = vpop.eup %3269 }
 0x3b1   :  { %v386_v63 = vsel %vm321_vm14, %v3270_v62, 0.0 }
 0x3b2   :  { %387 = vadd.xlane.f32.xlu2 %v386_v63  ;;  %v3010_v63 = vld [vmem:[%s4448_s4 + $0x40] sm:$0xff] }
 0x41d   :  { %v391_v3 = vpop.xlane.xlu0 %390 }
 0x41e   :  { %3271 = vrcp.f32 %v391_v3  ;;  %v418_v9 = vand.u32 2147483648, %v391_v3  ;;  %v416_v11 = vand.u32 2147483647, %v391_v3  ;;  %vm412_vm0 = vweird.f32 %v391_v3 }
 0x420   :  { %v419_v14 = vor.u32 1.1754944e-38, %v418_v9  ;;  %vm417_vm2 = vcmp.eq.f32.partialorder %v416_v11, 8.507059e+37 }
 0x424   :  { %v3272_v5 = vpop.eup %3271 }
 0x425   :  { %v408_v6 = vmul.f32 %v3272_v5, %v391_v3  ;;  %v388_v7 = vpop.xlane.xlu2 %387  ;;  %vm413_vm15 = vweird.f32 %v3272_v5 }
 0x426   :  { %3273 = vrcp.f32 %v388_v7  ;;  %vm414_vm1 = vmor %vm412_vm0, %vm413_vm15  ;;  %v403_v24 = vand.u32 2147483648, %v388_v7  ;;  %v401_v26 = vand.u32 2147483647, %v388_v7  ;;  %vm397_vm4 = vweird.f32 %v388_v7 }
 0x427   :  { %v409_v8 = vsub.f32 1.0, %v408_v6 }
 0x428   :  { %v404_v30 = vor.u32 1.1754944e-38, %v403_v24  ;;  %vm402_vm7 = vcmp.eq.f32.partialorder %v401_v26, 8.507059e+37 }
 0x429   :  { %v410_v10 = vmul.f32 %v3272_v5, %v409_v8 }
 0x42b   :  { %v411_v12 = vadd.f32 %v3272_v5, %v410_v10 }
 0x42c   :  { %v3274_v13 = vpop.eup %3273 }
 0x42d   :  { %v393_v17 = vmul.f32 %v3274_v13, %v388_v7  ;;  %v415_v18 = vsel %vm414_vm1, %v3272_v5, %v411_v12  ;;  %vm398_vm3 = vweird.f32 %v3274_v13 }
 0x42e   :  { %v420_v19 = vsel %vm417_vm2, %v419_v14, %v415_v18  ;;  %vm399_vm6 = vmor %vm397_vm4, %vm398_vm3 }
 0x42f   :  { %v394_v20 = vsub.f32 1.0, %v393_v17  ;;  %v421_v21 = vmul.f32 %v3268_v59, %v420_v19 }
 0x431   :  { %v395_v25 = vmul.f32 %v3274_v13, %v394_v20  ;;  %2970 = vmatmul.msk.f32.vlgmr.msrb.gmra.mxu0 %vm321_vm14, %v421_v21 }
 0x432   :  { %2994 = vmatpush.xpose.msk.msrb.mxu0 %vm321_vm14, %v533_v23 }
 0x433   :  { %v396_v29 = vadd.f32 %v3274_v13, %v395_v25 }
 0x435   :  { %v400_v31 = vsel %vm399_vm6, %v3274_v13, %v396_v29 }
 0x436   :  { %v405_v33 = vsel %vm402_vm7, %v404_v30, %v400_v31  ;;  %v2998_v30 = vld [vmem:[%s4415_s11 + $0x8] sm:$0xff]  ;;  %v3020_v31 = vld [vmem:[%s4413_s9 + $0x58] sm:$0xff] }
 0x437   :  { %v406_v35 = vmul.f32 %v3270_v62, %v405_v33  ;;  %v3011_v62 = vld [vmem:[%s4448_s4 + $0x48] sm:$0xff]  ;;  %v3019_v33 = vld [vmem:[%s4413_s9 + $0x50] sm:$0xff] }
 0x439   :  { %2969 = vmatmul.msk.f32.vlgmr.msrb.gmra.mxu3 %vm321_vm14, %v406_v35  ;;  %2993 = vmatmul.msk.f32.vlgmr.msra.gmra.mxu0 %vm321_vm14, %v497_v34  ;;  %v3018_v34 = vld [vmem:[%s4413_s9 + $0x48] sm:$0xff]  ;;  %v3017_v35 = vld [vmem:[%s4413_s9 + $0x40] sm:$0xff] }
 0x43a   :  { %766 = vmatpush.msra.mxu0 %v468_v38  ;;  %737 = vmatpush.msrb.mxu3 %v2998_v30 }
 0x441   :  { %2990 = vmatmul.msk.f32.vlgmr.msra.gmra.mxu3 %vm140_vm5, %v3621_v16  ;;  %2995 = vmatmul.msk.f32.vlgmr.msrb.gmra.mxu0 %vm321_vm14, %v500_v37  ;;  %v3043_v37 = vld [vmem:[%s4448_s4 + $0x78] sm:$0xff] }
 0x442   :  { %862 = vmatpush.msra.mxu3 %v3020_v31 }
 0x444   :  { %863 = vmatpush.msra.mxu3 %v3019_v33 }
 0x446   :  { %864 = vmatpush.msra.mxu3 %v3018_v34 }
 0x448   :  { %865 = vmatpush.msra.mxu3 %v3017_v35 }
 0x449   :  { %2991 = vmatmul.msk.f32.gmra.mxu3 %vm140_vm5, %v3632_v22 }
 0x4ae   :  { %v465_v39 = vpop.f32.mrf.mxu0 }
 0x4b6   :  { %v591_v40 = vpop.f32.mrf.mxu0 }
 0x4b7   :  { %v620_v41 = vsel %vm321_vm14, %v591_v40, -inf }
 0x4b8   :  { %621 = vmax.xlane.f32.xlu1 %v620_v41  ;;  %v3041_v41 = vld [vmem:[%s4448_s4 + $0x68] sm:$0xff] }
 0x4bc   :  { %v442_v42 = vpop.f32.mrf.mxu3 }
 0x4bd   :  { %3001 = vmatmul.msk.f32.vlgmr.msra.gmra.mxu0 %vm321_vm14, %v442_v42  ;;  %v3228_v42 = vld [vmem:[%s4452_s0 + $0x2] ss:$0 sm:$0xff] }
 0x4be   :  { %v617_v43 = vpop.f32.mrf.mxu0 }
 0x4bf   :  { %v623_v44 = vsel %vm321_vm14, %v617_v43, -inf }
 0x4c0   :  { %624 = vmax.xlane.f32.xlu2 %v623_v44 }
 0x4c4   :  { %v562_v46 = vpop.f32.mrf.mxu3 }
 0x4c5   :  { %v563_v47 = vadd.f32 %v3226_v45, %v562_v46  ;;  %3002 = vmatmul.msk.f32.gmra.mxu0 %vm321_vm14, %v465_v39  ;;  %v3042_v39 = vld [vmem:[%s4448_s4 + $0x70] sm:$0xff] }
 0x4c7   :  { %686 = vmatpush.msrb.mxu1 %v563_v47 }
 0x4c9   :  { %796 = vmatpush.msra.mxu1 %v3006_v0 }
 0x4cb   :  { %797 = vmatpush.msra.mxu1 %v3005_v1 }
 0x4cc   :  { %v565_v48 = vpop.f32.mrf.mxu3 }
 0x4cd   :  { %v566_v49 = vadd.f32 %v3226_v45, %v565_v48  ;;  %798 = vmatpush.msra.mxu1 %v3004_v2 }
 0x4cf   :  { %709 = vmatpush.msrb.mxu2 %v566_v49  ;;  %799 = vmatpush.msra.mxu1 %v3003_v4 }
 0x4d1   :  { %829 = vmatpush.msra.mxu2 %v3013_v60 }
 0x4d3   :  { %830 = vmatpush.msra.mxu2 %v3012_v61  ;;  %v3229_v61 = vld [vmem:[%s4414_s10 + $0x2] ss:$0 sm:$0xff] }
 0x4d5   :  { %831 = vmatpush.msra.mxu2 %v3011_v62 }
 0x4d7   :  { %832 = vmatpush.msra.mxu2 %v3010_v63 }
 0x52b   :  { %v622_v50 = vpop.xlane.xlu1 %621 }
 0x52c   :  { %v626_v53 = vsub.f32 %v591_v40, %v622_v50  ;;  %v3227_v40 = vld [vmem:[%s4451_s26 + $0x2] ss:$0 sm:$0xff] }
 0x52e   :  { %v628_v55 = vmul.f32 1.442695, %v626_v53 }
 0x533   :  { %v625_v51 = vpop.xlane.xlu2 %624 }
 0x534   :  { %v627_v52 = vsub.f32 %v617_v43, %v625_v51  ;;  %v3040_v43 = vld [vmem:[%s4448_s4 + $0x60] sm:$0xff] }
 0x536   :  { %v630_v54 = vmul.f32 1.442695, %v627_v52 }
 0x538   :  { %3275 = vpow2.f32 %v630_v54 }
 0x539   :  { %3277 = vpow2.f32 %v628_v55  ;;  %v3030_v55 = vld [vmem:[%s4415_s11 + $0x10] sm:$0xff] }
 0x53a   :  { %v3812_v52 = vpop.f32.mrf.mxu0 }
 0x53e   :  { %v3276_v56 = vpop.eup %3275 }
 0x53f   :  { %v635_v57 = vsel %vm321_vm14, %v3276_v56, 0.0  ;;  %v3278_v58 = vpop.eup %3277 }
 0x540   :  { %636 = vadd.xlane.f32.xlu2 %v635_v57  ;;  %v632_v59 = vsel %vm321_vm14, %v3278_v58, 0.0 }
 0x542   :  { %v771_v53 = vpop.f32.mrf.mxu0 }
 0x548   :  { %633 = vadd.xlane.f32.xlu2 %v632_v59 }
 0x5b3   :  { %v637_v3 = vpop.xlane.xlu2 %636 }
 0x5b4   :  { %3279 = vrcp.f32 %v637_v3  ;;  %v664_v9 = vand.u32 2147483648, %v637_v3  ;;  %v662_v11 = vand.u32 2147483647, %v637_v3  ;;  %vm658_vm9 = vweird.f32 %v637_v3 }
 0x5b6   :  { %v665_v14 = vor.u32 1.1754944e-38, %v664_v9  ;;  %vm663_vm11 = vcmp.eq.f32.partialorder %v662_v11, 8.507059e+37 }
 0x5ba   :  { %v3280_v5 = vpop.eup %3279 }
 0x5bb   :  { %v654_v6 = vmul.f32 %v3280_v5, %v637_v3  ;;  %v634_v7 = vpop.xlane.xlu2 %633  ;;  %vm659_vm8 = vweird.f32 %v3280_v5  ;;  %v3230_v3 = vld [vmem:[%s4451_s26 + $0x3] ss:$0 sm:$0xff] }
 0x5bc   :  { %3281 = vrcp.f32 %v634_v7  ;;  %vm660_vm10 = vmor %vm658_vm9, %vm659_vm8  ;;  %v649_v21 = vand.u32 2147483648, %v634_v7  ;;  %v647_v24 = vand.u32 2147483647, %v634_v7  ;;  %vm643_vm13 = vweird.f32 %v634_v7 }
 0x5bd   :  { %v655_v8 = vsub.f32 1.0, %v654_v6 }
 0x5be   :  { %v650_v26 = vor.u32 1.1754944e-38, %v649_v21  ;;  %vm648_vm0 = vcmp.eq.f32.partialorder %v647_v24, 8.507059e+37  ;;  %v3050_v21 = vld [vmem:[%s4413_s9 + $0x78] sm:$0xff]  ;;  %v3048_v24 = vld [vmem:[%s4413_s9 + $0x68] sm:$0xff] }
 0x5bf   :  { %v656_v10 = vmul.f32 %v3280_v5, %v655_v8 }
 0x5c1   :  { %v657_v12 = vadd.f32 %v3280_v5, %v656_v10 }
 0x5c2   :  { %v3282_v13 = vpop.eup %3281 }
 0x5c3   :  { %v661_v15 = vsel %vm660_vm10, %v3280_v5, %v657_v12  ;;  %v639_v17 = vmul.f32 %v3282_v13, %v634_v7  ;;  %vm644_vm12 = vweird.f32 %v3282_v13 }
 0x5c4   :  { %v666_v18 = vsel %vm663_vm11, %v665_v14, %v661_v15  ;;  %vm645_vm15 = vmor %vm643_vm13, %vm644_vm12 }
 0x5c5   :  { %v640_v19 = vsub.f32 1.0, %v639_v17  ;;  %v667_v20 = vmul.f32 %v3276_v56, %v666_v18  ;;  %v3036_v17 = vld [vmem:[%s4447_s3 + $0x78] sm:$0xff]  ;;  %v3035_v18 = vld [vmem:[%s4447_s3 + $0x70] sm:$0xff] }
 0x5c7   :  { %v641_v23 = vmul.f32 %v3282_v13, %v640_v19  ;;  %2997 = vmatmul.msk.f32.vlgmr.msrb.gmra.mxu2 %vm321_vm14, %v667_v20  ;;  %v3034_v19 = vld [vmem:[%s4447_s3 + $0x68] sm:$0xff]  ;;  %v3033_v20 = vld [vmem:[%s4447_s3 + $0x60] sm:$0xff] }
 0x5c9   :  { %v642_v25 = vadd.f32 %v3282_v13, %v641_v23  ;;  %v3049_v23 = vld [vmem:[%s4413_s9 + $0x70] sm:$0xff] }
 0x5cb   :  { %v646_v27 = vsel %vm645_vm15, %v3282_v13, %v642_v25 }
 0x5cc   :  { %v651_v28 = vsel %vm648_vm0, %v650_v26, %v646_v27  ;;  %v3047_v26 = vld [vmem:[%s4413_s9 + $0x60] sm:$0xff] }
 0x5cd   :  { %v652_v29 = vmul.f32 %v3278_v58, %v651_v28 }
 0x5cf   :  { %2996 = vmatmul.msk.f32.vlgmr.msrb.gmra.mxu1 %vm321_vm14, %v652_v29  ;;  %3015 = vmatmul.msk.f32.vlgmr.msra.gmra.mxu2 %vm140_vm5, %v3621_v16 }
 0x5d7   :  { %3008 = vmatmul.msk.f32.vlgmr.msra.gmra.mxu1 %vm140_vm5, %v3621_v16  ;;  %3016 = vmatmul.msk.f32.gmra.mxu2 %vm140_vm5, %v3632_v22 }
 0x5df   :  { %3009 = vmatmul.msk.f32.gmra.mxu1 %vm140_vm5, %v3632_v22 }
 0x64a   :  { %v711_v36 = vpop.f32.mrf.mxu2 }
 0x64c   :  { %v688_v38 = vpop.f32.mrf.mxu1 }
 0x64d   :  { %2999 = vmatmul.msk.f32.vlgmr.msrb.gmra.mxu3 %vm321_vm14, %v688_v38 }
 0x64e   :  { %1107 = vmatpush.msrb.mxu3 %v3043_v37 }
 0x650   :  { %1108 = vmatpush.msrb.mxu3 %v3042_v39 }
 0x652   :  { %v834_v44 = vpop.f32.mrf.mxu2  ;;  %1109 = vmatpush.msrb.mxu3 %v3041_v41 }
 0x653   :  { %v835_v45 = vadd.f32 %v3227_v40, %v834_v44 }
 0x654   :  { %v801_v46 = vpop.f32.mrf.mxu1  ;;  %1110 = vmatpush.msrb.mxu3 %v3040_v43 }
 0x655   :  { %v802_v47 = vadd.f32 %v3228_v42, %v801_v46  ;;  %3000 = vmatmul.msk.f32.gmra.mxu3 %vm321_vm14, %v711_v36  ;;  %3024 = vmatpush.xpose.msk.msrb.mxu0 %vm321_vm14, %v835_v45 }
 0x658   :  { %3025 = vmatmul.msk.f32.vlgmr.msrb.gmra.mxu0 %vm321_vm14, %v802_v47 }
 0x65a   :  { %v837_v48 = vpop.f32.mrf.mxu2 }
 0x65b   :  { %v838_v49 = vadd.f32 %v3227_v40, %v837_v48 }
 0x65c   :  { %v804_v50 = vpop.f32.mrf.mxu1 }
 0x65d   :  { %v805_v51 = vadd.f32 %v3228_v42, %v804_v50  ;;  %3022 = vmatmul.msk.f32.vlgmr.msra.gmra.mxu3 %vm140_vm5, %v3621_v16  ;;  %3026 = vmatpush.xpose.msk.msrb.mxu1 %vm321_vm14, %v838_v49 }
 0x660   :  { %3027 = vmatmul.msk.f32.vlgmr.msrb.gmra.mxu1 %vm321_vm14, %v805_v51 }
 0x661   :  { %1042 = vmatpush.msra.mxu1 %v3030_v55 }
 0x665   :  { %3023 = vmatmul.msk.f32.gmra.mxu3 %vm140_vm5, %v3632_v22 }
 0x66d   :  { %3045 = vmatmul.msk.f32.vlgmr.msrb.gmra.mxu3 %vm140_vm5, %v3621_v16 }
 0x675   :  { %3046 = vmatmul.msk.f32.gmra.mxu3 %vm140_vm5, %v3632_v22 }
 0x6d0   :  { %v3814_v54 = vpop.f32.mrf.mxu3 }
 0x6d5   :  { %v896_v56 = vpop.f32.mrf.mxu0 }
 0x6d6   :  { %v925_v57 = vsel %vm321_vm14, %v896_v56, -inf }
 0x6d7   :  { %926 = vmax.xlane.f32.xlu2 %v925_v57  ;;  %v3232_v57 = vld [vmem:[%s4414_s10 + $0x3] ss:$0 sm:$0xff] }
 0x6d8   :  { %v742_v58 = vpop.f32.mrf.mxu3 }
 0x6d9   :  { %v3820_v59 = vadd.f32 %v771_v53, %v742_v58 }
 0x6dd   :  { %v922_v60 = vpop.f32.mrf.mxu1 }
 0x6de   :  { %v928_v62 = vsel %vm321_vm14, %v922_v60, -inf }
 0x6df   :  { %929 = vmax.xlane.f32.xlu0 %v928_v62 }
 0x6e0   :  { %v867_v63 = vpop.f32.mrf.mxu3 }
 0x6e1   :  { %v868_v0 = vadd.f32 %v3229_v61, %v867_v63 }
 0x6e3   :  { %991 = vmatpush.msrb.mxu2 %v868_v0 }
 0x6e5   :  { %1074 = vmatpush.msra.mxu2 %v3036_v17 }
 0x6e7   :  { %1075 = vmatpush.msra.mxu2 %v3035_v18 }
 0x6e8   :  { %v870_v1 = vpop.f32.mrf.mxu3 }
 0x6e9   :  { %v871_v2 = vadd.f32 %v3229_v61, %v870_v1  ;;  %1076 = vmatpush.msra.mxu2 %v3034_v19  ;;  %v3231_v61 = vld [vmem:[%s4452_s0 + $0x3] ss:$0 sm:$0xff] }
 0x6eb   :  { %1014 = vmatpush.msra.mxu0 %v871_v2  ;;  %1077 = vmatpush.msra.mxu2 %v3033_v20 }
 0x6ed   :  { %1140 = vmatpush.msrb.mxu0 %v3050_v21 }
 0x6ef   :  { %1141 = vmatpush.msrb.mxu0 %v3049_v23 }
 0x6f0   :  { %v1112_v4 = vpop.f32.mrf.mxu3 }
 0x6f1   :  { %v1113_v5 = vadd.f32 %v3230_v3, %v1112_v4  ;;  %1142 = vmatpush.msrb.mxu0 %v3048_v24  ;;  %v769_v4 = vadd.f32 %v3812_v52, %v3814_v54 }
 0x6f3   :  { %3054 = vmatpush.xpose.msk.msrb.mxu1 %vm321_vm14, %v1113_v5  ;;  %1143 = vmatpush.msrb.mxu0 %v3047_v26 }
 0x6f8   :  { %v1115_v38 = vpop.f32.mrf.mxu3 }
 0x6f9   :  { %v1116_v44 = vadd.f32 %v3230_v3, %v1115_v38 }
 0x74a   :  { %v927_v6 = vpop.xlane.xlu2 %926 }
 0x74b   :  { %v931_v7 = vsub.f32 %v896_v56, %v927_v6 }
 0x74d   :  { %v933_v8 = vmul.f32 1.442695, %v931_v7 }
 0x74f   :  { %3283 = vpow2.f32 %v933_v8 }
 0x752   :  { %v930_v9 = vpop.xlane.xlu0 %929 }
 0x753   :  { %v932_v10 = vsub.f32 %v922_v60, %v930_v9 }
 0x755   :  { %v3284_v11 = vpop.eup %3283  ;;  %v935_v12 = vmul.f32 1.442695, %v932_v10 }
 0x756   :  { %v937_v13 = vsel %vm321_vm14, %v3284_v11, 0.0 }
 0x757   :  { %3285 = vpow2.f32 %v935_v12  ;;  %938 = vadd.xlane.f32.xlu2 %v937_v13 }
 0x75d   :  { %v3286_v14 = vpop.eup %3285 }
 0x75e   :  { %v940_v15 = vsel %vm321_vm14, %v3286_v14, 0.0 }
 0x75f   :  { %941 = vadd.xlane.f32.xlu0 %v940_v15 }
 0x7ca   :  { %v939_v25 = vpop.xlane.xlu2 %938 }
 0x7cb   :  { %3287 = vrcp.f32 %v939_v25  ;;  %v954_v31 = vand.u32 2147483648, %v939_v25  ;;  %v952_v34 = vand.u32 2147483647, %v939_v25  ;;  %vm948_vm2 = vweird.f32 %v939_v25 }
 0x7cd   :  { %v955_v37 = vor.u32 1.1754944e-38, %v954_v31  ;;  %vm953_vm4 = vcmp.eq.f32.partialorder %v952_v34, 8.507059e+37 }
 0x7d1   :  { %v3288_v27 = vpop.eup %3287 }
 0x7d2   :  { %v944_v28 = vmul.f32 %v3288_v27, %v939_v25  ;;  %v942_v29 = vpop.xlane.xlu0 %941  ;;  %vm949_vm1 = vweird.f32 %v3288_v27 }
 0x7d3   :  { %3289 = vrcp.f32 %v942_v29  ;;  %vm950_vm3 = vmor %vm948_vm2, %vm949_vm1  ;;  %v969_v45 = vand.u32 2147483648, %v942_v29  ;;  %v967_v47 = vand.u32 2147483647, %v942_v29  ;;  %vm963_vm7 = vweird.f32 %v942_v29 }
 0x7d4   :  { %v945_v30 = vsub.f32 1.0, %v944_v28 }
 0x7d5   :  { %v970_v49 = vor.u32 1.1754944e-38, %v969_v45  ;;  %vm968_vm9 = vcmp.eq.f32.partialorder %v967_v47, 8.507059e+37  ;;  %v3060_v47 = vld [vmem:[%s4415_s11 + $0x18] sm:$0xff] }
 0x7d6   :  { %v946_v33 = vmul.f32 %v3288_v27, %v945_v30 }
 0x7d8   :  { %v947_v35 = vadd.f32 %v3288_v27, %v946_v33 }
 0x7d9   :  { %v3290_v36 = vpop.eup %3289 }
 0x7da   :  { %v951_v39 = vsel %vm950_vm3, %v3288_v27, %v947_v35  ;;  %v959_v40 = vmul.f32 %v3290_v36, %v942_v29  ;;  %vm964_vm6 = vweird.f32 %v3290_v36 }
 0x7db   :  { %v956_v41 = vsel %vm953_vm4, %v955_v37, %v951_v39  ;;  %vm965_vm8 = vmor %vm963_vm7, %vm964_vm6 }
 0x7dc   :  { %v960_v42 = vsub.f32 1.0, %v959_v40  ;;  %v957_v43 = vmul.f32 %v3284_v11, %v956_v41 }
 0x7de   :  { %v961_v46 = vmul.f32 %v3290_v36, %v960_v42  ;;  %3028 = vmatmul.msk.f32.vlgmr.msrb.gmra.mxu2 %vm321_vm14, %v957_v43 }
 0x7df   :  { %3056 = vmatpush.xpose.msk.msrb.mxu2 %vm321_vm14, %v1116_v44 }
 0x7e0   :  { %v962_v48 = vadd.f32 %v3290_v36, %v961_v46 }
 0x7e2   :  { %v966_v50 = vsel %vm965_vm8, %v3290_v36, %v962_v48 }
 0x7e3   :  { %v971_v51 = vsel %vm968_vm9, %v970_v49, %v966_v50  ;;  %v3233_v50 = vld [vmem:[%s4416_s12] ss:$0 sm:$0xff] }
 0x7e4   :  { %v972_v53 = vmul.f32 %v3286_v14, %v971_v51 }
 0x7e6   :  { %3029 = vmatmul.msk.f32.vlgmr.msra.gmra.mxu0 %vm321_vm14, %v972_v53  ;;  %3038 = vmatmul.msk.f32.vlgmr.msra.gmra.mxu2 %vm140_vm5, %v3621_v16 }
 0x7ee   :  { %3039 = vmatmul.msk.f32.gmra.mxu2 %vm140_vm5, %v3632_v22  ;;  %3052 = vmatmul.msk.f32.vlgmr.msrb.gmra.mxu0 %vm140_vm5, %v3621_v16 }
 0x7f6   :  { %3053 = vmatmul.msk.f32.gmra.mxu0 %vm140_vm5, %v3632_v22 }
 0x861   :  { %v993_v55 = vpop.f32.mrf.mxu2 }
 0x862   :  { %3031 = vmatmul.msk.f32.vlgmr.msra.gmra.mxu1 %vm321_vm14, %v993_v55 }
 0x863   :  { %v1016_v56 = vpop.f32.mrf.mxu0  ;;  %1320 = vmatpush.msra.mxu1 %v3060_v47  ;;  %v1433_v47 = vld [vmem:[%s4421_s17] sm:$0xff] }
 0x869   :  { %v1079_v58 = vpop.f32.mrf.mxu2 }
 0x86a   :  { %3032 = vmatmul.msk.f32.gmra.mxu1 %vm321_vm14, %v1016_v56  ;;  %v1080_v63 = vadd.f32 %v3231_v61, %v1079_v58 }
 0x86b   :  { %v1145_v60 = vpop.f32.mrf.mxu0 }
 0x86c   :  { %v1146_v62 = vadd.f32 %v3232_v57, %v1145_v60 }
 0x86e   :  { %1269 = vmatpush.msra.mxu3 %v1146_v62 }
 0x871   :  { %v1082_v0 = vpop.f32.mrf.mxu2 }
 0x872   :  { %v1083_v1 = vadd.f32 %v3231_v61, %v1082_v0  ;;  %3055 = vmatmul.msk.f32.vlgmr.msrb.gmra.mxu1 %vm321_vm14, %v1080_v63 }
 0x873   :  { %v1148_v2 = vpop.f32.mrf.mxu0 }
 0x874   :  { %v1149_v3 = vadd.f32 %v3232_v57, %v1148_v2  ;;  %3057 = vmatmul.msk.f32.vlgmr.msrb.gmra.mxu2 %vm321_vm14, %v1083_v1 }
 0x876   :  { %1292 = vmatpush.msra.mxu0 %v1149_v3 }
 0x8df   :  { %v1044_v5 = vpop.f32.mrf.mxu1 }
 0x8e0   :  { %v3879_v6 = vadd.f32 %v1044_v5, %v769_v4 }
 0x8e7   :  { %v1047_v7 = vpop.f32.mrf.mxu1 }
 0x8e8   :  { %v3882_v8 = vadd.f32 %v1047_v7, %v3820_v59 }
 0x8ef   :  { %v1174_v9 = vpop.f32.mrf.mxu1 }
 0x8f0   :  { %v1203_v10 = vsel %vm321_vm14, %v1174_v9, -inf }
 0x8f1   :  { %1204 = vmax.xlane.f32.xlu2 %v1203_v10  ;;  %v1395_v10 = vld [vmem:[%s4419_s15 + $0x8] sm:$0xff] }
 0x8f7   :  { %v1200_v11 = vpop.f32.mrf.mxu2 }
 0x8f8   :  { %v1206_v12 = vsel %vm321_vm14, %v1200_v11, -inf }
 0x8f9   :  { %1207 = vmax.xlane.f32.xlu0 %v1206_v12 }
 0x964   :  { %v1205_v13 = vpop.xlane.xlu2 %1204 }
 0x965   :  { %v1209_v14 = vsub.f32 %v1174_v9, %v1205_v13  ;;  %v1396_v9 = vld [vmem:[%s4419_s15 + $0x10] sm:$0xff] }
 0x967   :  { %v1211_v15 = vmul.f32 1.442695, %v1209_v14 }
 0x969   :  { %3291 = vpow2.f32 %v1211_v15  ;;  %v1440_v15 = vld [vmem:[%s4421_s17 + $0x38] sm:$0xff] }
 0x96a   :  { %1460 = vmatpush.msrb.mxu3 %v1440_v15  ;;  %v3076_v15 = vld [vmem:[%s4448_s4 + $0x90] sm:$0xff] }
 0x96c   :  { %v1208_v52 = vpop.xlane.xlu0 %1207 }
 0x96d   :  { %v1210_v54 = vsub.f32 %v1200_v11, %v1208_v52  ;;  %v1394_v11 = vld [vmem:[%s4419_s15] sm:$0xff]  ;;  %v1439_v52 = vld [vmem:[%s4421_s17 + $0x30] sm:$0xff] }
 0x96e   :  { %1461 = vmatpush.msrb.mxu3 %v1439_v52  ;;  %v3083_v52 = vld [vmem:[%s4413_s9 + $0x90] sm:$0xff] }
 0x96f   :  { %v3292_v17 = vpop.eup %3291  ;;  %v1213_v18 = vmul.f32 1.442695, %v1210_v54  ;;  %v1438_v54 = vld [vmem:[%s4421_s17 + $0x28] sm:$0xff] }
 0x970   :  { %v1215_v19 = vsel %vm321_vm14, %v3292_v17, 0.0  ;;  %1462 = vmatpush.msrb.mxu3 %v1438_v54  ;;  %v3068_v54 = vld [vmem:[%s4447_s3 + $0x88] sm:$0xff] }
 0x971   :  { %3293 = vpow2.f32 %v1213_v18  ;;  %1216 = vadd.xlane.f32.xlu1 %v1215_v19  ;;  %v1437_v19 = vld [vmem:[%s4421_s17 + $0x20] sm:$0xff] }
 0x972   :  { %1463 = vmatpush.msrb.mxu3 %v1437_v19  ;;  %v3067_v19 = vld [vmem:[%s4447_s3 + $0x80] sm:$0xff] }
 0x977   :  { %v3294_v59 = vpop.eup %3293 }
 0x978   :  { %v1218_v20 = vsel %vm321_vm14, %v3294_v59, 0.0 }
 0x979   :  { %1219 = vadd.xlane.f32.xlu2 %v1218_v20 }
 0x9e4   :  { %v1217_v21 = vpop.xlane.xlu1 %1216 }
 0x9e5   :  { %3295 = vrcp.f32 %v1217_v21  ;;  %v1232_v27 = vand.u32 2147483648, %v1217_v21  ;;  %v1230_v29 = vand.u32 2147483647, %v1217_v21  ;;  %vm1226_vm11 = vweird.f32 %v1217_v21 }
 0x9e7   :  { %v1233_v33 = vor.u32 1.1754944e-38, %v1232_v27  ;;  %vm1231_vm13 = vcmp.eq.f32.partialorder %v1230_v29, 8.507059e+37 }
 0x9eb   :  { %v3296_v23 = vpop.eup %3295 }
 0x9ec   :  { %v1222_v24 = vmul.f32 %v3296_v23, %v1217_v21  ;;  %v1220_v25 = vpop.xlane.xlu2 %1219  ;;  %vm1227_vm10 = vweird.f32 %v3296_v23  ;;  %v1436_v21 = vld [vmem:[%s4421_s17 + $0x18] sm:$0xff] }
 0x9ed   :  { %3297 = vrcp.f32 %v1220_v25  ;;  %vm1228_vm12 = vmor %vm1226_vm11, %vm1227_vm10  ;;  %v1247_v39 = vand.u32 2147483648, %v1220_v25  ;;  %v1245_v41 = vand.u32 2147483647, %v1220_v25  ;;  %vm1241_vm0 = vweird.f32 %v1220_v25  ;;  %1464 = vmatpush.msrb.mxu3 %v1436_v21 }
 0x9ee   :  { %v1223_v26 = vsub.f32 1.0, %v1222_v24  ;;  %vm1445_vm10 = vcmask 523264  }
 0x9ef   :  { %v1248_v43 = vor.u32 1.1754944e-38, %v1247_v39  ;;  %vm1246_vm2 = vcmp.eq.f32.partialorder %v1245_v41, 8.507059e+37 }
 0x9f0   :  { %v1224_v28 = vmul.f32 %v3296_v23, %v1223_v26 }
 0x9f2   :  { %v1225_v30 = vadd.f32 %v3296_v23, %v1224_v28 }
 0x9f3   :  { %v3298_v31 = vpop.eup %3297 }
 0x9f4   :  { %v1229_v34 = vsel %vm1228_vm12, %v3296_v23, %v1225_v30  ;;  %v1237_v35 = vmul.f32 %v3298_v31, %v1220_v25  ;;  %vm1242_vm15 = vweird.f32 %v3298_v31  ;;  %v3234_v30 = vld [vmem:[%s4417_s13] ss:$0 sm:$0xff] }
 0x9f5   :  { %v1234_v36 = vsel %vm1231_vm13, %v1233_v33, %v1229_v34  ;;  %vm1243_vm1 = vmor %vm1241_vm0, %vm1242_vm15 }
 0x9f6   :  { %v1238_v37 = vsub.f32 1.0, %v1237_v35  ;;  %v1235_v38 = vmul.f32 %v3292_v17, %v1234_v36  ;;  %v3235_v35 = vld [vmem:[%s4418_s14] ss:$0 sm:$0xff] }
 0x9f8   :  { %v1239_v40 = vmul.f32 %v3298_v31, %v1238_v37  ;;  %3058 = vmatmul.msk.f32.vlgmr.msra.gmra.mxu3 %vm321_vm14, %v1235_v38 }
 0x9fa   :  { %v1240_v42 = vadd.f32 %v3298_v31, %v1239_v40 }
 0x9fc   :  { %v1244_v44 = vsel %vm1243_vm1, %v3298_v31, %v1240_v42 }
 0x9fd   :  { %v1249_v45 = vsel %vm1246_vm2, %v1248_v43, %v1244_v44 }
 0x9fe   :  { %v1250_v46 = vmul.f32 %v3294_v59, %v1249_v45  ;;  %v1435_v45 = vld [vmem:[%s4421_s17 + $0x10] sm:$0xff] }
 0x9ff   :  { %1465 = vmatpush.msrb.mxu3 %v1435_v45 }
 0xa00   :  { %3059 = vmatmul.msk.f32.vlgmr.msra.gmra.mxu0 %vm321_vm14, %v1250_v46  ;;  %v1434_v46 = vld [vmem:[%s4421_s17 + $0x8] sm:$0xff] }
 0xa01   :  { %1466 = vmatpush.msrb.mxu3 %v1434_v46 }
 0xa03   :  { %1467 = vmatpush.msrb.mxu3 %v1433_v47 }
 0xa7b   :  { %v1271_v48 = vpop.f32.mrf.mxu3 }
 0xa7c   :  { %3061 = vmatmul.msk.f32.vlgmr.msra.gmra.mxu1 %vm321_vm14, %v1271_v48  ;;  %v3236_v48 = vld [vmem:[%s4420_s16] ss:$0 sm:$0xff] }
 0xa7d   :  { %v1294_v49 = vpop.f32.mrf.mxu0 }
 0xa84   :  { %3062 = vmatmul.msk.f32.gmra.mxu1 %vm321_vm14, %v1294_v49 }
 0xaf9   :  { %v1322_v51 = vpop.f32.mrf.mxu1 }
 0xafa   :  { %v1328_v53 = vadd.f32 %v1322_v51, %v3879_v6 }
 0xafc   :  { %v1334_v55 = vadd.f32 %v3233_v50, %v1328_v53 }
 0xafe   :  { %v1336_v56 = vadd.f32 %v1334_v55, %v3621_v16 }
 0xb00   :  { %v1340_v57 = vsel %vm140_vm5, %v1336_v56, 0.0 }
 0xb01   :  { %1341 = vadd.xlane.f32.xlu0 %v1340_v57  ;;  %v1325_v58 = vpop.f32.mrf.mxu1  ;;  %v3237_v57 = vld [vmem:[%s4422_s18] ss:$0 sm:$0xff] }
 0xb02   :  { %v1329_v60 = vadd.f32 %v1325_v58, %v3882_v8 }
 0xb04   :  { %v1335_v61 = vadd.f32 %v3233_v50, %v1329_v60 }
 0xb06   :  { %v1337_v62 = vadd.f32 %v1335_v61, %v3632_v22  ;;  %v1397_v22 = vld [vmem:[%s4419_s15 + $0x18] sm:$0xff] }
 0xb07   :  { %1420 = vmatpush.msra.mxu2 %v1397_v22 }
 0xb08   :  { %v1343_v63 = vsel %vm140_vm5, %v1337_v62, 0.0 }
 0xb09   :  { %1344 = vadd.xlane.f32.xlu1 %v1343_v63  ;;  %1421 = vmatpush.msra.mxu2 %v1396_v9 }
 0xb0b   :  { %1422 = vmatpush.msra.mxu2 %v1395_v10 }
 0xb0d   :  { %1423 = vmatpush.msra.mxu2 %v1394_v11  ;;  %v3070_v11 = vld [vmem:[%s4447_s3 + $0x98] sm:$0xff] }
 0xb0e   :  { %1561 = vmatpush.msrb.mxu0 %v3070_v11 }
 0xb74   :  { %v1342_v0 = vpop.xlane.xlu0 %1341 }
 0xb75   :  { %v1346_v1 = vmul.f32 %v1342_v0, %v3567_v32 }
 0xb77   :  { %v1348_v2 = vsub.f32 %v1336_v56, %v1346_v1 }
 0xb79   :  { %v1350_v3 = vmul.f32 %v1348_v2, %v1348_v2 }
 0xb7b   :  { %v1352_v4 = vsel %vm140_vm5, %v1350_v3, 0.0 }
 0xb7c   :  { %1353 = vadd.xlane.f32.xlu2 %v1352_v4  ;;  %v1345_v16 = vpop.xlane.xlu1 %1344 }
 0xb7d   :  { %v1347_v5 = vmul.f32 %v1345_v16, %v3567_v32 }
 0xb7f   :  { %v1349_v6 = vsub.f32 %v1337_v62, %v1347_v5 }
 0xb81   :  { %v1351_v7 = vmul.f32 %v1349_v6, %v1349_v6 }
 0xb83   :  { %v1355_v8 = vsel %vm140_vm5, %v1351_v7, 0.0 }
 0xb84   :  { %1356 = vadd.xlane.f32.xlu0 %v1355_v8 }
 0xbef   :  { %v1354_v12 = vpop.xlane.xlu2 %1353 }
 0xbf0   :  { %v1358_v13 = vmul.f32 %v1354_v12, %v3567_v32  ;;  %v3077_v12 = vld [vmem:[%s4448_s4 + $0x98] sm:$0xff] }
 0xbf1   :  { %1594 = vmatpush.msrb.mxu1 %v3077_v12 }
 0xbf2   :  { %v1360_v14 = vadd.f32 1e-05, %v1358_v13  ;;  %v3084_v13 = vld [vmem:[%s4413_s9 + $0x98] sm:$0xff] }
 0xbf3   :  { %1627 = vmatpush.msrb.mxu2 %v3084_v13  ;;  %1595 = vmatpush.msrb.mxu1 %v3076_v15  ;;  %v4088_v15 = vld [vmem:[%s4451_s26 + $0x5] ss:$0 sm:$0xff] }
 0xbf4   :  { %3299 = vrsqrt.f32 %v1360_v14  ;;  %vm1368_vm4 = vweird.f32 %v1360_v14 }
 0xbf5   :  { %1628 = vmatpush.msrb.mxu2 %v3083_v52 }
 0xbf7   :  { %v1357_v17 = vpop.xlane.xlu0 %1356 }
 0xbf8   :  { %v1359_v18 = vmul.f32 %v1357_v17, %v3567_v32  ;;  %v3075_v17 = vld [vmem:[%s4448_s4 + $0x88] sm:$0xff] }
 0xbf9   :  { %1596 = vmatpush.msrb.mxu1 %v3075_v17 }
 0xbfa   :  { %v3300_v59 = vpop.eup %3299  ;;  %v1361_v20 = vadd.f32 1e-05, %v1359_v18  ;;  %v3082_v18 = vld [vmem:[%s4413_s9 + $0x88] sm:$0xff] }
 0xbfb   :  { %v1363_v23 = vmul.f32 %v3300_v59, %v1360_v14  ;;  %vm1369_vm3 = vweird.f32 %v3300_v59  ;;  %v3069_v14 = vld [vmem:[%s4447_s3 + $0x90] sm:$0xff]  ;;  %1629 = vmatpush.msrb.mxu2 %v3082_v18 }
 0xbfc   :  { %3301 = vrsqrt.f32 %v1361_v20  ;;  %vm1370_vm6 = vmor %vm1368_vm4, %vm1369_vm3  ;;  %vm1378_vm8 = vweird.f32 %v1361_v20  ;;  %1562 = vmatpush.msrb.mxu0 %v3069_v14 }
 0xbfd   :  { %v1364_v24 = vmul.f32 %v3300_v59, %v1363_v23 }
 0xbfe   :  { %1563 = vmatpush.msrb.mxu0 %v3068_v54 }
 0xbff   :  { %v1365_v25 = vmul.f32 0.5, %v1364_v24 }
 0xc00   :  { %1564 = vmatpush.msrb.mxu0 %v3067_v19 }
 0xc01   :  { %v1366_v26 = vsub.f32 1.5, %v1365_v25  ;;  %v3098_v25 = vld [vmem:[%s4447_s3 + $0xb8] sm:$0xff] }
 0xc02   :  { %v3302_v27 = vpop.eup %3301 }
 0xc03   :  { %v1367_v28 = vmul.f32 %v3300_v59, %v1366_v26  ;;  %v1373_v29 = vmul.f32 %v3302_v27, %v1361_v20  ;;  %vm1379_vm7 = vweird.f32 %v3302_v27  ;;  %v3081_v20 = vld [vmem:[%s4413_s9 + $0x80] sm:$0xff]  ;;  %v3097_v26 = vld [vmem:[%s4447_s3 + $0xb0] sm:$0xff] }
 0xc04   :  { %vm1380_vm9 = vmor %vm1378_vm8, %vm1379_vm7  ;;  %1630 = vmatpush.msrb.mxu2 %v3081_v20 }
 0xc05   :  { %v1371_v31 = vsel %vm1370_vm6, %v3300_v59, %v1367_v28  ;;  %v1374_v33 = vmul.f32 %v3302_v27, %v1373_v29  ;;  %v3074_v59 = vld [vmem:[%s4448_s4 + $0x80] sm:$0xff]  ;;  %v3096_v28 = vld [vmem:[%s4447_s3 + $0xa8] sm:$0xff] }
 0xc06   :  { %v1382_v34 = vmul.f32 %v1371_v31, %v1348_v2  ;;  %1597 = vmatpush.msrb.mxu1 %v3074_v59 }
 0xc07   :  { %v1375_v36 = vmul.f32 0.5, %v1374_v33 }
 0xc08   :  { %v1387_v37 = vmul.f32 %v3234_v30, %v1382_v34 }
 0xc09   :  { %v1376_v38 = vsub.f32 1.5, %v1375_v36 }
 0xc0a   :  { %v1392_v39 = vadd.f32 %v3235_v35, %v1387_v37 }
 0xc0b   :  { %v1377_v40 = vmul.f32 %v3302_v27, %v1376_v38 }
 0xc0c   :  { %3063 = vmatmul.msk.f32.vlgmr.msra.gmra.mxu2 %vm140_vm5, %v1392_v39 }
 0xc0d   :  { %v1381_v41 = vsel %vm1380_vm9, %v3302_v27, %v1377_v40  ;;  %1808 = vmatpush.msra.mxu2 %v3098_v25 }
 0xc0e   :  { %v1383_v42 = vmul.f32 %v1381_v41, %v1349_v6  ;;  %v3238_v41 = vld [vmem:[%s4423_s19] ss:$0 sm:$0xff] }
 0xc0f   :  { %1809 = vmatpush.msra.mxu2 %v3097_v26 }
 0xc10   :  { %v1388_v43 = vmul.f32 %v3234_v30, %v1383_v42  ;;  %v3095_v30 = vld [vmem:[%s4447_s3 + $0xa0] sm:$0xff] }
 0xc11   :  { %1810 = vmatpush.msra.mxu2 %v3096_v28  ;;  %v3111_v28 = vld [vmem:[%s4413_s9 + $0xb0] sm:$0xff] }
 0xc12   :  { %v1393_v44 = vadd.f32 %v3235_v35, %v1388_v43 }
 0xc13   :  { %1811 = vmatpush.msra.mxu2 %v3095_v30  ;;  %v3109_v30 = vld [vmem:[%s4413_s9 + $0xa0] sm:$0xff] }
 0xc14   :  { %3064 = vmatmul.msk.f32.gmra.mxu2 %vm140_vm5, %v1393_v44 }
 0xc8f   :  { %v1425_v49 = vpop.f32.mrf.mxu2 }
 0xc90   :  { %v1426_v50 = vadd.f32 %v3236_v48, %v1425_v49 }
 0xc92   :  { %v1431_v51 = vmax.f32 %v1426_v50, 0.0 }
 0xc94   :  { %3065 = vmatmul.msk.f32.vlgmr.msrb.gmra.mxu3 %vm1445_vm10, %v1431_v51 }
 0xc97   :  { %v1428_v53 = vpop.f32.mrf.mxu2 }
 0xc98   :  { %v1429_v55 = vadd.f32 %v3236_v48, %v1428_v53 }
 0xc9a   :  { %v1432_v56 = vmax.f32 %v1429_v55, 0.0 }
 0xc9c   :  { %3066 = vmatmul.msk.f32.gmra.mxu3 %vm1445_vm10, %v1432_v56 }
 0xd17   :  { %v1469_v58 = vpop.f32.mrf.mxu3 }
 0xd18   :  { %v1470_v60 = vadd.f32 %v3237_v57, %v1469_v58  ;;  %v3240_v58 = vld [vmem:[%s4452_s0 + $0x4] ss:$0 sm:$0xff] }
 0xd1a   :  { %v1475_v61 = vadd.f32 %v1470_v60, %v1392_v39 }
 0xd1c   :  { %v1479_v62 = vsel %vm140_vm5, %v1475_v61, 0.0 }
 0xd1d   :  { %1480 = vadd.xlane.f32.xlu1 %v1479_v62 }
 0xd1f   :  { %v1472_v63 = vpop.f32.mrf.mxu3 }
 0xd20   :  { %v1473_v0 = vadd.f32 %v3237_v57, %v1472_v63  ;;  %v3241_v57 = vld [vmem:[%s4451_s26 + $0x4] ss:$0 sm:$0xff] }
 0xd22   :  { %v1476_v1 = vadd.f32 %v1473_v0, %v1393_v44  ;;  %v3239_v44 = vld [vmem:[%s4424_s20] ss:$0 sm:$0xff]  ;;  %v3242_v0 = vld [vmem:[%s4414_s10 + $0x4] ss:$0 sm:$0xff] }
 0xd24   :  { %v1482_v2 = vsel %vm140_vm5, %v1476_v1, 0.0 }
 0xd25   :  { %1483 = vadd.xlane.f32.xlu2 %v1482_v2 }
 0xd90   :  { %v1481_v3 = vpop.xlane.xlu1 %1480 }
 0xd91   :  { %v1485_v4 = vmul.f32 %v1481_v3, %v3567_v32 }
 0xd93   :  { %v3965_v16 = vsub.f32 %v1475_v61, %v1485_v4 }
 0xd95   :  { %v1489_v5 = vmul.f32 %v3965_v16, %v3965_v16 }
 0xd97   :  { %v1491_v6 = vsel %vm140_vm5, %v1489_v5, 0.0  ;;  %v3105_v5 = vld [vmem:[%s4448_s4 + $0xb8] sm:$0xff] }
 0xd98   :  { %v1484_v7 = vpop.xlane.xlu2 %1483  ;;  %1492 = vadd.xlane.f32.xlu0 %v1491_v6 }
 0xd99   :  { %v1486_v8 = vmul.f32 %v1484_v7, %v3567_v32  ;;  %v3104_v7 = vld [vmem:[%s4448_s4 + $0xb0] sm:$0xff] }
 0xd9b   :  { %v3971_v22 = vsub.f32 %v1476_v1, %v1486_v8  ;;  %v3103_v8 = vld [vmem:[%s4448_s4 + $0xa8] sm:$0xff] }
 0xd9d   :  { %v1490_v9 = vmul.f32 %v3971_v22, %v3971_v22 }
 0xd9f   :  { %v1494_v10 = vsel %vm140_vm5, %v1490_v9, 0.0 }
 0xda0   :  { %1495 = vadd.xlane.f32.xlu1 %v1494_v10  ;;  %v3102_v10 = vld [vmem:[%s4448_s4 + $0xa0] sm:$0xff] }
 0xe0b   :  { %v1493_v21 = vpop.xlane.xlu0 %1492 }
 0xe0c   :  { %v1497_v23 = vmul.f32 %v1493_v21, %v3567_v32 }
 0xe0e   :  { %v1499_v24 = vadd.f32 1e-05, %v1497_v23 }
 0xe10   :  { %3303 = vrsqrt.f32 %v1499_v24  ;;  %vm1507_vm12 = vweird.f32 %v1499_v24 }
 0xe13   :  { %v1496_v27 = vpop.xlane.xlu1 %1495 }
 0xe14   :  { %v1498_v29 = vmul.f32 %v1496_v27, %v3567_v32  ;;  %v3112_v27 = vld [vmem:[%s4413_s9 + $0xb8] sm:$0xff] }
 0xe16   :  { %v3304_v31 = vpop.eup %3303  ;;  %v1500_v33 = vadd.f32 1e-05, %v1498_v29  ;;  %v3110_v29 = vld [vmem:[%s4413_s9 + $0xa8] sm:$0xff] }
 0xe17   :  { %v1502_v34 = vmul.f32 %v3304_v31, %v1499_v24  ;;  %vm1508_vm11 = vweird.f32 %v3304_v31 }
 0xe18   :  { %3305 = vrsqrt.f32 %v1500_v33  ;;  %vm1509_vm13 = vmor %vm1507_vm12, %vm1508_vm11  ;;  %vm1517_vm0 = vweird.f32 %v1500_v33 }
 0xe19   :  { %v1503_v35 = vmul.f32 %v3304_v31, %v1502_v34 }
 0xe1b   :  { %v1504_v36 = vmul.f32 0.5, %v1503_v35 }
 0xe1d   :  { %v1505_v37 = vsub.f32 1.5, %v1504_v36 }
 0xe1e   :  { %v3306_v38 = vpop.eup %3305 }
 0xe1f   :  { %v1506_v39 = vmul.f32 %v3304_v31, %v1505_v37  ;;  %v1512_v40 = vmul.f32 %v3306_v38, %v1500_v33  ;;  %vm1518_vm15 = vweird.f32 %v3306_v38 }
 0xe20   :  { %vm1519_vm1 = vmor %vm1517_vm0, %vm1518_vm15 }
 0xe21   :  { %v1510_v42 = vsel %vm1509_vm13, %v3304_v31, %v1506_v39  ;;  %v1513_v43 = vmul.f32 %v3306_v38, %v1512_v40 }
 0xe22   :  { %v1521_v45 = vmul.f32 %v1510_v42, %v3965_v16 }
 0xe23   :  { %v1514_v46 = vmul.f32 0.5, %v1513_v43 }
 0xe24   :  { %v1526_v47 = vmul.f32 %v3238_v41, %v1521_v45 }
 0xe25   :  { %v1515_v48 = vsub.f32 1.5, %v1514_v46 }
 0xe26   :  { %v4033_v49 = vadd.f32 %v3239_v44, %v1526_v47 }
 0xe27   :  { %v1516_v50 = vmul.f32 %v3306_v38, %v1515_v48 }
 0xe28   :  { %3072 = vmatmul.msk.f32.vlgmr.msrb.gmra.mxu0 %vm140_vm5, %v4033_v49  ;;  %3079 = vmatmul.msk.f32.vlgmr.msrb.gmra.mxu1 %vm140_vm5, %v4033_v49 }
 0xe29   :  { %v1520_v51 = vsel %vm1519_vm1, %v3306_v38, %v1516_v50  ;;  %3086 = vmatmul.msk.f32.vlgmr.msrb.gmra.mxu2 %vm140_vm5, %v4033_v49 }
 0xe2a   :  { %v1522_v53 = vmul.f32 %v1520_v51, %v3971_v22 }
 0xe2c   :  { %v1527_v55 = vmul.f32 %v3238_v41, %v1522_v53 }
 0xe2e   :  { %v4042_v56 = vadd.f32 %v3239_v44, %v1527_v55 }
 0xe30   :  { %3073 = vmatmul.msk.f32.gmra.mxu0 %vm140_vm5, %v4042_v56  ;;  %3080 = vmatmul.msk.f32.gmra.mxu1 %vm140_vm5, %v4042_v56 }
 0xe31   :  { %3087 = vmatmul.msk.f32.gmra.mxu2 %vm140_vm5, %v4042_v56 }
 0xe39   :  { %3100 = vmatmul.msk.f32.vlgmr.msra.gmra.mxu2 %vm140_vm5, %v4033_v49 }
 0xe41   :  { %3101 = vmatmul.msk.f32.gmra.mxu2 %vm140_vm5, %v4042_v56 }
 0xea5   :  { %v1566_v60 = vpop.f32.mrf.mxu0  ;;  %v1599_v61 = vpop.f32.mrf.mxu1 }
 0xea6   :  { %v1600_v62 = vadd.f32 %v3241_v57, %v1599_v61  ;;  %v1567_v63 = vadd.f32 %v3240_v58, %v1566_v60 }
 0xea8   :  { %3088 = vmatpush.xpose.msk.msra.mxu0 %vm321_vm14, %v1600_v62 }
 0xeab   :  { %3089 = vmatmul.msk.f32.vlgmr.msra.gmra.mxu0 %vm321_vm14, %v1567_v63 }
 0xeac   :  { %v1632_v1 = vpop.f32.mrf.mxu2 }
 0xead   :  { %v1633_v2 = vadd.f32 %v3242_v0, %v1632_v1  ;;  %v1602_v3 = vpop.f32.mrf.mxu1  ;;  %v1569_v4 = vpop.f32.mrf.mxu0 }
 0xeae   :  { %v1603_v16 = vadd.f32 %v3241_v57, %v1602_v3  ;;  %v1570_v6 = vadd.f32 %v3240_v58, %v1569_v4  ;;  %v3094_v4 = vld [vmem:[%s4415_s11 + $0x20] sm:$0xff] }
 0xeaf   :  { %1756 = vmatpush.msrb.mxu0 %v1633_v2 }
 0xeb0   :  { %3090 = vmatpush.xpose.msk.msra.mxu3 %vm321_vm14, %v1603_v16 }
 0xeb1   :  { %1874 = vmatpush.msra.mxu0 %v3112_v27  ;;  %v3137_v27 = vld [vmem:[%s4448_s4 + $0xd8] sm:$0xff] }
 0xeb3   :  { %3091 = vmatmul.msk.f32.vlgmr.msra.gmra.mxu3 %vm321_vm14, %v1570_v6  ;;  %1875 = vmatpush.msra.mxu0 %v3111_v28  ;;  %v3136_v28 = vld [vmem:[%s4448_s4 + $0xd0] sm:$0xff] }
 0xeb4   :  { %1841 = vmatpush.msrb.mxu3 %v3105_v5  ;;  %v1635_v22 = vpop.f32.mrf.mxu2  ;;  %v3245_v5 = vld [vmem:[%s4414_s10 + $0x5] ss:$0 sm:$0xff] }
 0xeb5   :  { %v1636_v9 = vadd.f32 %v3242_v0, %v1635_v22  ;;  %1876 = vmatpush.msra.mxu0 %v3110_v29  ;;  %v3243_v0 = vld [vmem:[%s4452_s0 + $0x5] ss:$0 sm:$0xff]  ;;  %v3135_v29 = vld [vmem:[%s4448_s4 + $0xc8] sm:$0xff] }
 0xeb6   :  { %1842 = vmatpush.msrb.mxu3 %v3104_v7 }
 0xeb7   :  { %1779 = vmatpush.msra.mxu1 %v1636_v9  ;;  %1877 = vmatpush.msra.mxu0 %v3109_v30 }
 0xeb8   :  { %1843 = vmatpush.msrb.mxu3 %v3103_v8 }
 0xeba   :  { %1844 = vmatpush.msrb.mxu3 %v3102_v10 }
 0xebb   :  { %3107 = vmatmul.msk.f32.vlgmr.msrb.gmra.mxu3 %vm140_vm5, %v4033_v49 }
 0xebc   :  { %v1813_v63 = vpop.f32.mrf.mxu2 }
 0xebd   :  { %v1814_v1 = vadd.f32 %v3243_v0, %v1813_v63  ;;  %v3143_v63 = vld [vmem:[%s4413_s9 + $0xd0] sm:$0xff] }
 0xec3   :  { %3108 = vmatmul.msk.f32.gmra.mxu3 %vm140_vm5, %v4042_v56 }
 0xec4   :  { %v1816_v2 = vpop.f32.mrf.mxu2 }
 0xec5   :  { %v1817_v3 = vadd.f32 %v3243_v0, %v1816_v2  ;;  %v3142_v0 = vld [vmem:[%s4413_s9 + $0xc8] sm:$0xff]  ;;  %v3167_v2 = vld [vmem:[%s4448_s4 + $0xf8] sm:$0xff] }
 0xf28   :  { %v1661_v11 = vpop.f32.mrf.mxu0 }
 0xf29   :  { %v1690_v12 = vsel %vm321_vm14, %v1661_v11, -inf }
 0xf2a   :  { %1691 = vmax.xlane.f32.xlu1 %v1690_v12 }
 0xf36   :  { %v1687_v13 = vpop.f32.mrf.mxu3 }
 0xf37   :  { %v1693_v14 = vsel %vm321_vm14, %v1687_v13, -inf }
 0xf38   :  { %1694 = vmax.xlane.f32.xlu2 %v1693_v14 }
 0xf3e   :  { %v1846_v52 = vpop.f32.mrf.mxu3 }
 0xf3f   :  { %v1847_v54 = vadd.f32 %v4088_v15, %v1846_v52 }
 0xf41   :  { %3116 = vmatpush.xpose.msk.msrb.mxu1 %vm321_vm14, %v1847_v54 }
 0xf46   :  { %v1849_v57 = vpop.f32.mrf.mxu3 }
 0xf47   :  { %v1850_v62 = vadd.f32 %v4088_v15, %v1849_v57 }
 0xf9d   :  { %v1692_v17 = vpop.xlane.xlu1 %1691 }
 0xf9e   :  { %v1696_v18 = vsub.f32 %v1661_v11, %v1692_v17 }
 0xfa0   :  { %v1698_v19 = vmul.f32 1.442695, %v1696_v18 }
 0xfa2   :  { %3307 = vpow2.f32 %v1698_v19 }
 0xfa8   :  { %v3308_v59 = vpop.eup %3307 }
 0xfa9   :  { %v1702_v20 = vsel %vm321_vm14, %v3308_v59, 0.0 }
 0xfaa   :  { %1703 = vadd.xlane.f32.xlu2 %v1702_v20 }
 0xfab   :  { %v1695_v21 = vpop.xlane.xlu2 %1694 }
 0xfac   :  { %v1697_v23 = vsub.f32 %v1687_v13, %v1695_v21 }
 0xfae   :  { %v1700_v24 = vmul.f32 1.442695, %v1697_v23  ;;  %v3130_v23 = vld [vmem:[%s4447_s3 + $0xd8] sm:$0xff] }
 0xfb0   :  { %3309 = vpow2.f32 %v1700_v24  ;;  %v3129_v24 = vld [vmem:[%s4447_s3 + $0xd0] sm:$0xff] }
 0xfb6   :  { %v3310_v25 = vpop.eup %3309 }
 0xfb7   :  { %v1705_v26 = vsel %vm321_vm14, %v3310_v25, 0.0 }
 0xfb8   :  { %1706 = vadd.xlane.f32.xlu0 %v1705_v26  ;;  %v3127_v26 = vld [vmem:[%s4447_s3 + $0xc0] sm:$0xff] }
0x101d   :  { %v1704_v31 = vpop.xlane.xlu2 %1703 }
0x101e   :  { %3311 = vrcp.f32 %v1704_v31  ;;  %v1719_v36 = vand.u32 2147483648, %v1704_v31  ;;  %v1717_v38 = vand.u32 2147483647, %v1704_v31  ;;  %vm1713_vm3 = vweird.f32 %v1704_v31 }
0x1020   :  { %v1720_v41 = vor.u32 1.1754944e-38, %v1719_v36  ;;  %vm1718_vm6 = vcmp.eq.f32.partialorder %v1717_v38, 8.507059e+37 }
0x1024   :  { %v3312_v33 = vpop.eup %3311 }
0x1025   :  { %v1709_v34 = vmul.f32 %v3312_v33, %v1704_v31  ;;  %vm1714_vm2 = vweird.f32 %v3312_v33  ;;  %v3134_v31 = vld [vmem:[%s4448_s4 + $0xc0] sm:$0xff] }
0x1026   :  { %vm1715_vm4 = vmor %vm1713_vm3, %vm1714_vm2 }
0x1027   :  { %v1710_v35 = vsub.f32 1.0, %v1709_v34 }
0x1029   :  { %v1711_v37 = vmul.f32 %v3312_v33, %v1710_v35 }
0x102b   :  { %v1712_v39 = vadd.f32 %v3312_v33, %v1711_v37  ;;  %v1707_v40 = vpop.xlane.xlu0 %1706 }
0x102c   :  { %3313 = vrcp.f32 %v1707_v40  ;;  %v1734_v48 = vand.u32 2147483648, %v1707_v40  ;;  %v1732_v51 = vand.u32 2147483647, %v1707_v40  ;;  %vm1728_vm8 = vweird.f32 %v1707_v40 }
0x102d   :  { %v1716_v42 = vsel %vm1715_vm4, %v3312_v33, %v1712_v39 }
0x102e   :  { %v1721_v43 = vsel %vm1718_vm6, %v1720_v41, %v1716_v42  ;;  %v1735_v55 = vor.u32 1.1754944e-38, %v1734_v48  ;;  %vm1733_vm11 = vcmp.eq.f32.partialorder %v1732_v51, 8.507059e+37 }
0x102f   :  { %v1722_v44 = vmul.f32 %v3308_v59, %v1721_v43 }
0x1031   :  { %3092 = vmatmul.msk.f32.vlgmr.msrb.gmra.mxu0 %vm321_vm14, %v1722_v44 }
0x1032   :  { %v3314_v45 = vpop.eup %3313 }
0x1033   :  { %v1724_v46 = vmul.f32 %v3314_v45, %v1707_v40  ;;  %vm1729_vm7 = vweird.f32 %v3314_v45 }
0x1034   :  { %vm1730_vm9 = vmor %vm1728_vm8, %vm1729_vm7 }
0x1035   :  { %v1725_v47 = vsub.f32 1.0, %v1724_v46 }
0x1037   :  { %v1726_v50 = vmul.f32 %v3314_v45, %v1725_v47 }
0x1039   :  { %v1727_v53 = vadd.f32 %v3314_v45, %v1726_v50  ;;  %3114 = vmatmul.msk.f32.vlgmr.msra.gmra.mxu0 %vm140_vm5, %v4033_v49 }
0x103b   :  { %v1731_v58 = vsel %vm1730_vm9, %v3314_v45, %v1727_v53 }
0x103c   :  { %v1736_v60 = vsel %vm1733_vm11, %v1735_v55, %v1731_v58 }
0x103d   :  { %v1737_v61 = vmul.f32 %v3310_v25, %v1736_v60  ;;  %v3128_v25 = vld [vmem:[%s4447_s3 + $0xc8] sm:$0xff] }
0x103f   :  { %3093 = vmatmul.msk.f32.vlgmr.msra.gmra.mxu1 %vm321_vm14, %v1737_v61  ;;  %v3122_v61 = vld [vmem:[%s4415_s11 + $0x28] sm:$0xff] }
0x1040   :  { %3118 = vmatpush.xpose.msk.msra.mxu1 %vm321_vm14, %v1850_v62  ;;  %2054 = vmatpush.msrb.mxu0 %v3122_v61  ;;  %v3144_v62 = vld [vmem:[%s4413_s9 + $0xd8] sm:$0xff] }
0x1041   :  { %3115 = vmatmul.msk.f32.gmra.mxu0 %vm140_vm5, %v4042_v56 }
0x1042   :  { %2179 = vmatpush.msra.mxu0 %v3144_v62 }
0x1044   :  { %2180 = vmatpush.msra.mxu0 %v3143_v63 }
0x1046   :  { %2181 = vmatpush.msra.mxu0 %v3142_v0 }
0x1047   :  { %3117 = vmatmul.msk.f32.vlgmr.msrb.gmra.mxu1 %vm321_vm14, %v1814_v1  ;;  %v3141_v1 = vld [vmem:[%s4413_s9 + $0xc0] sm:$0xff] }
0x1048   :  { %2083 = vmatpush.msrb.mxu1 %v3094_v4  ;;  %2182 = vmatpush.msra.mxu0 %v3141_v1  ;;  %v3166_v4 = vld [vmem:[%s4448_s4 + $0xf0] sm:$0xff] }
0x104f   :  { %3119 = vmatmul.msk.f32.vlgmr.msra.gmra.mxu1 %vm321_vm14, %v1817_v3 }
0x10ae   :  { %v1758_v16 = vpop.f32.mrf.mxu0 }
0x10af   :  { %3125 = vmatmul.msk.f32.vlgmr.msrb.gmra.mxu1 %vm321_vm14, %v1758_v16  ;;  %v3165_v16 = vld [vmem:[%s4448_s4 + $0xe8] sm:$0xff] }
0x10b6   :  { %v1879_v6 = vpop.f32.mrf.mxu0 }
0x10b7   :  { %v1880_v7 = vadd.f32 %v3245_v5, %v1879_v6 }
0x10b9   :  { %2003 = vmatpush.msrb.mxu2 %v1880_v7  ;;  %v3247_v7 = vld [vmem:[%s4451_s26 + $0x6] ss:$0 sm:$0xff] }
0x10bb   :  { %2113 = vmatpush.msra.mxu2 %v3130_v23 }
0x10bc   :  { %v1781_v8 = vpop.f32.mrf.mxu1 }
0x10bd   :  { %3126 = vmatmul.msk.f32.gmra.mxu1 %vm321_vm14, %v1781_v8  ;;  %2114 = vmatpush.msra.mxu2 %v3129_v24 }
0x10be   :  { %v1882_v22 = vpop.f32.mrf.mxu0 }
0x10bf   :  { %v1883_v9 = vadd.f32 %v3245_v5, %v1882_v22  ;;  %2115 = vmatpush.msra.mxu2 %v3128_v25  ;;  %v3164_v5 = vld [vmem:[%s4448_s4 + $0xe0] sm:$0xff] }
0x10c0   :  { %v3246_v22 = vld [vmem:[%s4452_s0 + $0x6] ss:$0 sm:$0xff] }
0x10c1   :  { %2026 = vmatpush.msra.mxu3 %v1883_v9  ;;  %2116 = vmatpush.msra.mxu2 %v3127_v26 }
0x10c3   :  { %2146 = vmatpush.msrb.mxu3 %v3137_v27 }
0x10c4   :  { %v1908_v10 = vpop.f32.mrf.mxu1 }
0x10c5   :  { %v1937_v11 = vsel %vm321_vm14, %v1908_v10, -inf  ;;  %2147 = vmatpush.msrb.mxu3 %v3136_v28  ;;  %v3249_v28 = vld [vmem:[%s4451_s26 + $0x7] ss:$0 sm:$0xff] }
0x10c6   :  { %1938 = vmax.xlane.f32.xlu1 %v1937_v11 }
0x10c7   :  { %2148 = vmatpush.msrb.mxu3 %v3135_v29 }
0x10c9   :  { %2149 = vmatpush.msrb.mxu3 %v3134_v31 }
0x10cc   :  { %v1934_v12 = vpop.f32.mrf.mxu1 }
0x10cd   :  { %v1940_v13 = vsel %vm321_vm14, %v1934_v12, -inf }
0x10ce   :  { %1941 = vmax.xlane.f32.xlu0 %v1940_v13 }
0x1139   :  { %v1939_v14 = vpop.xlane.xlu1 %1938 }
0x113a   :  { %v1943_v15 = vsub.f32 %v1908_v10, %v1939_v14 }
0x113c   :  { %v1945_v52 = vmul.f32 1.442695, %v1943_v15 }
0x113e   :  { %3315 = vpow2.f32 %v1945_v52  ;;  %v4212_v52 = vpop.f32.mrf.mxu1 }
0x1141   :  { %v1942_v54 = vpop.xlane.xlu0 %1941 }
0x1142   :  { %v1944_v17 = vsub.f32 %v1934_v12, %v1942_v54 }
0x1144   :  { %v3316_v18 = vpop.eup %3315  ;;  %v1947_v19 = vmul.f32 1.442695, %v1944_v17  ;;  %v3154_v17 = vld [vmem:[%s4415_s11 + $0x30] sm:$0xff] }
0x1145   :  { %v1949_v59 = vsel %vm321_vm14, %v3316_v18, 0.0 }
0x1146   :  { %3317 = vpow2.f32 %v1947_v19  ;;  %1950 = vadd.xlane.f32.xlu0 %v1949_v59 }
0x114c   :  { %v3318_v20 = vpop.eup %3317 }
0x114d   :  { %v1952_v21 = vsel %vm321_vm14, %v3318_v20, 0.0 }
0x114e   :  { %1953 = vadd.xlane.f32.xlu2 %v1952_v21 }
0x11b9   :  { %v1951_v30 = vpop.xlane.xlu0 %1950 }
0x11ba   :  { %3319 = vrcp.f32 %v1951_v30  ;;  %v1966_v37 = vand.u32 2147483648, %v1951_v30  ;;  %v1964_v39 = vand.u32 2147483647, %v1951_v30  ;;  %vm1960_vm13 = vweird.f32 %v1951_v30 }
0x11bc   :  { %v1967_v42 = vor.u32 1.1754944e-38, %v1966_v37  ;;  %vm1965_vm0 = vcmp.eq.f32.partialorder %v1964_v39, 8.507059e+37 }
0x11c0   :  { %v3320_v33 = vpop.eup %3319 }
0x11c1   :  { %v1956_v34 = vmul.f32 %v3320_v33, %v1951_v30  ;;  %v1954_v35 = vpop.xlane.xlu2 %1953  ;;  %vm1961_vm12 = vweird.f32 %v3320_v33 }
0x11c2   :  { %3321 = vrcp.f32 %v1954_v35  ;;  %vm1962_vm15 = vmor %vm1960_vm13, %vm1961_vm12  ;;  %v1981_v48 = vand.u32 2147483648, %v1954_v35  ;;  %v1979_v51 = vand.u32 2147483647, %v1954_v35  ;;  %vm1975_vm2 = vweird.f32 %v1954_v35 }
0x11c3   :  { %v1957_v36 = vsub.f32 1.0, %v1956_v34 }
0x11c4   :  { %v1982_v55 = vor.u32 1.1754944e-38, %v1981_v48  ;;  %vm1980_vm4 = vcmp.eq.f32.partialorder %v1979_v51, 8.507059e+37  ;;  %v3173_v51 = vld [vmem:[%s4413_s9 + $0xf0] sm:$0xff] }
0x11c5   :  { %v1958_v38 = vmul.f32 %v3320_v33, %v1957_v36 }
0x11c7   :  { %v1959_v40 = vadd.f32 %v3320_v33, %v1958_v38 }
0x11c8   :  { %v3322_v41 = vpop.eup %3321 }
0x11c9   :  { %v1963_v43 = vsel %vm1962_vm15, %v3320_v33, %v1959_v40  ;;  %v1971_v44 = vmul.f32 %v3322_v41, %v1954_v35  ;;  %vm1976_vm1 = vweird.f32 %v3322_v41 }
0x11ca   :  { %v1968_v45 = vsel %vm1965_vm0, %v1967_v42, %v1963_v43  ;;  %vm1977_vm3 = vmor %vm1975_vm2, %vm1976_vm1 }
0x11cb   :  { %v1972_v46 = vsub.f32 1.0, %v1971_v44  ;;  %v1969_v47 = vmul.f32 %v3316_v18, %v1968_v45  ;;  %v2088_v18 = vpop.f32.mrf.mxu1  ;;  %v3160_v44 = vld [vmem:[%s4447_s3 + $0xf8] sm:$0xff]  ;;  %v3159_v45 = vld [vmem:[%s4447_s3 + $0xf0] sm:$0xff] }
0x11cd   :  { %v1973_v50 = vmul.f32 %v3322_v41, %v1972_v46  ;;  %3120 = vmatmul.msk.f32.vlgmr.msrb.gmra.mxu2 %vm321_vm14, %v1969_v47  ;;  %v3158_v46 = vld [vmem:[%s4447_s3 + $0xe8] sm:$0xff]  ;;  %v3157_v47 = vld [vmem:[%s4447_s3 + $0xe0] sm:$0xff] }
0x11cf   :  { %v1974_v53 = vadd.f32 %v3322_v41, %v1973_v50  ;;  %v3174_v50 = vld [vmem:[%s4413_s9 + $0xf8] sm:$0xff] }
0x11d1   :  { %v1978_v57 = vsel %vm1977_vm3, %v3322_v41, %v1974_v53  ;;  %v3172_v53 = vld [vmem:[%s4413_s9 + $0xe8] sm:$0xff] }
0x11d2   :  { %v1983_v58 = vsel %vm1980_vm4, %v1982_v55, %v1978_v57  ;;  %v3171_v55 = vld [vmem:[%s4413_s9 + $0xe0] sm:$0xff] }
0x11d3   :  { %v1984_v60 = vmul.f32 %v3318_v20, %v1983_v58  ;;  %v3248_v20 = vld [vmem:[%s4414_s10 + $0x6] ss:$0 sm:$0xff] }
0x11d5   :  { %3121 = vmatmul.msk.f32.vlgmr.msra.gmra.mxu3 %vm321_vm14, %v1984_v60  ;;  %3132 = vmatmul.msk.f32.vlgmr.msra.gmra.mxu2 %vm140_vm5, %v4033_v49 }
0x11dd   :  { %3133 = vmatmul.msk.f32.gmra.mxu2 %vm140_vm5, %v4042_v56  ;;  %3139 = vmatmul.msk.f32.vlgmr.msrb.gmra.mxu3 %vm140_vm5, %v4033_v49 }
0x11e5   :  { %3140 = vmatmul.msk.f32.gmra.mxu3 %vm140_vm5, %v4042_v56 }
0x1250   :  { %v2005_v3 = vpop.f32.mrf.mxu2 }
0x1251   :  { %3123 = vmatmul.msk.f32.vlgmr.msrb.gmra.mxu0 %vm321_vm14, %v2005_v3 }
0x1252   :  { %2424 = vmatpush.msrb.mxu0 %v3167_v2 }
0x1254   :  { %2425 = vmatpush.msrb.mxu0 %v3166_v4 }
0x1256   :  { %2426 = vmatpush.msrb.mxu0 %v3165_v16 }
0x1258   :  { %v2028_v6 = vpop.f32.mrf.mxu3  ;;  %2427 = vmatpush.msrb.mxu0 %v3164_v5  ;;  %v2118_v8 = vpop.f32.mrf.mxu2 }
0x1259   :  { %3124 = vmatmul.msk.f32.gmra.mxu0 %vm321_vm14, %v2028_v6  ;;  %v2119_v11 = vadd.f32 %v3246_v22, %v2118_v8 }
0x1260   :  { %v2151_v9 = vpop.f32.mrf.mxu3  ;;  %v2121_v13 = vpop.f32.mrf.mxu2 }
0x1261   :  { %v2152_v10 = vadd.f32 %v3247_v7, %v2151_v9  ;;  %3146 = vmatmul.msk.f32.vlgmr.msra.gmra.mxu0 %vm140_vm5, %v4033_v49  ;;  %v2122_v15 = vadd.f32 %v3246_v22, %v2121_v13 }
0x1263   :  { %3148 = vmatpush.xpose.msk.msra.mxu1 %vm321_vm14, %v2152_v10 }
0x1266   :  { %3149 = vmatmul.msk.f32.vlgmr.msra.gmra.mxu1 %vm321_vm14, %v2119_v11 }
0x1268   :  { %v2154_v12 = vpop.f32.mrf.mxu3 }
0x1269   :  { %v2155_v14 = vadd.f32 %v3247_v7, %v2154_v12  ;;  %3147 = vmatmul.msk.f32.gmra.mxu0 %vm140_vm5, %v4042_v56 }
0x126b   :  { %3150 = vmatpush.xpose.msk.msrb.mxu2 %vm321_vm14, %v2155_v14 }
0x126e   :  { %3151 = vmatmul.msk.f32.vlgmr.msrb.gmra.mxu2 %vm321_vm14, %v2122_v15 }
0x126f   :  { %2359 = vmatpush.msra.mxu2 %v3154_v17 }
0x1271   :  { %3169 = vmatmul.msk.f32.vlgmr.msrb.gmra.mxu0 %vm140_vm5, %v4033_v49 }
0x1279   :  { %3170 = vmatmul.msk.f32.gmra.mxu0 %vm140_vm5, %v4042_v56 }
0x12ce   :  { %v4214_v54 = vpop.f32.mrf.mxu0 }
0x12d6   :  { %v2059_v19 = vpop.f32.mrf.mxu0 }
0x12d7   :  { %v4219_v59 = vadd.f32 %v2088_v18, %v2059_v19 }
0x12de   :  { %v2184_v21 = vpop.f32.mrf.mxu0 }
0x12df   :  { %v2185_v23 = vadd.f32 %v3248_v20, %v2184_v21  ;;  %v3250_v21 = vld [vmem:[%s4452_s0 + $0x7] ss:$0 sm:$0xff] }
0x12e1   :  { %2308 = vmatpush.msra.mxu3 %v2185_v23  ;;  %v3251_v23 = vld [vmem:[%s4414_s10 + $0x7] ss:$0 sm:$0xff] }
0x12e3   :  { %v2213_v24 = vpop.f32.mrf.mxu1  ;;  %2391 = vmatpush.msrb.mxu3 %v3160_v44 }
0x12e4   :  { %v2242_v25 = vsel %vm321_vm14, %v2213_v24, -inf }
0x12e5   :  { %2243 = vmax.xlane.f32.xlu1 %v2242_v25  ;;  %2392 = vmatpush.msrb.mxu3 %v3159_v45 }
0x12e6   :  { %v2187_v26 = vpop.f32.mrf.mxu0 }
0x12e7   :  { %v2188_v27 = vadd.f32 %v3248_v20, %v2187_v26  ;;  %2393 = vmatpush.msrb.mxu3 %v3158_v46 }
0x12e9   :  { %2331 = vmatpush.msrb.mxu1 %v2188_v27  ;;  %2394 = vmatpush.msrb.mxu3 %v3157_v47 }
0x12eb   :  { %2457 = vmatpush.msra.mxu1 %v3174_v50 }
0x12ed   :  { %2458 = vmatpush.msra.mxu1 %v3173_v51 }
0x12ee   :  { %v2429_v29 = vpop.f32.mrf.mxu0 }
0x12ef   :  { %v2430_v30 = vadd.f32 %v3249_v28, %v2429_v29  ;;  %2459 = vmatpush.msra.mxu1 %v3172_v53 }
0x12f1   :  { %v2239_v31 = vpop.f32.mrf.mxu2  ;;  %3178 = vmatpush.xpose.msk.msrb.mxu2 %vm321_vm14, %v2430_v30  ;;  %2460 = vmatpush.msra.mxu1 %v3171_v55 }
0x12f2   :  { %v2245_v33 = vsel %vm321_vm14, %v2239_v31, -inf }
0x12f3   :  { %2246 = vmax.xlane.f32.xlu2 %v2245_v33 }
0x12f6   :  { %v2432_v3 = vpop.f32.mrf.mxu0 }
0x12f7   :  { %v2433_v6 = vadd.f32 %v3249_v28, %v2432_v3 }
0x1358   :  { %v2244_v34 = vpop.xlane.xlu1 %2243 }
0x1359   :  { %v2248_v35 = vsub.f32 %v2213_v24, %v2244_v34 }
0x135b   :  { %v2250_v36 = vmul.f32 1.442695, %v2248_v35 }
0x135d   :  { %3323 = vpow2.f32 %v2250_v36 }
0x1363   :  { %v3324_v37 = vpop.eup %3323 }
0x1364   :  { %v2254_v38 = vsel %vm321_vm14, %v3324_v37, 0.0 }
0x1365   :  { %2255 = vadd.xlane.f32.xlu0 %v2254_v38 }
0x1366   :  { %v2247_v39 = vpop.xlane.xlu2 %2246 }
0x1367   :  { %v2249_v40 = vsub.f32 %v2239_v31, %v2247_v39  ;;  %v2086_v31 = vadd.f32 %v4212_v52, %v4214_v54 }
0x1369   :  { %v2252_v41 = vmul.f32 1.442695, %v2249_v40 }
0x136b   :  { %3325 = vpow2.f32 %v2252_v41 }
0x1371   :  { %v3326_v42 = vpop.eup %3325 }
0x1372   :  { %v2257_v43 = vsel %vm321_vm14, %v3326_v42, 0.0 }
0x1373   :  { %2258 = vadd.xlane.f32.xlu1 %v2257_v43 }
0x13d8   :  { %v2256_v48 = vpop.xlane.xlu0 %2255 }
0x13d9   :  { %3327 = vrcp.f32 %v2256_v48  ;;  %v2271_v61 = vand.u32 2147483648, %v2256_v48  ;;  %v2269_v63 = vand.u32 2147483647, %v2256_v48  ;;  %vm2265_vm7 = vweird.f32 %v2256_v48 }
0x13db   :  { %v2272_v2 = vor.u32 1.1754944e-38, %v2271_v61  ;;  %vm2270_vm9 = vcmp.eq.f32.partialorder %v2269_v63, 8.507059e+37 }
0x13df   :  { %v3328_v57 = vpop.eup %3327 }
0x13e0   :  { %v2261_v58 = vmul.f32 %v3328_v57, %v2256_v48  ;;  %vm2266_vm6 = vweird.f32 %v3328_v57 }
0x13e1   :  { %vm2267_vm8 = vmor %vm2265_vm7, %vm2266_vm6 }
0x13e2   :  { %v2262_v60 = vsub.f32 1.0, %v2261_v58 }
0x13e4   :  { %v2263_v62 = vmul.f32 %v3328_v57, %v2262_v60 }
0x13e6   :  { %v2264_v0 = vadd.f32 %v3328_v57, %v2263_v62  ;;  %v2259_v1 = vpop.xlane.xlu1 %2258 }
0x13e7   :  { %3329 = vrcp.f32 %v2259_v1  ;;  %v2286_v9 = vand.u32 2147483648, %v2259_v1  ;;  %v2284_v11 = vand.u32 2147483647, %v2259_v1  ;;  %vm2280_vm12 = vweird.f32 %v2259_v1 }
0x13e8   :  { %v2268_v4 = vsel %vm2267_vm8, %v3328_v57, %v2264_v0 }
0x13e9   :  { %v2273_v16 = vsel %vm2270_vm9, %v2272_v2, %v2268_v4  ;;  %v2287_v13 = vor.u32 1.1754944e-38, %v2286_v9  ;;  %vm2285_vm15 = vcmp.eq.f32.partialorder %v2284_v11, 8.507059e+37  ;;  %v3184_v11 = vld [vmem:[%s4415_s11 + $0x38] sm:$0xff] }
0x13ea   :  { %v2274_v5 = vmul.f32 %v3324_v37, %v2273_v16 }
0x13ec   :  { %3152 = vmatmul.msk.f32.vlgmr.msra.gmra.mxu3 %vm321_vm14, %v2274_v5 }
0x13ed   :  { %v3330_v7 = vpop.eup %3329  ;;  %3180 = vmatpush.xpose.msk.msra.mxu3 %vm321_vm14, %v2433_v6 }
0x13ee   :  { %v2276_v8 = vmul.f32 %v3330_v7, %v2259_v1  ;;  %vm2281_vm11 = vweird.f32 %v3330_v7 }
0x13ef   :  { %vm2282_vm13 = vmor %vm2280_vm12, %vm2281_vm11 }
0x13f0   :  { %v2277_v22 = vsub.f32 1.0, %v2276_v8 }
0x13f2   :  { %v2278_v10 = vmul.f32 %v3330_v7, %v2277_v22 }
0x13f4   :  { %v2279_v12 = vadd.f32 %v3330_v7, %v2278_v10  ;;  %3162 = vmatmul.msk.f32.vlgmr.msrb.gmra.mxu3 %vm140_vm5, %v4033_v49 }
0x13f6   :  { %v2283_v14 = vsel %vm2282_vm13, %v3330_v7, %v2279_v12 }
0x13f7   :  { %v2288_v15 = vsel %vm2285_vm15, %v2287_v13, %v2283_v14  ;;  %v3252_v14 = vld [vmem:[%s4416_s12 + $0x1] ss:$0 sm:$0xff] }
0x13f8   :  { %v2289_v17 = vmul.f32 %v3326_v42, %v2288_v15 }
0x13fa   :  { %3153 = vmatmul.msk.f32.vlgmr.msrb.gmra.mxu1 %vm321_vm14, %v2289_v17 }
0x13fc   :  { %3163 = vmatmul.msk.f32.gmra.mxu3 %vm140_vm5, %v4042_v56 }
0x1402   :  { %3176 = vmatmul.msk.f32.vlgmr.msra.gmra.mxu1 %vm140_vm5, %v4033_v49 }
0x140a   :  { %3177 = vmatmul.msk.f32.gmra.mxu1 %vm140_vm5, %v4042_v56 }
0x146f   :  { %v2310_v18 = vpop.f32.mrf.mxu3 }
0x1470   :  { %3155 = vmatmul.msk.f32.vlgmr.msra.gmra.mxu2 %vm321_vm14, %v2310_v18 }
0x1471   :  { %2637 = vmatpush.msra.mxu2 %v3184_v11  ;;  %v3197_v11 = vld [vmem:[%s4421_s17 + $0x40] sm:$0xff] }
0x1477   :  { %v2333_v19 = vpop.f32.mrf.mxu1  ;;  %v2396_v20 = vpop.f32.mrf.mxu3 }
0x1478   :  { %3156 = vmatmul.msk.f32.gmra.mxu2 %vm321_vm14, %v2333_v19  ;;  %v2397_v24 = vadd.f32 %v3250_v21, %v2396_v20 }
0x147f   :  { %v2399_v25 = vpop.f32.mrf.mxu3  ;;  %v2462_v26 = vpop.f32.mrf.mxu1 }
0x1480   :  { %v2400_v27 = vadd.f32 %v3250_v21, %v2399_v25  ;;  %v2463_v28 = vadd.f32 %v3251_v23, %v2462_v26  ;;  %3179 = vmatmul.msk.f32.vlgmr.msrb.gmra.mxu2 %vm321_vm14, %v2397_v24 }
0x1482   :  { %3181 = vmatmul.msk.f32.vlgmr.msra.gmra.mxu3 %vm321_vm14, %v2400_v27  ;;  %2586 = vmatpush.msrb.mxu1 %v2463_v28 }
0x1487   :  { %v2465_v29 = vpop.f32.mrf.mxu1 }
0x1488   :  { %v2466_v30 = vadd.f32 %v3251_v23, %v2465_v29 }
0x148a   :  { %2609 = vmatpush.msra.mxu1 %v2466_v30 }
0x14f3   :  { %v2361_v33 = vpop.f32.mrf.mxu2 }
0x14f4   :  { %v4279_v34 = vadd.f32 %v2361_v33, %v2086_v31 }
0x14fb   :  { %v2364_v35 = vpop.f32.mrf.mxu2 }
0x14fc   :  { %v4282_v36 = vadd.f32 %v2364_v35, %v4219_v59 }
0x1503   :  { %v2491_v37 = vpop.f32.mrf.mxu2 }
0x1504   :  { %v2520_v38 = vsel %vm321_vm14, %v2491_v37, -inf }
0x1505   :  { %v2517_v39 = vpop.f32.mrf.mxu3  ;;  %2521 = vmax.xlane.f32.xlu2 %v2520_v38  ;;  %v3191_v38 = vld [vmem:[%s4419_s15 + $0x28] sm:$0xff] }
0x1506   :  { %v2523_v40 = vsel %vm321_vm14, %v2517_v39, -inf }
0x1507   :  { %2524 = vmax.xlane.f32.xlu0 %v2523_v40 }
0x1578   :  { %v2522_v41 = vpop.xlane.xlu2 %2521 }
0x1579   :  { %v2526_v42 = vsub.f32 %v2491_v37, %v2522_v41  ;;  %v3192_v37 = vld [vmem:[%s4419_s15 + $0x30] sm:$0xff] }
0x157a   :  { %v2525_v43 = vpop.xlane.xlu0 %2524 }
0x157b   :  { %v2528_v44 = vmul.f32 1.442695, %v2526_v42  ;;  %v2527_v52 = vsub.f32 %v2517_v39, %v2525_v43  ;;  %v3190_v39 = vld [vmem:[%s4419_s15 + $0x20] sm:$0xff]  ;;  %v3204_v43 = vld [vmem:[%s4421_s17 + $0x78] sm:$0xff] }
0x157c   :  { %2783 = vmatpush.msra.mxu0 %v3204_v43 }
0x157d   :  { %3331 = vpow2.f32 %v2528_v44  ;;  %v2530_v54 = vmul.f32 1.442695, %v2527_v52  ;;  %v3203_v44 = vld [vmem:[%s4421_s17 + $0x70] sm:$0xff]  ;;  %v3202_v52 = vld [vmem:[%s4421_s17 + $0x68] sm:$0xff] }
0x157e   :  { %2784 = vmatpush.msra.mxu0 %v3203_v44 }
0x157f   :  { %3333 = vpow2.f32 %v2530_v54 }
0x1580   :  { %2785 = vmatpush.msra.mxu0 %v3202_v52 }
0x1583   :  { %v3332_v45 = vpop.eup %3331 }
0x1584   :  { %v2532_v59 = vsel %vm321_vm14, %v3332_v45, 0.0 }
0x1585   :  { %v3334_v46 = vpop.eup %3333  ;;  %2533 = vadd.xlane.f32.xlu1 %v2532_v59  ;;  %v3201_v59 = vld [vmem:[%s4421_s17 + $0x60] sm:$0xff] }
0x1586   :  { %v2535_v47 = vsel %vm321_vm14, %v3334_v46, 0.0  ;;  %2786 = vmatpush.msra.mxu0 %v3201_v59 }
0x1587   :  { %2536 = vadd.xlane.f32.xlu2 %v2535_v47 }
0x15f8   :  { %v2534_v48 = vpop.xlane.xlu1 %2533 }
0x15f9   :  { %3335 = vrcp.f32 %v2534_v48  ;;  %v2549_v60 = vand.u32 2147483648, %v2534_v48  ;;  %v2547_v62 = vand.u32 2147483647, %v2534_v48  ;;  %vm2543_vm1 = vweird.f32 %v2534_v48 }
0x15fa   :  { %v2537_v50 = vpop.xlane.xlu2 %2536 }
0x15fb   :  { %3337 = vrcp.f32 %v2537_v50  ;;  %v2550_v2 = vor.u32 1.1754944e-38, %v2549_v60  ;;  %vm2548_vm3 = vcmp.eq.f32.partialorder %v2547_v62, 8.507059e+37  ;;  %v2564_v5 = vand.u32 2147483648, %v2537_v50 }
0x15fc   :  { %vm2558_vm6 = vweird.f32 %v2537_v50  ;;  %v2562_v7 = vand.u32 2147483647, %v2537_v50 }
0x15fd   :  { %v2565_v22 = vor.u32 1.1754944e-38, %v2564_v5 }
0x15fe   :  { %vm2563_vm8 = vcmp.eq.f32.partialorder %v2562_v7, 8.507059e+37 }
0x15ff   :  { %v3336_v51 = vpop.eup %3335 }
0x1600   :  { %v2539_v53 = vmul.f32 %v3336_v51, %v2534_v48  ;;  %vm2544_vm0 = vweird.f32 %v3336_v51  ;;  %v3200_v48 = vld [vmem:[%s4421_s17 + $0x58] sm:$0xff] }
0x1601   :  { %v3338_v55 = vpop.eup %3337  ;;  %vm2545_vm2 = vmor %vm2543_vm1, %vm2544_vm0  ;;  %2787 = vmatpush.msra.mxu0 %v3200_v48 }
0x1602   :  { %v2540_v57 = vsub.f32 1.0, %v2539_v53  ;;  %v2554_v58 = vmul.f32 %v3338_v55, %v2537_v50  ;;  %vm2559_vm4 = vweird.f32 %v3338_v55 }
0x1603   :  { %vm2560_vm7 = vmor %vm2558_vm6, %vm2559_vm4 }
0x1604   :  { %v2541_v61 = vmul.f32 %v3336_v51, %v2540_v57  ;;  %v2555_v63 = vsub.f32 1.0, %v2554_v58 }
0x1606   :  { %v2542_v0 = vadd.f32 %v3336_v51, %v2541_v61  ;;  %v2556_v1 = vmul.f32 %v3338_v55, %v2555_v63  ;;  %v3253_v61 = vld [vmem:[%s4417_s13 + $0x1] ss:$0 sm:$0xff]  ;;  %s2922_s13 = sshll.u32 %s4427_s23, 4  ;;  %s2923_s13 = int_to_ptr.hbm [resolvable:$true] %s2922_s13 }
0x1608   :  { %v2546_v3 = vsel %vm2545_vm2, %v3336_v51, %v2542_v0  ;;  %v2557_v4 = vadd.f32 %v3338_v55, %v2556_v1  ;;  %v3254_v0 = vld [vmem:[%s4418_s14 + $0x1] ss:$0 sm:$0xff] }
0x1609   :  { %v2551_v16 = vsel %vm2548_vm3, %v2550_v2, %v2546_v3 }
0x160a   :  { %v2552_v6 = vmul.f32 %v3332_v45, %v2551_v16  ;;  %v2561_v8 = vsel %vm2560_vm7, %v3338_v55, %v2557_v4 }
0x160b   :  { %v2566_v9 = vsel %vm2563_vm8, %v2565_v22, %v2561_v8 }
0x160c   :  { %3182 = vmatmul.msk.f32.vlgmr.msrb.gmra.mxu1 %vm321_vm14, %v2552_v6  ;;  %v2567_v10 = vmul.f32 %v3334_v46, %v2566_v9  ;;  %v3199_v9 = vld [vmem:[%s4421_s17 + $0x50] sm:$0xff] }
0x160d   :  { %2788 = vmatpush.msra.mxu0 %v3199_v9 }
0x1614   :  { %3183 = vmatmul.msk.f32.vlgmr.msra.gmra.mxu1 %vm321_vm14, %v2567_v10  ;;  %v3198_v10 = vld [vmem:[%s4421_s17 + $0x48] sm:$0xff] }
0x1615   :  { %2789 = vmatpush.msra.mxu0 %v3198_v10 }
0x1617   :  { %2790 = vmatpush.msra.mxu0 %v3197_v11 }
0x1689   :  { %v2588_v12 = vpop.f32.mrf.mxu1 }
0x168a   :  { %3185 = vmatmul.msk.f32.vlgmr.msra.gmra.mxu2 %vm321_vm14, %v2588_v12  ;;  %v3255_v12 = vld [vmem:[%s4420_s16 + $0x1] ss:$0 sm:$0xff] }
0x1691   :  { %v2611_v13 = vpop.f32.mrf.mxu1 }
0x1692   :  { %3186 = vmatmul.msk.f32.gmra.mxu2 %vm321_vm14, %v2611_v13 }
0x170d   :  { %v2639_v15 = vpop.f32.mrf.mxu2 }
0x170e   :  { %v2645_v17 = vadd.f32 %v2639_v15, %v4279_v34 }
0x1710   :  { %v2652_v18 = vadd.f32 %v3252_v14, %v2645_v17 }
0x1712   :  { %v2654_v19 = vadd.f32 %v2652_v18, %v4033_v49 }
0x1714   :  { %v2660_v20 = vsel %vm140_vm5, %v2654_v19, 0.0 }
0x1715   :  { %2661 = vadd.xlane.f32.xlu0 %v2660_v20  ;;  %v2642_v21 = vpop.f32.mrf.mxu2  ;;  %v3256_v20 = vld [vmem:[%s4422_s18 + $0x1] ss:$0 sm:$0xff] }
0x1716   :  { %v2646_v23 = vadd.f32 %v2642_v21, %v4282_v36 }
0x1718   :  { %v2653_v24 = vadd.f32 %v3252_v14, %v2646_v23 }
0x171a   :  { %v2655_v25 = vadd.f32 %v2653_v24, %v4042_v56  ;;  %v3193_v56 = vld [vmem:[%s4419_s15 + $0x38] sm:$0xff]  ;;  %s3407_s15 = smov 128  }
0x171b   :  { %2742 = vmatpush.msrb.mxu3 %v3193_v56 }
0x171c   :  { %v2663_v26 = vsel %vm140_vm5, %v2655_v25, 0.0 }
0x171d   :  { %2664 = vadd.xlane.f32.xlu1 %v2663_v26  ;;  %2743 = vmatpush.msrb.mxu3 %v3192_v37 }
0x171f   :  { %2744 = vmatpush.msrb.mxu3 %v3191_v38 }
0x1721   :  { %2745 = vmatpush.msrb.mxu3 %v3190_v39 }
0x1788   :  { %v2662_v27 = vpop.xlane.xlu0 %2661 }
0x1789   :  { %v2666_v28 = vmul.f32 %v2662_v27, %v3567_v32 }
0x178b   :  { %v2668_v29 = vsub.f32 %v2654_v19, %v2666_v28 }
0x178d   :  { %v2670_v30 = vmul.f32 %v2668_v29, %v2668_v29 }
0x178f   :  { %v2672_v31 = vsel %vm140_vm5, %v2670_v30, 0.0 }
0x1790   :  { %2673 = vadd.xlane.f32.xlu2 %v2672_v31  ;;  %v2665_v49 = vpop.xlane.xlu1 %2664 }
0x1791   :  { %v2667_v33 = vmul.f32 %v2665_v49, %v3567_v32 }
0x1793   :  { %v2669_v34 = vsub.f32 %v2655_v25, %v2667_v33 }
0x1795   :  { %v2671_v35 = vmul.f32 %v2669_v34, %v2669_v34 }
0x1797   :  { %v2675_v36 = vsel %vm140_vm5, %v2671_v35, 0.0 }
0x1798   :  { %2676 = vadd.xlane.f32.xlu0 %v2675_v36 }
0x1803   :  { %v2674_v40 = vpop.xlane.xlu2 %2673 }
0x1804   :  { %v2678_v41 = vmul.f32 %v2674_v40, %v3567_v32 }
0x1806   :  { %v2680_v42 = vadd.f32 1e-05, %v2678_v41 }
0x1808   :  { %3339 = vrsqrt.f32 %v2680_v42  ;;  %vm2688_vm9 = vweird.f32 %v2680_v42 }
0x180b   :  { %v2677_v54 = vpop.xlane.xlu0 %2676 }
0x180c   :  { %v2679_v45 = vmul.f32 %v2677_v54, %v3567_v32 }
0x180e   :  { %v3340_v46 = vpop.eup %3339  ;;  %v2681_v47 = vadd.f32 1e-05, %v2679_v45 }
0x180f   :  { %v2683_v50 = vmul.f32 %v3340_v46, %v2680_v42  ;;  %vm2689_vm14 = vweird.f32 %v3340_v46 }
0x1810   :  { %3341 = vrsqrt.f32 %v2681_v47  ;;  %vm2690_vm11 = vmor %vm2688_vm9, %vm2689_vm14  ;;  %vm2698_vm13 = vweird.f32 %v2681_v47 }
0x1811   :  { %v2684_v51 = vmul.f32 %v3340_v46, %v2683_v50 }
0x1813   :  { %v2685_v53 = vmul.f32 0.5, %v2684_v51  ;;  %v3257_v51 = vld [vmem:[%s4423_s19 + $0x1] ss:$0 sm:$0xff]  ;;  %s3406_s19 = smov [#allocation4]  }
0x1815   :  { %v2686_v55 = vsub.f32 1.5, %v2685_v53 }
0x1816   :  { %v3342_v57 = vpop.eup %3341 }
0x1817   :  { %v2687_v58 = vmul.f32 %v3340_v46, %v2686_v55  ;;  %v2693_v60 = vmul.f32 %v3342_v57, %v2681_v47  ;;  %vm2699_vm12 = vweird.f32 %v3342_v57 }
0x1818   :  { %vm2700_vm15 = vmor %vm2698_vm13, %vm2699_vm12 }
0x1819   :  { %v2691_v62 = vsel %vm2690_vm11, %v3340_v46, %v2687_v58  ;;  %v2694_v63 = vmul.f32 %v3342_v57, %v2693_v60  ;;  %v3258_v58 = vld [vmem:[%s4424_s20 + $0x1] ss:$0 sm:$0xff]  ;;  %s2933_s20 = sshll.u32 %s3406_s19, 4  ;;  %s2934_s20 = int_to_ptr.vmem [resolvable:$true] %s2933_s20 }
0x181a   :  { %v2702_v1 = vmul.f32 %v2691_v62, %v2668_v29  ;;  %2941 = dma.vmem_to_hbm [thread:$0]  %s2934_s20, 256, %s2936_s2, [#allocation5], %s3407_s15, %s3407_s15, %s3408_s30  }
0x181b   :  { %v2695_v2 = vmul.f32 0.5, %v2694_v63 }
0x181c   :  { %v2707_v3 = vmul.f32 %v3253_v61, %v2702_v1 }
0x181d   :  { %v2696_v4 = vsub.f32 1.5, %v2695_v2 }
0x181e   :  { %v2712_v16 = vadd.f32 %v3254_v0, %v2707_v3 }
0x181f   :  { %v2697_v5 = vmul.f32 %v3342_v57, %v2696_v4 }
0x1820   :  { %3195 = vmatmul.msk.f32.vlgmr.msrb.gmra.mxu3 %vm140_vm5, %v2712_v16 }
0x1821   :  { %v2701_v6 = vsel %vm2700_vm15, %v3342_v57, %v2697_v5 }
0x1822   :  { %v2703_v7 = vmul.f32 %v2701_v6, %v2669_v34 }
0x1824   :  { %v2708_v8 = vmul.f32 %v3253_v61, %v2703_v7 }
0x1826   :  { %v2713_v22 = vadd.f32 %v3254_v0, %v2708_v8 }
0x1828   :  { %3196 = vmatmul.msk.f32.gmra.mxu3 %vm140_vm5, %v2713_v22 }
0x18a3   :  { %v2747_v13 = vpop.f32.mrf.mxu3 }
0x18a4   :  { %v2748_v14 = vadd.f32 %v3255_v12, %v2747_v13 }
0x18a6   :  { %v2753_v15 = vmax.f32 %v2748_v14, 0.0 }
0x18a8   :  { %3206 = vmatmul.msk.f32.vlgmr.msra.gmra.mxu0 %vm1445_vm10, %v2753_v15 }
0x18ab   :  { %v2750_v17 = vpop.f32.mrf.mxu3 }
0x18ac   :  { %v2751_v18 = vadd.f32 %v3255_v12, %v2750_v17 }
0x18ae   :  { %v2754_v19 = vmax.f32 %v2751_v18, 0.0 }
0x18b0   :  { %3207 = vmatmul.msk.f32.gmra.mxu0 %vm1445_vm10, %v2754_v19 }
0x1925   :  { %v2792_v21 = vpop.f32.mrf.mxu0 }
0x1926   :  { %v2793_v23 = vadd.f32 %v3256_v20, %v2792_v21 }
0x1928   :  { %v2798_v24 = vadd.f32 %v2793_v23, %v2712_v16 }
0x192a   :  { %v2804_v25 = vsel %vm140_vm5, %v2798_v24, 0.0 }
0x192b   :  { %2805 = vadd.xlane.f32.xlu1 %v2804_v25 }
0x192d   :  { %v2795_v26 = vpop.f32.mrf.mxu0 }
0x192e   :  { %v2796_v27 = vadd.f32 %v3256_v20, %v2795_v26 }
0x1930   :  { %v2799_v28 = vadd.f32 %v2796_v27, %v2713_v22 }
0x1932   :  { %v2807_v29 = vsel %vm140_vm5, %v2799_v28, 0.0 }
0x1933   :  { %2808 = vadd.xlane.f32.xlu2 %v2807_v29 }
0x199e   :  { %v2806_v30 = vpop.xlane.xlu1 %2805 }
0x199f   :  { %v2810_v31 = vmul.f32 %v2806_v30, %v3567_v32 }
0x19a1   :  { %v2812_v49 = vsub.f32 %v2798_v24, %v2810_v31  ;;  %v3259_v31 = vld [vmem:[%s4425_s21] ss:$0 sm:$0xff]  ;;  %s3409_s21 = smov [#allocation2]  }
0x19a2   :  { %s2920_s8 = sshll.u32 %s3409_s21, 4  ;;  %s2921_s8 = int_to_ptr.vmem [resolvable:$true] %s2920_s8 }
0x19a3   :  { %v2814_v33 = vmul.f32 %v2812_v49, %v2812_v49 }
0x19a5   :  { %v2816_v34 = vsel %vm140_vm5, %v2814_v33, 0.0 }
0x19a6   :  { %v2809_v35 = vpop.xlane.xlu2 %2808  ;;  %2817 = vadd.xlane.f32.xlu0 %v2816_v34  ;;  %v3260_v34 = vld [vmem:[%s4426_s22] ss:$0 sm:$0xff] }
0x19a7   :  { %v2811_v36 = vmul.f32 %v2809_v35, %v3567_v32 }
0x19a9   :  { %v2813_v56 = vsub.f32 %v2799_v28, %v2811_v36 }
0x19ab   :  { %v2815_v37 = vmul.f32 %v2813_v56, %v2813_v56 }
0x19ad   :  { %v2819_v38 = vsel %vm140_vm5, %v2815_v37, 0.0 }
0x19ae   :  { %2820 = vadd.xlane.f32.xlu1 %v2819_v38 }
0x1a19   :  { %v2818_v39 = vpop.xlane.xlu0 %2817 }
0x1a1a   :  { %v2822_v40 = vmul.f32 %v2818_v39, %v3567_v32 }
0x1a1c   :  { %v2824_v41 = vadd.f32 1e-05, %v2822_v40 }
0x1a1e   :  { %3343 = vrsqrt.f32 %v2824_v41  ;;  %vm2832_vm0 = vweird.f32 %v2824_v41 }
0x1a21   :  { %v2821_v42 = vpop.xlane.xlu1 %2820 }
0x1a22   :  { %v2823_v43 = vmul.f32 %v2821_v42, %v3567_v32 }
0x1a24   :  { %v3344_v44 = vpop.eup %3343  ;;  %v2825_v52 = vadd.f32 1e-05, %v2823_v43 }
0x1a25   :  { %v2827_v54 = vmul.f32 %v3344_v44, %v2824_v41  ;;  %vm2833_vm10 = vweird.f32 %v3344_v44 }
0x1a26   :  { %3345 = vrsqrt.f32 %v2825_v52  ;;  %vm2834_vm1 = vmor %vm2832_vm0, %vm2833_vm10  ;;  %vm2842_vm3 = vweird.f32 %v2825_v52 }
0x1a27   :  { %v2828_v45 = vmul.f32 %v3344_v44, %v2827_v54 }
0x1a29   :  { %v2829_v59 = vmul.f32 0.5, %v2828_v45 }
0x1a2b   :  { %v2830_v46 = vsub.f32 1.5, %v2829_v59 }
0x1a2c   :  { %v3346_v47 = vpop.eup %3345 }
0x1a2d   :  { %v2831_v48 = vmul.f32 %v3344_v44, %v2830_v46  ;;  %v2837_v50 = vmul.f32 %v3346_v47, %v2825_v52  ;;  %vm2843_vm2 = vweird.f32 %v3346_v47 }
0x1a2e   :  { %vm2844_vm4 = vmor %vm2842_vm3, %vm2843_vm2 }
0x1a2f   :  { %v2838_v53 = vmul.f32 %v3346_v47, %v2837_v50  ;;  %v2835_v55 = vsel %vm2834_vm1, %v3344_v44, %v2831_v48 }
0x1a30   :  { %v2846_v57 = vmul.f32 %v2835_v55, %v2812_v49 }
0x1a31   :  { %v2839_v60 = vmul.f32 0.5, %v2838_v53 }
0x1a32   :  { %v2851_v61 = vmul.f32 %v3257_v51, %v2846_v57 }
0x1a33   :  { %v2840_v62 = vsub.f32 1.5, %v2839_v60 }
0x1a34   :  { %v2856_v63 = vadd.f32 %v3258_v58, %v2851_v61 }
0x1a35   :  { %v2841_v0 = vmul.f32 %v3346_v47, %v2840_v62 }
0x1a36   :  { %v2860_v1 = vsel %vm140_vm5, %v2856_v63, 0.0 }
0x1a37   :  { %2861 = vadd.xlane.f32.xlu2 %v2860_v1  ;;  %v2845_v2 = vsel %vm2844_vm4, %v3346_v47, %v2841_v0 }
0x1a38   :  { %v2847_v3 = vmul.f32 %v2845_v2, %v2813_v56 }
0x1a3a   :  { %v2852_v4 = vmul.f32 %v3257_v51, %v2847_v3 }
0x1a3c   :  { %v2857_v16 = vadd.f32 %v3258_v58, %v2852_v4 }
0x1a3e   :  { %v2863_v5 = vsel %vm140_vm5, %v2857_v16, 0.0 }
0x1a3f   :  { %2864 = vadd.xlane.f32.xlu0 %v2863_v5 }
0x1aaa   :  { %v2862_v6 = vpop.xlane.xlu2 %2861 }
0x1aab   :  { %v2866_v7 = vmul.f32 %v2862_v6, %v3567_v32 }
0x1aad   :  { %v2868_v8 = vsub.f32 %v2856_v63, %v2866_v7 }
0x1aaf   :  { %v2870_v22 = vmul.f32 %v2868_v8, %v2868_v8 }
0x1ab1   :  { %v2872_v9 = vsel %vm140_vm5, %v2870_v22, 0.0 }
0x1ab2   :  { %2873 = vadd.xlane.f32.xlu1 %v2872_v9  ;;  %v2865_v10 = vpop.xlane.xlu0 %2864 }
0x1ab3   :  { %v2867_v11 = vmul.f32 %v2865_v10, %v3567_v32 }
0x1ab5   :  { %v2869_v12 = vsub.f32 %v2857_v16, %v2867_v11 }
0x1ab7   :  { %v2871_v13 = vmul.f32 %v2869_v12, %v2869_v12 }
0x1ab9   :  { %v2875_v14 = vsel %vm140_vm5, %v2871_v13, 0.0 }
0x1aba   :  { %2876 = vadd.xlane.f32.xlu2 %v2875_v14 }
0x1b25   :  { %v2874_v15 = vpop.xlane.xlu1 %2873 }
0x1b26   :  { %v2878_v17 = vmul.f32 %v2874_v15, %v3567_v32 }
0x1b28   :  { %v2880_v18 = vadd.f32 1e-05, %v2878_v17 }
0x1b2a   :  { %3347 = vrsqrt.f32 %v2880_v18  ;;  %vm2888_vm7 = vweird.f32 %v2880_v18 }
0x1b2d   :  { %v2877_v19 = vpop.xlane.xlu2 %2876 }
0x1b2e   :  { %v2879_v20 = vmul.f32 %v2877_v19, %v3567_v32 }
0x1b30   :  { %v3348_v21 = vpop.eup %3347  ;;  %v2881_v23 = vadd.f32 1e-05, %v2879_v20 }
0x1b31   :  { %v2883_v24 = vmul.f32 %v3348_v21, %v2880_v18  ;;  %vm2889_vm6 = vweird.f32 %v3348_v21 }
0x1b32   :  { %3349 = vrsqrt.f32 %v2881_v23  ;;  %vm2890_vm8 = vmor %vm2888_vm7, %vm2889_vm6  ;;  %vm2898_vm9 = vweird.f32 %v2881_v23 }
0x1b33   :  { %v2884_v25 = vmul.f32 %v3348_v21, %v2883_v24 }
0x1b35   :  { %v2885_v26 = vmul.f32 0.5, %v2884_v25 }
0x1b37   :  { %v2886_v27 = vsub.f32 1.5, %v2885_v26 }
0x1b38   :  { %v3350_v28 = vpop.eup %3349 }
0x1b39   :  { %v2887_v29 = vmul.f32 %v3348_v21, %v2886_v27  ;;  %v2893_v30 = vmul.f32 %v3350_v28, %v2881_v23  ;;  %vm2899_vm14 = vweird.f32 %v3350_v28 }
0x1b3a   :  { %vm2900_vm11 = vmor %vm2898_vm9, %vm2899_vm14 }
0x1b3b   :  { %v2891_v49 = vsel %vm2890_vm8, %v3348_v21, %v2887_v29  ;;  %v2894_v33 = vmul.f32 %v3350_v28, %v2893_v30 }
0x1b3c   :  { %v2902_v32 = vmul.f32 %v2891_v49, %v2868_v8 }
0x1b3d   :  { %v2895_v35 = vmul.f32 0.5, %v2894_v33 }
0x1b3e   :  { %v2907_v36 = vmul.f32 %v3259_v31, %v2902_v32 }
0x1b3f   :  { %v2896_v56 = vsub.f32 1.5, %v2895_v35 }
0x1b40   :  { %v2912_v37 = vadd.f32 %v3260_v34, %v2907_v36 }
0x1b41   :  { %v2897_v38 = vmul.f32 %v3350_v28, %v2896_v56 }
0x1b42   :  { %2914 = vst.msk [vmem:[#allocation2] sm:$0xff] %vm140_vm5, %v2912_v37 }
0x1b43   :  { %v2901_v39 = vsel %vm2900_vm11, %v3350_v28, %v2897_v38 }
0x1b44   :  { %v2903_v40 = vmul.f32 %v2901_v39, %v2869_v12 }
0x1b46   :  { %v2908_v41 = vmul.f32 %v3259_v31, %v2903_v40 }
0x1b48   :  { %v2913_v42 = vadd.f32 %v3260_v34, %v2908_v41 }
0x1b4a   :  { %2915 = vst.msk [vmem:[#allocation2 + $0x8] sm:$0xff] %vm140_vm5, %v2913_v42 }
0x1b4b   :  { %2928 = dma.vmem_to_hbm [thread:$0]  %s2921_s8, 256, %s2923_s13, [#allocation3], %s3407_s15, %s3407_s15, %s3408_s30  }
0x1b4c   :  { %3399 = dma.done.wait [#allocation3], 256  }
0x1b4d   :  { %3400 = vsyncadd [#allocation3], 4294967040 }
0x1b4e   :  { %3401 = dma.done.wait [#allocation5], 256  }
0x1b4f   :  { %3402 = vsyncadd [#allocation5], 4294967040 }
0x1b50   :  { %2950 = vsyncpa [#allocation3], 1 }
0x1b51   :  { %2951 = vsyncpa [#allocation5], 1 }

</bundles_post_ra>
